<compile_context>
chip_gen: v6e
topology: v6e:2x2x1
jax: 0.10.0
libtpu: 0.0.40
codegen_flags: <defaults>
</compile_context>

<pallas_src>
import jax
import jax.numpy as jnp
import numpy as np
from jax.experimental import pallas as pl
from jax.experimental.pallas import tpu as pltpu

# ----------------------------- configuration --------------------------------
N_AGENTS = 3
N_ITEMS = 4
HIDDEN = 128
N_HIDDEN = 2          # extra (hidden,hidden) layers after the first
ACTIVATION = "relu"   # args['activation'] != 'tanh' -> ReLU

A1 = N_AGENTS + 1                 # 4  (agents + dummy)
I1 = N_ITEMS + 1                  # 5  (items + dummy)
INPUT_SIZE = N_AGENTS * N_ITEMS   # 12
ALLOC_SIZE = A1 * I1              # 20 (original, unpadded head layout)
PAY_SIZE = N_AGENTS               # 3

BLOCK = 32                        # per-agent lane block (stride of roll-tree)
SLAB = A1 * BLOCK                 # 128 (one full lane group)
HEAD_WIDTH = 2 * SLAB             # 256: [F slab | S slab]
PAY_LANE = 8                      # payment-logit offset inside each F block
NEG_BIG = -1e30                   # bias for padded S lanes -> exp() == 0

TB = 256                          # batch tile per grid step (use 128 on v5e)


def _round_up(n, m):
    return ((n + m - 1) // m) * m


def _act(x):
    if ACTIVATION == "tanh":
        return jnp.tanh(x)
    return jnp.maximum(x, 0.0)


# ------------------------------- kernel -------------------------------------
def regretnet_kernel(x_ref, w0_ref, b0_ref, wh_ref, bh_ref,
                     whead_ref, bhead_ref, psum_ref, out_ref):
    x = x_ref[...]                                              # (TB, 128) slab-laid reports

    # ----- MLP trunk: Linear+act, then N_HIDDEN x (Linear+act) -----
    h = _act(jnp.dot(x, w0_ref[...], preferred_element_type=jnp.float32) + b0_ref[...])
    for l in range(N_HIDDEN):
        h = _act(jnp.dot(h, wh_ref[l], preferred_element_type=jnp.float32) + bh_ref[l])

    # ----- fused head: (TB, 256) = [F slab | S slab], agent block a at lanes a*32
    scores = jnp.dot(h, whead_ref[...], preferred_element_type=jnp.float32) \
        + bhead_ref[...]
    f = scores[:, :SLAB]          # agent-softmax scores (+ payment logits at offset 8)
    s = scores[:, SLAB:]          # item-softmax scores (padded lanes biased to -1e30)

    # --- softmax over agents: full-circular stride-32 reductions via XLU rolls ---
    # (rolls by 64/32 over 128 lanes reduce {l, l+32, l+64, l+96}, broadcast to all
    #  4 blocks; direction of the rotate is irrelevant for a full circular tree)
    t = jnp.maximum(f, pltpu.roll(f, 64, axis=1))
    m1 = jnp.maximum(t, pltpu.roll(t, 32, axis=1))
    e1 = jnp.exp(f - m1)
    t = e1 + pltpu.roll(e1, 64, axis=1)
    d1 = t + pltpu.roll(t, 32, axis=1)
    soft1 = e1 * pl.reciprocal(d1, approx=False)   # approx=True if accuracy budget allows

    # --- softmax over items (within each 32-lane agent block) ---
    # A per-row max is a valid (constant) shift for every per-agent group and keeps
    # exp() stable; the block-local denominator is produced by ONE MXU matmul with a
    # block-diagonal ones matrix, which also broadcasts it back across the block.
    m2 = jnp.max(s, axis=-1, keepdims=True)
    e2 = jnp.exp(s - m2)                           # NEG_BIG-padded lanes -> exactly 0
    d2 = jnp.dot(e2, psum_ref[...], preferred_element_type=jnp.float32)
    d2 = jnp.maximum(d2, 1e-30)                    # NaN guard for pathological spreads
    soft2 = e2 * pl.reciprocal(d2, approx=False)

    alloc = jnp.minimum(soft1, soft2)              # valid at lanes a*32 + j (j < 5)

    # per-agent utility: same block-sum matmul; x is zero off the real item lanes
    util = jnp.dot(alloc * x, psum_ref[...], preferred_element_type=jnp.float32)

    # fractional payments: sigmoid of the payment logits (at lanes a*32 + PAY_LANE)
    pay = jax.nn.sigmoid(f) * util

    # single aligned (TB, 128) output slab; wrapper extracts by slicing
    lane = jax.lax.broadcasted_iota(jnp.int32, (x.shape[0], SLAB), 1)
    out_ref[...] = jnp.where(lane % BLOCK == PAY_LANE, pay, alloc)


# ----------------------- parameter packing (layout plumbing) -----------------
def pack_trunk_input_weight(w0):
    """(12, H) -> (128, H): row a*32+j carries the weight row of (agent a, item j)."""
    w = w0.reshape(N_AGENTS, N_ITEMS, HIDDEN)
    w = jnp.pad(w, ((0, A1 - N_AGENTS), (0, BLOCK - N_ITEMS), (0, 0)))
    return w.reshape(SLAB, HIDDEN)


def pack_head(wa, ba, wp, bp):
    """Fuse allocation + payment heads into one (H, 256) weight / (1, 256) bias.

    F slab (lanes 0..127):   agent-softmax score (a, j) at lane a*32 + j,
                             payment logit for agent a at lane a*32 + 8.
    S slab (lanes 128..255): item-softmax score (a, j) at lane 128 + a*32 + j;
                             every other S lane gets a -1e30 bias so its exp()
                             is exactly 0 and the block-sum sees only real items.
    """
    w = jnp.zeros((HIDDEN, HEAD_WIDTH), jnp.float32)
    b = jnp.zeros((1, HEAD_WIDTH), jnp.float32)
    b = b.at[:, SLAB:].set(NEG_BIG)
    wa_f = wa[:, :ALLOC_SIZE].reshape(HIDDEN, A1, I1)
    ba_f = ba[:, :ALLOC_SIZE].reshape(1, A1, I1)
    wa_s = wa[:, ALLOC_SIZE:].reshape(HIDDEN, A1, I1)
    ba_s = ba[:, ALLOC_SIZE:].reshape(1, A1, I1)
    for a in range(A1):
        w = w.at[:, a * BLOCK: a * BLOCK + I1].set(wa_f[:, a, :])
        b = b.at[:, a * BLOCK: a * BLOCK + I1].set(ba_f[:, a, :])
        w = w.at[:, SLAB + a * BLOCK: SLAB + a * BLOCK + I1].set(wa_s[:, a, :])
        b = b.at[:, SLAB + a * BLOCK: SLAB + a * BLOCK + I1].set(ba_s[:, a, :])
    w = w.at[:, PAY_LANE:N_AGENTS * BLOCK:BLOCK].set(wp)
    b = b.at[:, PAY_LANE:N_AGENTS * BLOCK:BLOCK].set(bp)
    return w, b


def make_block_sum():
    """(128, 128) block-diagonal ones: y @ P block-sums y over each 32-lane block."""
    idx = jnp.arange(SLAB)
    return (idx[:, None] // BLOCK == idx[None, :] // BLOCK).astype(jnp.float32)


# ------------------------------- wrapper -------------------------------------
@jax.jit
def regretnet_forward(reports, w0p, b0, wh, bh, w_head, b_head, psum):
    bsz = reports.shape[0]
    tb = TB if bsz >= TB else _round_up(bsz, 8)
    pad_rows = (-bsz) % tb
    bsz_pad = bsz + pad_rows

    # one-time input re-layout: (B, 3, 4) -> (Bp, 128), item j of agent a at lane a*32+j
    r = jnp.pad(reports.astype(jnp.float32),
                ((0, pad_rows), (0, A1 - N_AGENTS), (0, BLOCK - N_ITEMS)))
    x = r.reshape(bsz_pad, SLAB)

    grid = (bsz_pad // tb,)

    in_specs = [
        pl.BlockSpec((tb, SLAB), lambda i: (i, 0)),
        pl.BlockSpec((SLAB, HIDDEN), lambda i: (0, 0)),
        pl.BlockSpec((1, HIDDEN), lambda i: (0, 0)),
        pl.BlockSpec((N_HIDDEN, HIDDEN, HIDDEN), lambda i: (0, 0, 0)),
        pl.BlockSpec((N_HIDDEN, 1, HIDDEN), lambda i: (0, 0, 0)),
        pl.BlockSpec((HIDDEN, HEAD_WIDTH), lambda i: (0, 0)),
        pl.BlockSpec((1, HEAD_WIDTH), lambda i: (0, 0)),
        pl.BlockSpec((SLAB, SLAB), lambda i: (0, 0)),
    ]
    out_specs = pl.BlockSpec((tb, SLAB), lambda i: (i, 0))

    weight_bytes = 4 * (SLAB * HIDDEN + HIDDEN + N_HIDDEN * HIDDEN * (HIDDEN + 1)
                        + HIDDEN * HEAD_WIDTH + HEAD_WIDTH + SLAB * SLAB)
    flops = bsz_pad * (2 * SLAB * HIDDEN + 2 * N_HIDDEN * HIDDEN * HIDDEN
                       + 2 * HIDDEN * HEAD_WIDTH + 2 * 2 * SLAB * SLAB)
    cost = pl.CostEstimate(flops=flops,
                           transcendentals=3 * bsz_pad * SLAB,
                           bytes_accessed=weight_bytes + 2 * 4 * bsz_pad * SLAB)

    out = pl.pallas_call(
        regretnet_kernel,
        out_shape=jax.ShapeDtypeStruct((bsz_pad, SLAB), jnp.float32),
        grid_spec=pltpu.PrefetchScalarGridSpec(
            num_scalar_prefetch=0,
            grid=grid,
            in_specs=in_specs,
            out_specs=out_specs,
        ),
        compiler_params=pltpu.CompilerParams(
            dimension_semantics=("parallel",)),
        cost_estimate=cost,
    )(x, w0p, b0, wh, bh, w_head, b_head, psum)

    out = out[:bsz].reshape(bsz, A1, BLOCK)
    allocs = out[:, :N_AGENTS, :N_ITEMS]
    payments = out[:, :N_AGENTS, PAY_LANE]
    return allocs, payments


# ---------------------- deterministic parameter init -------------------------
def _xavier(key, fan_in, fan_out):
    limit = np.sqrt(6.0 / (fan_in + fan_out))
    return jax.random.uniform(key, (fan_in, fan_out), jnp.float32, -limit, limit)


def init_params(key):
    ks = jax.random.split(key, 16)
    w0 = _xavier(ks[0], INPUT_SIZE, HIDDEN)
    b0 = jax.random.uniform(ks[1], (1, HIDDEN), jnp.float32, -0.05, 0.05)
    wh = jnp.stack([_xavier(ks[2 + l], HIDDEN, HIDDEN) for l in range(N_HIDDEN)])
    bh = jax.random.uniform(ks[6], (N_HIDDEN, 1, HIDDEN), jnp.float32, -0.05, 0.05)
    wa = _xavier(ks[7], HIDDEN, 2 * ALLOC_SIZE)
    ba = jax.random.uniform(ks[8], (1, 2 * ALLOC_SIZE), jnp.float32, -0.05, 0.05)
    wp = _xavier(ks[9], HIDDEN, PAY_SIZE)
    bp = jax.random.uniform(ks[10], (1, PAY_SIZE), jnp.float32, -0.05, 0.05)
    return w0, b0, wh, bh, wa, ba, wp, bp


# --------------------------- pure-JAX reference -------------------------------
def reference_forward(reports, w0, b0, wh, bh, wa, ba, wp, bp):
    bsz = reports.shape[0]
    x = reports.reshape(bsz, INPUT_SIZE)
    h = _act(x @ w0 + b0)
    for l in range(N_HIDDEN):
        h = _act(h @ wh[l] + bh[l])
    scores = h @ wa + ba
    first = jax.nn.softmax(scores[:, :ALLOC_SIZE].reshape(bsz, A1, I1), axis=1)
    second = jax.nn.softmax(scores[:, ALLOC_SIZE:].reshape(bsz, A1, I1), axis=2)
    allocs = jnp.minimum(first, second)
    frac = jax.nn.sigmoid(h @ wp + bp)
    payments = frac * jnp.sum(allocs[:, :-1, :-1] * reports, axis=2)
    return allocs[:, :-1, :-1], payments


# --------------------------------- main ---------------------------------------
if __name__ == "__main__":
    key = jax.random.PRNGKey(0)
    pkey, rkey = jax.random.split(key)
    w0, b0, wh, bh, wa, ba, wp, bp = init_params(pkey)

    # one-time layout plumbing
    w0p = pack_trunk_input_weight(w0)
    w_head, b_head = pack_head(wa, ba, wp, bp)
    psum = make_block_sum()

    # batch of auctions: 2 parallel grid steps of TB=256 (lets v7x shard across TCs)
    B = 512
    reports = jax.random.uniform(rkey, (B, N_AGENTS, N_ITEMS), jnp.float32)

    allocs, payments = regretnet_forward(reports, w0p, b0, wh, bh,
                                         w_head, b_head, psum)
    jax.block_until_ready((allocs, payments))

    ref_allocs, ref_payments = reference_forward(reports, w0, b0, wh, bh,
                                                 wa, ba, wp, bp)
    assert allocs.shape == (B, N_AGENTS, N_ITEMS)
    assert payments.shape == (B, N_AGENTS)
    np.testing.assert_allclose(np.asarray(allocs), np.asarray(ref_allocs),
                               rtol=1e-4, atol=1e-5)
    np.testing.assert_allclose(np.asarray(payments), np.asarray(ref_payments),
                               rtol=1e-4, atol=1e-5)
    print("KERNEL_OK")
</pallas_src>

<mosaic_0001>
module attributes {stable_mosaic.version = 11 : i64} {
  func.func @regretnet_kernel(%arg0: i32, %arg1: memref<256x128xf32, #tpu.memory_space<vmem>>, %arg2: memref<128x128xf32, #tpu.memory_space<vmem>>, %arg3: memref<1x128xf32, #tpu.memory_space<vmem>>, %arg4: memref<2x128x128xf32, #tpu.memory_space<vmem>>, %arg5: memref<2x1x128xf32, #tpu.memory_space<vmem>>, %arg6: memref<128x256xf32, #tpu.memory_space<vmem>>, %arg7: memref<1x256xf32, #tpu.memory_space<vmem>>, %arg8: memref<128x128xf32, #tpu.memory_space<vmem>>, %arg9: memref<256x128xf32, #tpu.memory_space<vmem>>) attributes {dimension_semantics = [#tpu.dimension_semantics<parallel>], iteration_bounds = array<i64: 2>, scalar_prefetch = 0 : i64, scratch_operands = 0 : i64, tpu.core_type = #tpu.core_type<tc>, window_params = [{transform_indices = @transform_0, window_bounds = array<i64: 256, 128>}, {pipeline_mode = #tpu.pipeline_mode<synchronous>, transform_indices = @transform_1, window_bounds = array<i64: 128, 128>}, {pipeline_mode = #tpu.pipeline_mode<synchronous>, transform_indices = @transform_2, window_bounds = array<i64: 1, 128>}, {pipeline_mode = #tpu.pipeline_mode<synchronous>, transform_indices = @transform_3, window_bounds = array<i64: 2, 128, 128>}, {pipeline_mode = #tpu.pipeline_mode<synchronous>, transform_indices = @transform_4, window_bounds = array<i64: 2, 1, 128>}, {pipeline_mode = #tpu.pipeline_mode<synchronous>, transform_indices = @transform_5, window_bounds = array<i64: 128, 256>}, {pipeline_mode = #tpu.pipeline_mode<synchronous>, transform_indices = @transform_6, window_bounds = array<i64: 1, 256>}, {pipeline_mode = #tpu.pipeline_mode<synchronous>, transform_indices = @transform_7, window_bounds = array<i64: 128, 128>}, {transform_indices = @transform_8, window_bounds = array<i64: 256, 128>}]} {
    %c0 = arith.constant 0 : index
    %c0_0 = arith.constant 0 : index
    %0 = vector.load %arg1[%c0, %c0_0] : memref<256x128xf32, #tpu.memory_space<vmem>>, vector<256x128xf32>
    %c0_1 = arith.constant 0 : index
    %c0_2 = arith.constant 0 : index
    %1 = vector.load %arg2[%c0_1, %c0_2] : memref<128x128xf32, #tpu.memory_space<vmem>>, vector<128x128xf32>
    %cst = arith.constant dense<0.000000e+00> : vector<256x128xf32>
    %2 = tpu.matmul %0, %1, %cst {dimension_numbers = #tpu.dot_dimension_numbers<[1], [0], [0], [1], [0, 0, 1, 1], [], []>} : vector<256x128xf32>, vector<128x128xf32>, vector<256x128xf32> -> vector<256x128xf32>
    %c0_3 = arith.constant 0 : index
    %c0_4 = arith.constant 0 : index
    %3 = vector.load %arg3[%c0_3, %c0_4] : memref<1x128xf32, #tpu.memory_space<vmem>>, vector<1x128xf32>
    %4 = vector.broadcast %3 : vector<1x128xf32> to vector<256x128xf32>
    %5 = arith.addf %2, %4 : vector<256x128xf32>
    %cst_5 = arith.constant 0.000000e+00 : f32
    %6 = vector.broadcast %cst_5 : f32 to vector<256x128xf32>
    %7 = arith.maximumf %5, %6 : vector<256x128xf32>
    %c0_6 = arith.constant 0 : index
    %c0_7 = arith.constant 0 : index
    %c0_8 = arith.constant 0 : index
    %8 = vector.load %arg4[%c0_6, %c0_7, %c0_8] : memref<2x128x128xf32, #tpu.memory_space<vmem>>, vector<1x128x128xf32>
    %9 = vector.shape_cast %8 : vector<1x128x128xf32> to vector<128x128xf32>
    %cst_9 = arith.constant dense<0.000000e+00> : vector<256x128xf32>
    %10 = tpu.matmul %7, %9, %cst_9 {dimension_numbers = #tpu.dot_dimension_numbers<[1], [0], [0], [1], [0, 0, 1, 1], [], []>} : vector<256x128xf32>, vector<128x128xf32>, vector<256x128xf32> -> vector<256x128xf32>
    %c0_10 = arith.constant 0 : index
    %c0_11 = arith.constant 0 : index
    %c0_12 = arith.constant 0 : index
    %11 = vector.load %arg5[%c0_10, %c0_11, %c0_12] : memref<2x1x128xf32, #tpu.memory_space<vmem>>, vector<1x1x128xf32>
    %12 = vector.shape_cast %11 : vector<1x1x128xf32> to vector<1x128xf32>
    %13 = vector.broadcast %12 : vector<1x128xf32> to vector<256x128xf32>
    %14 = arith.addf %10, %13 : vector<256x128xf32>
    %cst_13 = arith.constant 0.000000e+00 : f32
    %15 = vector.broadcast %cst_13 : f32 to vector<256x128xf32>
    %16 = arith.maximumf %14, %15 : vector<256x128xf32>
    %c1 = arith.constant 1 : index
    %c0_14 = arith.constant 0 : index
    %c0_15 = arith.constant 0 : index
    %17 = vector.load %arg4[%c1, %c0_14, %c0_15] : memref<2x128x128xf32, #tpu.memory_space<vmem>>, vector<1x128x128xf32>
    %18 = vector.shape_cast %17 : vector<1x128x128xf32> to vector<128x128xf32>
    %cst_16 = arith.constant dense<0.000000e+00> : vector<256x128xf32>
    %19 = tpu.matmul %16, %18, %cst_16 {dimension_numbers = #tpu.dot_dimension_numbers<[1], [0], [0], [1], [0, 0, 1, 1], [], []>} : vector<256x128xf32>, vector<128x128xf32>, vector<256x128xf32> -> vector<256x128xf32>
    %c1_17 = arith.constant 1 : index
    %c0_18 = arith.constant 0 : index
    %c0_19 = arith.constant 0 : index
    %20 = vector.load %arg5[%c1_17, %c0_18, %c0_19] : memref<2x1x128xf32, #tpu.memory_space<vmem>>, vector<1x1x128xf32>
    %21 = vector.shape_cast %20 : vector<1x1x128xf32> to vector<1x128xf32>
    %22 = vector.broadcast %21 : vector<1x128xf32> to vector<256x128xf32>
    %23 = arith.addf %19, %22 : vector<256x128xf32>
    %cst_20 = arith.constant 0.000000e+00 : f32
    %24 = vector.broadcast %cst_20 : f32 to vector<256x128xf32>
    %25 = arith.maximumf %23, %24 : vector<256x128xf32>
    %c0_21 = arith.constant 0 : index
    %c0_22 = arith.constant 0 : index
    %26 = vector.load %arg6[%c0_21, %c0_22] : memref<128x256xf32, #tpu.memory_space<vmem>>, vector<128x256xf32>
    %cst_23 = arith.constant dense<0.000000e+00> : vector<256x256xf32>
    %27 = tpu.matmul %25, %26, %cst_23 {dimension_numbers = #tpu.dot_dimension_numbers<[1], [0], [0], [1], [0, 0, 1, 1], [], []>} : vector<256x128xf32>, vector<128x256xf32>, vector<256x256xf32> -> vector<256x256xf32>
    %c0_24 = arith.constant 0 : index
    %c0_25 = arith.constant 0 : index
    %28 = vector.load %arg7[%c0_24, %c0_25] : memref<1x256xf32, #tpu.memory_space<vmem>>, vector<1x256xf32>
    %29 = vector.broadcast %28 : vector<1x256xf32> to vector<256x256xf32>
    %30 = arith.addf %27, %29 : vector<256x256xf32>
    %31 = vector.extract_strided_slice %30 {offsets = [0, 0], sizes = [256, 128], strides = [1, 1]} : vector<256x256xf32> to vector<256x128xf32>
    %32 = vector.extract_strided_slice %30 {offsets = [0, 128], sizes = [256, 128], strides = [1, 1]} : vector<256x256xf32> to vector<256x128xf32>
    %c64_i32 = arith.constant 64 : i32
    %33 = tpu.dynamic_rotate %31 by %c64_i32 dim 1 : vector<256x128xf32>, i32 -> vector<256x128xf32>
    %34 = arith.maximumf %31, %33 : vector<256x128xf32>
    %c32_i32 = arith.constant 32 : i32
    %35 = tpu.dynamic_rotate %34 by %c32_i32 dim 1 : vector<256x128xf32>, i32 -> vector<256x128xf32>
    %36 = arith.maximumf %34, %35 : vector<256x128xf32>
    %37 = arith.subf %31, %36 : vector<256x128xf32>
    %38 = math.exp %37 : vector<256x128xf32>
    %c64_i32_26 = arith.constant 64 : i32
    %39 = tpu.dynamic_rotate %38 by %c64_i32_26 dim 1 : vector<256x128xf32>, i32 -> vector<256x128xf32>
    %40 = arith.addf %38, %39 : vector<256x128xf32>
    %c32_i32_27 = arith.constant 32 : i32
    %41 = tpu.dynamic_rotate %40 by %c32_i32_27 dim 1 : vector<256x128xf32>, i32 -> vector<256x128xf32>
    %42 = arith.addf %40, %41 : vector<256x128xf32>
    %43 = tpu.reciprocal %42 : vector<256x128xf32> -> vector<256x128xf32>
    %44 = arith.mulf %38, %43 : vector<256x128xf32>
    %cst_28 = arith.constant dense<0xFF800000> : vector<256xf32>
    %45 = vector.multi_reduction <maximumf>, %32, %cst_28 [1] : vector<256x128xf32> to vector<256xf32>
    %46 = vector.shape_cast %45 : vector<256xf32> to vector<256x1xf32>
    %47 = vector.broadcast %46 : vector<256x1xf32> to vector<256x128xf32>
    %48 = arith.subf %32, %47 : vector<256x128xf32>
    %49 = math.exp %48 : vector<256x128xf32>
    %c0_29 = arith.constant 0 : index
    %c0_30 = arith.constant 0 : index
    %50 = vector.load %arg8[%c0_29, %c0_30] : memref<128x128xf32, #tpu.memory_space<vmem>>, vector<128x128xf32>
    %cst_31 = arith.constant dense<0.000000e+00> : vector<256x128xf32>
    %51 = tpu.matmul %49, %50, %cst_31 {dimension_numbers = #tpu.dot_dimension_numbers<[1], [0], [0], [1], [0, 0, 1, 1], [], []>} : vector<256x128xf32>, vector<128x128xf32>, vector<256x128xf32> -> vector<256x128xf32>
    %cst_32 = arith.constant 1.000000e-30 : f32
    %52 = vector.broadcast %cst_32 : f32 to vector<256x128xf32>
    %53 = arith.maximumf %51, %52 : vector<256x128xf32>
    %54 = tpu.reciprocal %53 : vector<256x128xf32> -> vector<256x128xf32>
    %55 = arith.mulf %49, %54 : vector<256x128xf32>
    %56 = arith.minimumf %44, %55 : vector<256x128xf32>
    %57 = arith.mulf %56, %0 : vector<256x128xf32>
    %c0_33 = arith.constant 0 : index
    %c0_34 = arith.constant 0 : index
    %58 = vector.load %arg8[%c0_33, %c0_34] : memref<128x128xf32, #tpu.memory_space<vmem>>, vector<128x128xf32>
    %cst_35 = arith.constant dense<0.000000e+00> : vector<256x128xf32>
    %59 = tpu.matmul %57, %58, %cst_35 {dimension_numbers = #tpu.dot_dimension_numbers<[1], [0], [0], [1], [0, 0, 1, 1], [], []>} : vector<256x128xf32>, vector<128x128xf32>, vector<256x128xf32> -> vector<256x128xf32>
    %60 = arith.negf %31 : vector<256x128xf32>
    %61 = math.exp %60 : vector<256x128xf32>
    %cst_36 = arith.constant 1.000000e+00 : f32
    %62 = vector.broadcast %cst_36 : f32 to vector<256x128xf32>
    %63 = arith.addf %62, %61 : vector<256x128xf32>
    %64 = arith.divf %62, %63 : vector<256x128xf32>
    %65 = arith.mulf %64, %59 : vector<256x128xf32>
    %66 = tpu.iota {dimensions = array<i32: 1>} : vector<256x128xi32>
    %c32_i32_37 = arith.constant 32 : i32
    %c0_i32 = arith.constant 0 : i32
    %67 = arith.cmpi eq, %c32_i32_37, %c0_i32 : i32
    %c1_i32 = arith.constant 1 : i32
    %68 = arith.select %67, %c1_i32, %c32_i32_37 : i32
    %69 = vector.broadcast %68 : i32 to vector<256x128xi32>
    %70 = arith.remsi %66, %69 : vector<256x128xi32>
    %c0_i32_38 = arith.constant 0 : i32
    %71 = vector.broadcast %c0_i32_38 : i32 to vector<256x128xi32>
    %72 = arith.cmpi ne, %70, %71 : vector<256x128xi32>
    %c0_i32_39 = arith.constant 0 : i32
    %73 = vector.broadcast %c0_i32_39 : i32 to vector<256x128xi32>
    %74 = arith.cmpi slt, %70, %73 : vector<256x128xi32>
    %c0_i32_40 = arith.constant 0 : i32
    %75 = arith.cmpi slt, %68, %c0_i32_40 : i32
    %76 = vector.broadcast %75 : i1 to vector<256x128xi1>
    %77 = vector.broadcast %76 : vector<256x128xi1> to vector<256x128xi1>
    %78 = arith.xori %74, %77 : vector<256x128xi1>
    %79 = arith.andi %78, %72 : vector<256x128xi1>
    %80 = vector.broadcast %68 : i32 to vector<256x128xi32>
    %81 = arith.addi %70, %80 : vector<256x128xi32>
    %82 = arith.select %79, %81, %70 : vector<256x128xi1>, vector<256x128xi32>
    %c8_i32 = arith.constant 8 : i32
    %83 = vector.broadcast %c8_i32 : i32 to vector<256x128xi32>
    %84 = arith.cmpi eq, %82, %83 : vector<256x128xi32>
    %85 = arith.select %84, %65, %56 : vector<256x128xi1>, vector<256x128xf32>
    %c0_41 = arith.constant 0 : index
    %c0_42 = arith.constant 0 : index
    %86 = vector.load %arg9[%c0_41, %c0_42] : memref<256x128xf32, #tpu.memory_space<vmem>>, vector<256x128xf32>
    tpu.vector_store %arg9[%c0_41, %c0_42], %85 {strides = array<i32>} : memref<256x128xf32, #tpu.memory_space<vmem>>, vector<256x128xf32>,
    return
  }
  func.func @transform_0(%arg0: i32) -> (i32, i32) {
    %c0_i32 = arith.constant 0 : i32
    %c0_i32_0 = arith.constant 0 : i32
    return %arg0, %c0_i32 : i32, i32
  }
  func.func @transform_1(%arg0: i32) -> (i32, i32) {
    %c0_i32 = arith.constant 0 : i32
    %c0_i32_0 = arith.constant 0 : i32
    %c0_i32_1 = arith.constant 0 : i32
    return %c0_i32, %c0_i32_0 : i32, i32
  }
  func.func @transform_2(%arg0: i32) -> (i32, i32) {
    %c0_i32 = arith.constant 0 : i32
    %c0_i32_0 = arith.constant 0 : i32
    %c0_i32_1 = arith.constant 0 : i32
    return %c0_i32, %c0_i32_0 : i32, i32
  }
  func.func @transform_3(%arg0: i32) -> (i32, i32, i32) {
    %c0_i32 = arith.constant 0 : i32
    %c0_i32_0 = arith.constant 0 : i32
    %c0_i32_1 = arith.constant 0 : i32
    %c0_i32_2 = arith.constant 0 : i32
    return %c0_i32, %c0_i32_0, %c0_i32_1 : i32, i32, i32
  }
  func.func @transform_4(%arg0: i32) -> (i32, i32, i32) {
    %c0_i32 = arith.constant 0 : i32
    %c0_i32_0 = arith.constant 0 : i32
    %c0_i32_1 = arith.constant 0 : i32
    %c0_i32_2 = arith.constant 0 : i32
    return %c0_i32, %c0_i32_0, %c0_i32_1 : i32, i32, i32
  }
  func.func @transform_5(%arg0: i32) -> (i32, i32) {
    %c0_i32 = arith.constant 0 : i32
    %c0_i32_0 = arith.constant 0 : i32
    %c0_i32_1 = arith.constant 0 : i32
    return %c0_i32, %c0_i32_0 : i32, i32
  }
  func.func @transform_6(%arg0: i32) -> (i32, i32) {
    %c0_i32 = arith.constant 0 : i32
    %c0_i32_0 = arith.constant 0 : i32
    %c0_i32_1 = arith.constant 0 : i32
    return %c0_i32, %c0_i32_0 : i32, i32
  }
  func.func @transform_7(%arg0: i32) -> (i32, i32) {
    %c0_i32 = arith.constant 0 : i32
    %c0_i32_0 = arith.constant 0 : i32
    %c0_i32_1 = arith.constant 0 : i32
    return %c0_i32, %c0_i32_0 : i32, i32
  }
  func.func @transform_8(%arg0: i32) -> (i32, i32) {
    %c0_i32 = arith.constant 0 : i32
    %c0_i32_0 = arith.constant 0 : i32
    return %arg0, %c0_i32 : i32, i32
  }
}

</mosaic_0001>

<bundles_post_ra>
// kernel: regretnet_forward.1
= control target key start
LH: loop header
LB: loop body
LE: loop exit
PB: predicated region body
PF: predicated region fallthrough
CT: control target
= control target key end

     0   :  { %s4391_s27 = smov 0   ;;  %s6474_s0 = inlined_call_operand.vmem [shape: f32[512,128], index: 0, kind: input, shape index: {}]   ;;  %s6475_s1 = inlined_call_operand.vmem [shape: f32[128,128], index: 1, kind: input, shape index: {}]   ;;  %s6476_s2 = inlined_call_operand.vmem [shape: f32[1,128], index: 2, kind: input, shape index: {}]   ;;  %s6477_s3 = inlined_call_operand.vmem [shape: f32[2,128,128], index: 3, kind: input, shape index: {}]   ;;  %s6478_s4 = inlined_call_operand.vmem [shape: f32[2,1,128], index: 4, kind: input, shape index: {}]   ;;  %s6479_s5 = inlined_call_operand.vmem [shape: f32[128,256], index: 5, kind: input, shape index: {}]   ;;  %s6480_s6 = inlined_call_operand.vmem [shape: f32[1,256], index: 6, kind: input, shape index: {}]   ;;  %s6481_s7 = inlined_call_operand.vmem [shape: f32[128,128], index: 7, kind: input, shape index: {}]   ;;  %s6482_s8 = inlined_call_operand.vmem [shape: f32[512,128], index: 8, kind: output, shape index: {}]  }
   0x1 LB: > { %s3173_s28 = sadd.s32 4294967295, %s4341_s27   ;;  %p3177_p0 = scmp.ge.s32.totalorder %s4341_s27, 1  ;;  %s4341_s27 = sphi %s4391_s27, %s18_s27  }
   0x2   : > { %p263_p1 = scmp.lt.s32.totalorder %s4341_s27, 3 }
   0x4   : > { %p264_p2 = pnand %p3177_p0, %p263_p1 }
   0x6   : > { %267 = sbr.rel (%p264_p2) target bundleno = 2217 (0x8a9), region = 52 }
   0xb   : > { %v356_v0 = vld [vmem:[%s6475_s1 + $0x78] sm:$0xff]  ;;  %v355_v1 = vld [vmem:[%s6475_s1 + $0x70] sm:$0xff]  ;;  %s3178_s11 = sshll.u32 %s3173_s28, 5  ;;  %v354_v2 = vld [vmem:[%s6475_s1 + $0x68] sm:$0xff]  ;;  %s4344_s17 = smov 64  }
   0xc   : > { %3476 = vmatprep.subr.mxu0 %v356_v0  ;;  %p298_p3 = scmp.lt.s32.totalorder %s3178_s11, 63  ;;  %3876 = vmatprep.subr.mxu1 %v356_v0  ;;  %v353_v3 = vld [vmem:[%s6475_s1 + $0x60] sm:$0xff]  ;;  %v352_v4 = vld [vmem:[%s6475_s1 + $0x58] sm:$0xff]  ;;  %v351_v6 = vld [vmem:[%s6475_s1 + $0x50] sm:$0xff]  ;;  %s4345_s14 = smov 32  }
   0xd   : > { %3477 = vmatpush3.msra.mxu0 %v356_v0  ;;  %3892 = vmatpush3.msra.mxu1 %v356_v0  ;;  %v350_v7 = vld [vmem:[%s6475_s1 + $0x48] sm:$0xff]  ;;  %v349_v8 = vld [vmem:[%s6475_s1 + $0x40] sm:$0xff]  ;;  %v348_v9 = vld [vmem:[%s6475_s1 + $0x38] sm:$0xff] }
   0xe   : > { %3478 = vmatprep.subr.mxu0 %v355_v1  ;;  %s6816_s11 = smov (!%p298_p3, %s3178_s11), 63  ;;  %3877 = vmatprep.subr.mxu1 %v355_v1  ;;  %v347_v10 = vld [vmem:[%s6475_s1 + $0x30] sm:$0xff]  ;;  %v346_v11 = vld [vmem:[%s6475_s1 + $0x28] sm:$0xff]  ;;  %v345_v12 = vld [vmem:[%s6475_s1 + $0x20] sm:$0xff] }
   0xf   : > { %3479 = vmatpush3.msra.mxu0 %v355_v1  ;;  %3893 = vmatpush3.msra.mxu1 %v355_v1  ;;  %s3179_s16 = sshll.u32 %s6816_s11, 3  ;;  %v344_v13 = vld [vmem:[%s6475_s1 + $0x18] sm:$0xff]  ;;  %v343_v14 = vld [vmem:[%s6475_s1 + $0x10] sm:$0xff]  ;;  %v342_v15 = vld [vmem:[%s6475_s1 + $0x8] sm:$0xff] }
  0x10   : > { %3480 = vmatprep.subr.mxu0 %v354_v2  ;;  %3878 = vmatprep.subr.mxu1 %v354_v2  ;;  %s4422_s21 = scalar_lea.vmem %s6474_s0, %s3179_s16  ;;  %v341_v16 = vld [vmem:[%s6475_s1] sm:$0xff]  ;;  %v636_v21 = vld [vmem:[%s6477_s3 + $0x78] sm:$0xff]  ;;  %v635_v24 = vld [vmem:[%s6477_s3 + $0x70] sm:$0xff]  ;;  %s6311_s15 = scalar_lea.vmem %s6482_s8, %s3179_s16 }
  0x11   : > { %3481 = vmatpush3.msra.mxu0 %v354_v2  ;;  %3894 = vmatpush3.msra.mxu1 %v354_v2  ;;  %v309_v5 = vld [vmem:[%s4422_s21] sm:$0xff]  ;;  %v310_v17 = vld [vmem:[%s4422_s21 + $0x8] sm:$0xff]  ;;  %v311_v18 = vld [vmem:[%s4422_s21 + $0x10] sm:$0xff] }
  0x12   : > { %3482 = vmatprep.subr.mxu0 %v353_v3  ;;  %3879 = vmatprep.subr.mxu1 %v353_v3  ;;  %v325_v19 = vld [vmem:[%s4422_s21 + $0x80] sm:$0xff]  ;;  %v326_v20 = vld [vmem:[%s4422_s21 + $0x88] sm:$0xff]  ;;  %v327_v22 = vld [vmem:[%s4422_s21 + $0x90] sm:$0xff] }
  0x13   : > { %3483 = vmatpush3.msra.mxu0 %v353_v3  ;;  %3508 = vmatprep.mubr.f32.mxu0 %v309_v5  ;;  %v312_v23 = vld [vmem:[%s4422_s21 + $0x18] sm:$0xff]  ;;  %v313_v25 = vld [vmem:[%s4422_s21 + $0x20] sm:$0xff]  ;;  %v634_v27 = vld [vmem:[%s6477_s3 + $0x68] sm:$0xff] }
  0x14   : > { %3484 = vmatprep.subr.mxu0 %v352_v4  ;;  %3895 = vmatpush3.msra.mxu1 %v353_v3  ;;  %v328_v26 = vld [vmem:[%s4422_s21 + $0x98] sm:$0xff]  ;;  %v329_v28 = vld [vmem:[%s4422_s21 + $0xa0] sm:$0xff]  ;;  %v314_v29 = vld [vmem:[%s4422_s21 + $0x28] sm:$0xff] }
  0x15   : > { %3485 = vmatpush3.msra.mxu0 %v352_v4  ;;  %3880 = vmatprep.subr.mxu1 %v352_v4  ;;  %v633_v30 = vld [vmem:[%s6477_s3 + $0x60] sm:$0xff]  ;;  %v315_v31 = vld [vmem:[%s4422_s21 + $0x30] sm:$0xff]  ;;  %v330_v32 = vld [vmem:[%s4422_s21 + $0xa8] sm:$0xff] }
  0x16   : > { %3486 = vmatprep.subr.mxu0 %v351_v6  ;;  %3896 = vmatpush3.msra.mxu1 %v352_v4  ;;  %v632_v33 = vld [vmem:[%s6477_s3 + $0x58] sm:$0xff]  ;;  %v331_v34 = vld [vmem:[%s4422_s21 + $0xb0] sm:$0xff]  ;;  %v317_v37 = vld [vmem:[%s4422_s21 + $0x40] sm:$0xff] }
  0x17   : > { %3487 = vmatpush3.msra.mxu0 %v351_v6  ;;  %3881 = vmatprep.subr.mxu1 %v351_v6  ;;  %v316_v35 = vld [vmem:[%s4422_s21 + $0x38] sm:$0xff]  ;;  %v631_v36 = vld [vmem:[%s6477_s3 + $0x50] sm:$0xff]  ;;  %v630_v39 = vld [vmem:[%s6477_s3 + $0x48] sm:$0xff] }
  0x18   : > { %3488 = vmatprep.subr.mxu0 %v350_v7  ;;  %3897 = vmatpush3.msra.mxu1 %v351_v6  ;;  %v332_v38 = vld [vmem:[%s4422_s21 + $0xb8] sm:$0xff]  ;;  %v333_v40 = vld [vmem:[%s4422_s21 + $0xc0] sm:$0xff]  ;;  %v318_v41 = vld [vmem:[%s4422_s21 + $0x48] sm:$0xff] }
  0x19   : > { %3489 = vmatpush3.msra.mxu0 %v350_v7  ;;  %3882 = vmatprep.subr.mxu1 %v350_v7  ;;  %v629_v42 = vld [vmem:[%s6477_s3 + $0x40] sm:$0xff]  ;;  %v319_v43 = vld [vmem:[%s4422_s21 + $0x50] sm:$0xff]  ;;  %v334_v44 = vld [vmem:[%s4422_s21 + $0xc8] sm:$0xff] }
  0x1a   : > { %3490 = vmatprep.subr.mxu0 %v349_v8  ;;  %3898 = vmatpush3.msra.mxu1 %v350_v7  ;;  %v628_v45 = vld [vmem:[%s6477_s3 + $0x38] sm:$0xff]  ;;  %v335_v46 = vld [vmem:[%s4422_s21 + $0xd0] sm:$0xff]  ;;  %v321_v49 = vld [vmem:[%s4422_s21 + $0x60] sm:$0xff] }
  0x1b   : > { %3491 = vmatpush3.msra.mxu0 %v349_v8  ;;  %3883 = vmatprep.subr.mxu1 %v349_v8  ;;  %v320_v47 = vld [vmem:[%s4422_s21 + $0x58] sm:$0xff]  ;;  %v627_v48 = vld [vmem:[%s6477_s3 + $0x30] sm:$0xff]  ;;  %v626_v51 = vld [vmem:[%s6477_s3 + $0x28] sm:$0xff] }
  0x1c   : > { %3492 = vmatprep.subr.mxu0 %v348_v9  ;;  %3899 = vmatpush3.msra.mxu1 %v349_v8  ;;  %v336_v50 = vld [vmem:[%s4422_s21 + $0xd8] sm:$0xff]  ;;  %v337_v52 = vld [vmem:[%s4422_s21 + $0xe0] sm:$0xff]  ;;  %v322_v53 = vld [vmem:[%s4422_s21 + $0x68] sm:$0xff] }
  0x1d   : > { %3493 = vmatpush3.msra.mxu0 %v348_v9  ;;  %3884 = vmatprep.subr.mxu1 %v348_v9  ;;  %v625_v54 = vld [vmem:[%s6477_s3 + $0x20] sm:$0xff]  ;;  %v323_v55 = vld [vmem:[%s4422_s21 + $0x70] sm:$0xff]  ;;  %v338_v56 = vld [vmem:[%s4422_s21 + $0xe8] sm:$0xff] }
  0x1e   : > { %3494 = vmatprep.subr.mxu0 %v347_v10  ;;  %3900 = vmatpush3.msra.mxu1 %v348_v9  ;;  %v624_v57 = vld [vmem:[%s6477_s3 + $0x18] sm:$0xff]  ;;  %v339_v58 = vld [vmem:[%s4422_s21 + $0xf0] sm:$0xff]  ;;  %v622_v62 = vld [vmem:[%s6477_s3 + $0x8] sm:$0xff] }
  0x1f   : > { %3495 = vmatpush3.msra.mxu0 %v347_v10  ;;  %3885 = vmatprep.subr.mxu1 %v347_v10  ;;  %v324_v59 = vld [vmem:[%s4422_s21 + $0x78] sm:$0xff]  ;;  %v623_v61 = vld [vmem:[%s6477_s3 + $0x10] sm:$0xff]  ;;  %v621_v63 = vld [vmem:[%s6477_s3] sm:$0xff] }
  0x20   : > { %3496 = vmatprep.subr.mxu0 %v346_v11  ;;  %3901 = vmatpush3.msra.mxu1 %v347_v10  ;;  %v340_v60 = vld [vmem:[%s4422_s21 + $0xf8] sm:$0xff]  ;;  %v3198_v1 = vld [vmem:[%s6477_s3 + $0xf0] sm:$0xff]  ;;  %v3197_v2 = vld [vmem:[%s6477_s3 + $0xe8] sm:$0xff] }
  0x21   : > { %3497 = vmatpush3.msra.mxu0 %v346_v11  ;;  %3886 = vmatprep.subr.mxu1 %v346_v11  ;;  %v3199_v0 = vld [vmem:[%s6477_s3 + $0xf8] sm:$0xff]  ;;  %v3196_v3 = vld [vmem:[%s6477_s3 + $0xe0] sm:$0xff]  ;;  %v3194_v5 = vld [vmem:[%s6477_s3 + $0xd0] sm:$0xff] }
  0x22   : > { %3498 = vmatprep.subr.mxu0 %v345_v12  ;;  %3902 = vmatpush3.msra.mxu1 %v346_v11  ;;  %v3195_v4 = vld [vmem:[%s6477_s3 + $0xd8] sm:$0xff]  ;;  %v3193_v6 = vld [vmem:[%s6477_s3 + $0xc8] sm:$0xff]  ;;  %v3192_v7 = vld [vmem:[%s6477_s3 + $0xc0] sm:$0xff] }
  0x23   : > { %3499 = vmatpush3.msra.mxu0 %v345_v12  ;;  %3887 = vmatprep.subr.mxu1 %v345_v12  ;;  %v3191_v8 = vld [vmem:[%s6477_s3 + $0xb8] sm:$0xff]  ;;  %v3190_v9 = vld [vmem:[%s6477_s3 + $0xb0] sm:$0xff]  ;;  %v3189_v10 = vld [vmem:[%s6477_s3 + $0xa8] sm:$0xff] }
  0x24   : > { %3500 = vmatprep.subr.mxu0 %v344_v13  ;;  %3903 = vmatpush3.msra.mxu1 %v345_v12  ;;  %v3188_v11 = vld [vmem:[%s6477_s3 + $0xa0] sm:$0xff]  ;;  %v3187_v12 = vld [vmem:[%s6477_s3 + $0x98] sm:$0xff] }
  0x25   : > { %3501 = vmatpush3.msra.mxu0 %v344_v13  ;;  %3888 = vmatprep.subr.mxu1 %v344_v13 }
  0x26   : > { %3502 = vmatprep.subr.mxu0 %v343_v14  ;;  %3904 = vmatpush3.msra.mxu1 %v344_v13  ;;  %v4579_v13 = vld [vmem:[%s6476_s2] ss:$0 sm:$0xff] }
  0x27   : > { %3503 = vmatpush3.msra.mxu0 %v343_v14  ;;  %3889 = vmatprep.subr.mxu1 %v343_v14 }
  0x28   : > { %3504 = vmatprep.subr.mxu0 %v342_v15  ;;  %3905 = vmatpush3.msra.mxu1 %v343_v14 }
  0x29   : > { %3505 = vmatpush3.msra.mxu0 %v342_v15  ;;  %3890 = vmatprep.subr.mxu1 %v342_v15 }
  0x2a   : > { %3506 = vmatprep.subr.mxu0 %v341_v16  ;;  %3906 = vmatpush3.msra.mxu1 %v342_v15 }
  0x2b   : > { %3507 = vmatpush3.msra.mxu0 %v341_v16  ;;  %3891 = vmatprep.subr.mxu1 %v341_v16 }
  0x2c   : > { %3509 = vmatmul.mubr.f32.vlgmr.msra.gmra.mxu0 %v310_v17  ;;  %3907 = vmatpush3.msra.mxu1 %v341_v16 }
  0x2d   : > { %3511 = vmatprep.mubr.f32.mxu0 %v311_v18  ;;  %3532 = vmatprep.mubr.f32.mxu1 %v325_v19 }
  0x2e   : > { %3533 = vmatmul.mubr.f32.vlgmr.msra.gmra.mxu1 %v326_v20  ;;  %3556 = vmatprep.subr.mxu1 %v636_v21 }
  0x2f   : > { %3535 = vmatprep.mubr.f32.mxu1 %v327_v22  ;;  %3557 = vmatpush3.msra.mxu1 %v636_v21 }
  0x30   : > { %3512 = vmatmul.mubr.f32.gmra.mxu0 %v312_v23  ;;  %3558 = vmatprep.subr.mxu1 %v635_v24 }
  0x31   : > { %3514 = vmatprep.mubr.f32.mxu0 %v313_v25  ;;  %3559 = vmatpush3.msra.mxu1 %v635_v24 }
  0x32   : > { %3536 = vmatmul.mubr.f32.gmra.mxu1 %v328_v26  ;;  %3560 = vmatprep.subr.mxu1 %v634_v27 }
  0x33   : > { %3538 = vmatprep.mubr.f32.mxu1 %v329_v28  ;;  %3561 = vmatpush3.msra.mxu1 %v634_v27 }
  0x34   : > { %3515 = vmatmul.mubr.f32.gmra.mxu0 %v314_v29  ;;  %3562 = vmatprep.subr.mxu1 %v633_v30 }
  0x35   : > { %3517 = vmatprep.mubr.f32.mxu0 %v315_v31  ;;  %3563 = vmatpush3.msra.mxu1 %v633_v30 }
  0x36   : > { %3539 = vmatmul.mubr.f32.gmra.mxu1 %v330_v32  ;;  %3564 = vmatprep.subr.mxu1 %v632_v33 }
  0x37   : > { %3541 = vmatprep.mubr.f32.mxu1 %v331_v34  ;;  %3565 = vmatpush3.msra.mxu1 %v632_v33 }
  0x38   : > { %3518 = vmatmul.mubr.f32.gmra.mxu0 %v316_v35  ;;  %3566 = vmatprep.subr.mxu1 %v631_v36 }
  0x39   : > { %3520 = vmatprep.mubr.f32.mxu0 %v317_v37  ;;  %3567 = vmatpush3.msra.mxu1 %v631_v36 }
  0x3a   : > { %3542 = vmatmul.mubr.f32.gmra.mxu1 %v332_v38  ;;  %3568 = vmatprep.subr.mxu1 %v630_v39 }
  0x3b   : > { %3544 = vmatprep.mubr.f32.mxu1 %v333_v40  ;;  %3569 = vmatpush3.msra.mxu1 %v630_v39 }
  0x3c   : > { %3521 = vmatmul.mubr.f32.gmra.mxu0 %v318_v41  ;;  %3570 = vmatprep.subr.mxu1 %v629_v42 }
  0x3d   : > { %3523 = vmatprep.mubr.f32.mxu0 %v319_v43  ;;  %3571 = vmatpush3.msra.mxu1 %v629_v42 }
  0x3e   : > { %3545 = vmatmul.mubr.f32.gmra.mxu1 %v334_v44  ;;  %3572 = vmatprep.subr.mxu1 %v628_v45 }
  0x3f   : > { %3547 = vmatprep.mubr.f32.mxu1 %v335_v46  ;;  %3573 = vmatpush3.msra.mxu1 %v628_v45 }
  0x40   : > { %3524 = vmatmul.mubr.f32.gmra.mxu0 %v320_v47  ;;  %3574 = vmatprep.subr.mxu1 %v627_v48 }
  0x41   : > { %3526 = vmatprep.mubr.f32.mxu0 %v321_v49  ;;  %3575 = vmatpush3.msra.mxu1 %v627_v48 }
  0x42   : > { %3548 = vmatmul.mubr.f32.gmra.mxu1 %v336_v50  ;;  %3576 = vmatprep.subr.mxu1 %v626_v51 }
  0x43   : > { %3550 = vmatprep.mubr.f32.mxu1 %v337_v52  ;;  %3577 = vmatpush3.msra.mxu1 %v626_v51 }
  0x44   : > { %3527 = vmatmul.mubr.f32.gmra.mxu0 %v322_v53  ;;  %3578 = vmatprep.subr.mxu1 %v625_v54 }
  0x45   : > { %3529 = vmatprep.mubr.f32.mxu0 %v323_v55  ;;  %3579 = vmatpush3.msra.mxu1 %v625_v54 }
  0x46   : > { %3551 = vmatmul.mubr.f32.gmra.mxu1 %v338_v56  ;;  %3580 = vmatprep.subr.mxu1 %v624_v57 }
  0x47   : > { %3553 = vmatprep.mubr.f32.mxu1 %v339_v58  ;;  %3581 = vmatpush3.msra.mxu1 %v624_v57 }
  0x48   : > { %3530 = vmatmul.mubr.f32.gmra.mxu0 %v324_v59  ;;  %3582 = vmatprep.subr.mxu1 %v623_v61 }
  0x49   : > { %3583 = vmatpush3.msra.mxu1 %v623_v61  ;;  %3636 = vmatprep.subr.mxu0 %v3199_v0 }
  0x4a   : > { %3554 = vmatmul.mubr.f32.gmra.mxu1 %v340_v60  ;;  %3584 = vmatprep.subr.mxu1 %v622_v62 }
  0x4b   : > { %3585 = vmatpush3.msra.mxu1 %v622_v62  ;;  %3637 = vmatpush3.msra.mxu0 %v3199_v0 }
  0x4c   : > { %3586 = vmatprep.subr.mxu1 %v621_v63  ;;  %3638 = vmatprep.subr.mxu0 %v3198_v1 }
  0x4d   : > { %3587 = vmatpush3.msra.mxu1 %v621_v63  ;;  %3639 = vmatpush3.msra.mxu0 %v3198_v1 }
  0x4e   : > { %3640 = vmatprep.subr.mxu0 %v3197_v2 }
  0x4f   : > { %3641 = vmatpush3.msra.mxu0 %v3197_v2 }
  0x50   : > { %3642 = vmatprep.subr.mxu0 %v3196_v3 }
  0x51   : > { %3643 = vmatpush3.msra.mxu0 %v3196_v3 }
  0x52   : > { %3644 = vmatprep.subr.mxu0 %v3195_v4 }
  0x53   : > { %3645 = vmatpush3.msra.mxu0 %v3195_v4 }
  0x54   : > { %3646 = vmatprep.subr.mxu0 %v3194_v5 }
  0x55   : > { %3647 = vmatpush3.msra.mxu0 %v3194_v5 }
  0x56   : > { %3648 = vmatprep.subr.mxu0 %v3193_v6 }
  0x57   : > { %3649 = vmatpush3.msra.mxu0 %v3193_v6 }
  0x58   : > { %3650 = vmatprep.subr.mxu0 %v3192_v7 }
  0x59   : > { %3651 = vmatpush3.msra.mxu0 %v3192_v7 }
  0x5a   : > { %3652 = vmatprep.subr.mxu0 %v3191_v8 }
  0x5b   : > { %3653 = vmatpush3.msra.mxu0 %v3191_v8 }
  0x5c   : > { %3654 = vmatprep.subr.mxu0 %v3190_v9 }
  0x5d   : > { %3655 = vmatpush3.msra.mxu0 %v3190_v9 }
  0x5e   : > { %3656 = vmatprep.subr.mxu0 %v3189_v10 }
  0x5f   : > { %3657 = vmatpush3.msra.mxu0 %v3189_v10 }
  0x60   : > { %3658 = vmatprep.subr.mxu0 %v3188_v11 }
  0x61   : > { %3659 = vmatpush3.msra.mxu0 %v3188_v11 }
  0x62   : > { %3660 = vmatprep.subr.mxu0 %v3187_v12 }
  0x63   : > { %3661 = vmatpush3.msra.mxu0 %v3187_v12 }
  0xec   : > { %v3510_v14 = vpop.f32.mrf.mxu0 }
  0xed   : > { %v436_v15 = vadd.f32 %v3510_v14, %v4579_v13 }
  0xee   : > { %v430_v16 = vpop.f32.mrf.mxu0  ;;  %v3534_v26 = vpop.f32.mrf.mxu1 }
  0xef   : > { %v431_v17 = vadd.f32 %v4579_v13, %v430_v16  ;;  %v590_v21 = vmax.f32 %v436_v15, 0.0  ;;  %v516_v6 = vadd.f32 %v3534_v26, %v4579_v13 }
  0xf0   : > { %v3513_v18 = vpop.f32.mrf.mxu0  ;;  %v510_v33 = vpop.f32.mrf.mxu1 }
  0xf1   : > { %v589_v19 = vmax.f32 %v431_v17, 0.0  ;;  %v446_v20 = vadd.f32 %v3513_v18, %v4579_v13  ;;  %v511_v1 = vadd.f32 %v4579_v13, %v510_v33  ;;  %v606_v11 = vmax.f32 %v516_v6, 0.0  ;;  %v1193_v6 = vld [vmem:[%s6479_s5 + $0x50] sm:$0xff] }
  0xf2   : > { %v440_v22 = vpop.f32.mrf.mxu0  ;;  %v3537_v37 = vpop.f32.mrf.mxu1 }
  0xf3   : > { %3588 = vmatprep.mubr.f32.mxu1 %v589_v19  ;;  %v441_v23 = vadd.f32 %v4579_v13, %v440_v22  ;;  %v592_v24 = vmax.f32 %v446_v20, 0.0  ;;  %v605_v9 = vmax.f32 %v511_v1, 0.0  ;;  %v526_v12 = vadd.f32 %v3537_v37, %v4579_v13  ;;  %v1198_v1 = vld [vmem:[%s6479_s5 + $0x78] sm:$0xff] }
  0xf4   : > { %3589 = vmatmul.mubr.f32.vlgmr.msra.gmra.mxu1 %v590_v21  ;;  %v3516_v25 = vpop.f32.mrf.mxu0  ;;  %v520_v44 = vpop.f32.mrf.mxu1 }
  0xf5   : > { %v591_v27 = vmax.f32 %v441_v23, 0.0  ;;  %v456_v28 = vadd.f32 %v3516_v25, %v4579_v13  ;;  %v521_v10 = vadd.f32 %v4579_v13, %v520_v44  ;;  %v608_v18 = vmax.f32 %v526_v12, 0.0  ;;  %v1187_v12 = vld [vmem:[%s6479_s5 + $0x20] sm:$0xff] }
  0xf6   : > { %v450_v29 = vpop.f32.mrf.mxu0  ;;  %v3540_v48 = vpop.f32.mrf.mxu1 }
  0xf7   : > { %3591 = vmatprep.mubr.f32.mxu1 %v591_v27  ;;  %v451_v30 = vadd.f32 %v4579_v13, %v450_v29  ;;  %v594_v31 = vmax.f32 %v456_v28, 0.0  ;;  %v607_v15 = vmax.f32 %v521_v10, 0.0  ;;  %v536_v19 = vadd.f32 %v3540_v48, %v4579_v13  ;;  %v3185_v48 = vld [vmem:[%s6477_s3 + $0x88] sm:$0xff]  ;;  %v1189_v10 = vld [vmem:[%s6479_s5 + $0x30] sm:$0xff] }
  0xf8   : > { %3592 = vmatmul.mubr.f32.gmra.mxu1 %v592_v24  ;;  %v3519_v32 = vpop.f32.mrf.mxu0  ;;  %v530_v55 = vpop.f32.mrf.mxu1 }
  0xf9   : > { %v593_v34 = vmax.f32 %v451_v30, 0.0  ;;  %v466_v35 = vadd.f32 %v3519_v32, %v4579_v13  ;;  %v531_v16 = vadd.f32 %v4579_v13, %v530_v55  ;;  %v610_v23 = vmax.f32 %v536_v19, 0.0  ;;  %v1208_v55 = vld [vmem:[%s6479_s5 + $0xc8] sm:$0xff] }
  0xfa   : > { %v460_v36 = vpop.f32.mrf.mxu0  ;;  %v3543_v59 = vpop.f32.mrf.mxu1 }
  0xfb   : > { %3594 = vmatprep.mubr.f32.mxu1 %v593_v34  ;;  %v461_v38 = vadd.f32 %v4579_v13, %v460_v36  ;;  %v596_v39 = vmax.f32 %v466_v35, 0.0  ;;  %v609_v20 = vmax.f32 %v531_v16, 0.0  ;;  %v546_v24 = vadd.f32 %v3543_v59, %v4579_v13  ;;  %v1204_v59 = vld [vmem:[%s6479_s5 + $0xa8] sm:$0xff]  ;;  %v4715_v16 = vld [vmem:[%s6478_s4] ss:$0 sm:$0xff] }
  0xfc   : > { %3595 = vmatmul.mubr.f32.gmra.mxu1 %v594_v31  ;;  %v3522_v40 = vpop.f32.mrf.mxu0  ;;  %v540_v3 = vpop.f32.mrf.mxu1 }
  0xfd   : > { %v595_v41 = vmax.f32 %v461_v38, 0.0  ;;  %v476_v42 = vadd.f32 %v3522_v40, %v4579_v13  ;;  %v541_v21 = vadd.f32 %v4579_v13, %v540_v3  ;;  %v612_v28 = vmax.f32 %v546_v24, 0.0  ;;  %v1196_v3 = vld [vmem:[%s6479_s5 + $0x68] sm:$0xff] }
  0xfe   : > { %v470_v43 = vpop.f32.mrf.mxu0  ;;  %v3546_v7 = vpop.f32.mrf.mxu1 }
  0xff   : > { %3597 = vmatprep.mubr.f32.mxu1 %v595_v41  ;;  %v471_v45 = vadd.f32 %v4579_v13, %v470_v43  ;;  %v598_v46 = vmax.f32 %v476_v42, 0.0  ;;  %v611_v26 = vmax.f32 %v541_v21, 0.0  ;;  %v556_v29 = vadd.f32 %v3546_v7, %v4579_v13  ;;  %v1192_v7 = vld [vmem:[%s6479_s5 + $0x48] sm:$0xff] }
 0x100   : > { %3598 = vmatmul.mubr.f32.gmra.mxu1 %v596_v39  ;;  %v3525_v47 = vpop.f32.mrf.mxu0  ;;  %v550_v14 = vpop.f32.mrf.mxu1 }
 0x101   : > { %v597_v49 = vmax.f32 %v471_v45, 0.0  ;;  %v486_v50 = vadd.f32 %v3525_v47, %v4579_v13  ;;  %v551_v27 = vadd.f32 %v4579_v13, %v550_v14  ;;  %v614_v34 = vmax.f32 %v556_v29, 0.0  ;;  %v3186_v47 = vld [vmem:[%s6477_s3 + $0x90] sm:$0xff]  ;;  %v1186_v14 = vld [vmem:[%s6479_s5 + $0x18] sm:$0xff] }
 0x102   : > { %v480_v51 = vpop.f32.mrf.mxu0  ;;  %v3549_v17 = vpop.f32.mrf.mxu1  ;;  %3662 = vmatprep.subr.mxu0 %v3186_v47 }
 0x103   : > { %3600 = vmatprep.mubr.f32.mxu1 %v597_v49  ;;  %v481_v52 = vadd.f32 %v4579_v13, %v480_v51  ;;  %v600_v53 = vmax.f32 %v486_v50, 0.0  ;;  %v613_v31 = vmax.f32 %v551_v27, 0.0  ;;  %v566_v35 = vadd.f32 %v3549_v17, %v4579_v13  ;;  %3663 = vmatpush3.msra.mxu0 %v3186_v47  ;;  %v1214_v49 = vld [vmem:[%s6479_s5 + $0xf8] sm:$0xff]  ;;  %v1213_v50 = vld [vmem:[%s6479_s5 + $0xf0] sm:$0xff]  ;;  %v1212_v51 = vld [vmem:[%s6479_s5 + $0xe8] sm:$0xff] }
 0x104   : > { %3601 = vmatmul.mubr.f32.gmra.mxu1 %v598_v46  ;;  %v3528_v54 = vpop.f32.mrf.mxu0  ;;  %v560_v22 = vpop.f32.mrf.mxu1  ;;  %3664 = vmatprep.subr.mxu0 %v3185_v48 }
 0x105   : > { %v599_v56 = vmax.f32 %v481_v52, 0.0  ;;  %v496_v57 = vadd.f32 %v3528_v54, %v4579_v13  ;;  %v561_v32 = vadd.f32 %v4579_v13, %v560_v22  ;;  %v616_v39 = vmax.f32 %v566_v35, 0.0  ;;  %3665 = vmatpush3.msra.mxu0 %v3185_v48  ;;  %1227 = vmatprep.subr.mxu1 %v1214_v49  ;;  %v1211_v52 = vld [vmem:[%s6479_s5 + $0xe0] sm:$0xff]  ;;  %v1209_v54 = vld [vmem:[%s6479_s5 + $0xd0] sm:$0xff] }
 0x106   : > { %v490_v58 = vpop.f32.mrf.mxu0  ;;  %v3552_v25 = vpop.f32.mrf.mxu1  ;;  %1228 = vmatpush1.msra.mxu1 %v1213_v50 }
 0x107   : > { %3603 = vmatprep.mubr.f32.mxu1 %v599_v56  ;;  %v491_v60 = vadd.f32 %v4579_v13, %v490_v58  ;;  %v602_v61 = vmax.f32 %v496_v57, 0.0  ;;  %v615_v36 = vmax.f32 %v561_v32, 0.0  ;;  %v576_v40 = vadd.f32 %v3552_v25, %v4579_v13  ;;  %1229 = vmatprep.subr.mxu1 %v1212_v51  ;;  %v1207_v56 = vld [vmem:[%s6479_s5 + $0xc0] sm:$0xff]  ;;  %v1206_v57 = vld [vmem:[%s6479_s5 + $0xb8] sm:$0xff]  ;;  %v1205_v58 = vld [vmem:[%s6479_s5 + $0xb0] sm:$0xff] }
 0x108   : > { %3604 = vmatmul.mubr.f32.gmra.mxu1 %v600_v53  ;;  %v3531_v62 = vpop.f32.mrf.mxu0  ;;  %v570_v30 = vpop.f32.mrf.mxu1  ;;  %v1210_v53 = vld [vmem:[%s6479_s5 + $0xd8] sm:$0xff] }
 0x109   : > { %v601_v63 = vmax.f32 %v491_v60, 0.0  ;;  %v506_v0 = vadd.f32 %v3531_v62, %v4579_v13  ;;  %v571_v37 = vadd.f32 %v4579_v13, %v570_v30  ;;  %v618_v43 = vmax.f32 %v576_v40, 0.0  ;;  %1230 = vmatpush1.msra.mxu1 %v1211_v52  ;;  %v1203_v60 = vld [vmem:[%s6479_s5 + $0xa0] sm:$0xff]  ;;  %v1201_v62 = vld [vmem:[%s6479_s5 + $0x90] sm:$0xff] }
 0x10a   : > { %v500_v2 = vpop.f32.mrf.mxu0  ;;  %v3555_v33 = vpop.f32.mrf.mxu1  ;;  %1231 = vmatprep.subr.mxu1 %v1210_v53 }
 0x10b   : > { %3606 = vmatprep.mubr.f32.mxu1 %v601_v63  ;;  %v501_v4 = vadd.f32 %v4579_v13, %v500_v2  ;;  %v604_v5 = vmax.f32 %v506_v0, 0.0  ;;  %v617_v41 = vmax.f32 %v571_v37, 0.0  ;;  %v586_v44 = vadd.f32 %v3555_v33, %v4579_v13  ;;  %1232 = vmatpush1.msra.mxu1 %v1209_v54  ;;  %v1200_v63 = vld [vmem:[%s6479_s5 + $0x88] sm:$0xff]  ;;  %v1199_v0 = vld [vmem:[%s6479_s5 + $0x80] sm:$0xff]  ;;  %v1197_v2 = vld [vmem:[%s6479_s5 + $0x70] sm:$0xff] }
 0x10c   : > { %3607 = vmatmul.mubr.f32.gmra.mxu1 %v602_v61  ;;  %v580_v38 = vpop.f32.mrf.mxu1  ;;  %1233 = vmatprep.subr.mxu1 %v1208_v55  ;;  %v1202_v61 = vld [vmem:[%s6479_s5 + $0x98] sm:$0xff] }
 0x10d   : > { %v603_v8 = vmax.f32 %v501_v4, 0.0  ;;  %v581_v42 = vadd.f32 %v4579_v13, %v580_v38  ;;  %v620_v46 = vmax.f32 %v586_v44, 0.0  ;;  %v3184_v13 = vld [vmem:[%s6477_s3 + $0x80] sm:$0xff]  ;;  %1234 = vmatpush1.msra.mxu1 %v1207_v56 }
 0x10e   : > { %3666 = vmatprep.subr.mxu0 %v3184_v13  ;;  %1235 = vmatprep.subr.mxu1 %v1206_v57  ;;  %v1195_v4 = vld [vmem:[%s6479_s5 + $0x60] sm:$0xff] }
 0x10f   : > { %3609 = vmatprep.mubr.f32.mxu1 %v603_v8  ;;  %v619_v45 = vmax.f32 %v581_v42, 0.0  ;;  %3667 = vmatpush3.msra.mxu0 %v3184_v13  ;;  %v1191_v8 = vld [vmem:[%s6479_s5 + $0x40] sm:$0xff] }
 0x110   : > { %3610 = vmatmul.mubr.f32.gmra.mxu1 %v604_v5  ;;  %v1194_v5 = vld [vmem:[%s6479_s5 + $0x58] sm:$0xff] }
 0x111   : > { %3612 = vmatprep.mubr.f32.mxu1 %v605_v9  ;;  %1236 = vmatpush1.msra.mxu1 %v1205_v58  ;;  %v1190_v9 = vld [vmem:[%s6479_s5 + $0x38] sm:$0xff] }
 0x112   : > { %1237 = vmatprep.subr.mxu1 %v1204_v59 }
 0x113   : > { %1238 = vmatpush1.msra.mxu1 %v1203_v60 }
 0x114   : > { %3613 = vmatmul.mubr.f32.gmra.mxu1 %v606_v11  ;;  %1239 = vmatprep.subr.mxu1 %v1202_v61  ;;  %v1188_v11 = vld [vmem:[%s6479_s5 + $0x28] sm:$0xff] }
 0x115   : > { %3615 = vmatprep.mubr.f32.mxu1 %v607_v15  ;;  %1240 = vmatpush1.msra.mxu1 %v1201_v62  ;;  %v1185_v15 = vld [vmem:[%s6479_s5 + $0x10] sm:$0xff] }
 0x116   : > { %1241 = vmatprep.subr.mxu1 %v1200_v63 }
 0x117   : > { %1242 = vmatpush1.msra.mxu1 %v1199_v0 }
 0x118   : > { %3616 = vmatmul.mubr.f32.gmra.mxu1 %v608_v18  ;;  %1243 = vmatprep.subr.mxu1 %v1198_v1 }
 0x119   : > { %3618 = vmatprep.mubr.f32.mxu1 %v609_v20  ;;  %1244 = vmatpush1.msra.mxu1 %v1197_v2 }
 0x11a   : > { %1245 = vmatprep.subr.mxu1 %v1196_v3 }
 0x11b   : > { %1246 = vmatpush1.msra.mxu1 %v1195_v4 }
 0x11c   : > { %3619 = vmatmul.mubr.f32.gmra.mxu1 %v610_v23  ;;  %1247 = vmatprep.subr.mxu1 %v1194_v5 }
 0x11d   : > { %3621 = vmatprep.mubr.f32.mxu1 %v611_v26  ;;  %1248 = vmatpush1.msra.mxu1 %v1193_v6 }
 0x11e   : > { %1249 = vmatprep.subr.mxu1 %v1192_v7 }
 0x11f   : > { %1250 = vmatpush1.msra.mxu1 %v1191_v8 }
 0x120   : > { %3622 = vmatmul.mubr.f32.gmra.mxu1 %v612_v28  ;;  %1251 = vmatprep.subr.mxu1 %v1190_v9 }
 0x121   : > { %3624 = vmatprep.mubr.f32.mxu1 %v613_v31  ;;  %1252 = vmatpush1.msra.mxu1 %v1189_v10 }
 0x122   : > { %1253 = vmatprep.subr.mxu1 %v1188_v11 }
 0x123   : > { %1254 = vmatpush1.msra.mxu1 %v1187_v12 }
 0x124   : > { %3625 = vmatmul.mubr.f32.gmra.mxu1 %v614_v34  ;;  %1255 = vmatprep.subr.mxu1 %v1186_v14 }
 0x125   : > { %3627 = vmatprep.mubr.f32.mxu1 %v615_v36  ;;  %1256 = vmatpush1.msra.mxu1 %v1185_v15 }
 0x128   : > { %3628 = vmatmul.mubr.f32.gmra.mxu1 %v616_v39 }
 0x129   : > { %3630 = vmatprep.mubr.f32.mxu1 %v617_v41 }
 0x12c   : > { %3631 = vmatmul.mubr.f32.gmra.mxu1 %v618_v43 }
 0x12d   : > { %3633 = vmatprep.mubr.f32.mxu1 %v619_v45 }
 0x130   : > { %3634 = vmatmul.mubr.f32.gmra.mxu1 %v620_v46 }
 0x1b4   : > { %v3590_v17 = vpop.f32.mrf.mxu1 }
 0x1b5   : > { %v716_v18 = vadd.f32 %v3590_v17, %v4715_v16 }
 0x1b6   : > { %v710_v19 = vpop.f32.mrf.mxu1 }
 0x1b7   : > { %v711_v20 = vadd.f32 %v4715_v16, %v710_v19  ;;  %v870_v24 = vmax.f32 %v716_v18, 0.0 }
 0x1b8   : > { %v3593_v21 = vpop.f32.mrf.mxu1 }
 0x1b9   : > { %v869_v22 = vmax.f32 %v711_v20, 0.0  ;;  %v726_v23 = vadd.f32 %v3593_v21, %v4715_v16 }
 0x1ba   : > { %v720_v25 = vpop.f32.mrf.mxu1 }
 0x1bb   : > { %3668 = vmatprep.mubr.f32.mxu0 %v869_v22  ;;  %v721_v26 = vadd.f32 %v4715_v16, %v720_v25  ;;  %v872_v27 = vmax.f32 %v726_v23, 0.0 }
 0x1bc   : > { %3669 = vmatmul.mubr.f32.vlgmr.msra.gmra.mxu0 %v870_v24  ;;  %v3596_v28 = vpop.f32.mrf.mxu1 }
 0x1bd   : > { %v871_v29 = vmax.f32 %v721_v26, 0.0  ;;  %v736_v30 = vadd.f32 %v3596_v28, %v4715_v16 }
 0x1be   : > { %v730_v31 = vpop.f32.mrf.mxu1 }
 0x1bf   : > { %3671 = vmatprep.mubr.f32.mxu0 %v871_v29  ;;  %v731_v32 = vadd.f32 %v4715_v16, %v730_v31  ;;  %v874_v33 = vmax.f32 %v736_v30, 0.0 }
 0x1c0   : > { %3672 = vmatmul.mubr.f32.gmra.mxu0 %v872_v27  ;;  %v3599_v34 = vpop.f32.mrf.mxu1 }
 0x1c1   : > { %v873_v35 = vmax.f32 %v731_v32, 0.0  ;;  %v746_v36 = vadd.f32 %v3599_v34, %v4715_v16 }
 0x1c2   : > { %v740_v37 = vpop.f32.mrf.mxu1 }
 0x1c3   : > { %3674 = vmatprep.mubr.f32.mxu0 %v873_v35  ;;  %v741_v38 = vadd.f32 %v4715_v16, %v740_v37  ;;  %v876_v39 = vmax.f32 %v746_v36, 0.0 }
 0x1c4   : > { %3675 = vmatmul.mubr.f32.gmra.mxu0 %v874_v33  ;;  %v3602_v40 = vpop.f32.mrf.mxu1 }
 0x1c5   : > { %v875_v41 = vmax.f32 %v741_v38, 0.0  ;;  %v756_v42 = vadd.f32 %v3602_v40, %v4715_v16 }
 0x1c6   : > { %v750_v43 = vpop.f32.mrf.mxu1 }
 0x1c7   : > { %3677 = vmatprep.mubr.f32.mxu0 %v875_v41  ;;  %v751_v44 = vadd.f32 %v4715_v16, %v750_v43  ;;  %v878_v45 = vmax.f32 %v756_v42, 0.0 }
 0x1c8   : > { %3678 = vmatmul.mubr.f32.gmra.mxu0 %v876_v39  ;;  %v3605_v46 = vpop.f32.mrf.mxu1 }
 0x1c9   : > { %v877_v47 = vmax.f32 %v751_v44, 0.0  ;;  %v766_v48 = vadd.f32 %v3605_v46, %v4715_v16 }
 0x1ca   : > { %v760_v13 = vpop.f32.mrf.mxu1 }
 0x1cb   : > { %3680 = vmatprep.mubr.f32.mxu0 %v877_v47  ;;  %v761_v49 = vadd.f32 %v4715_v16, %v760_v13  ;;  %v880_v50 = vmax.f32 %v766_v48, 0.0 }
 0x1cc   : > { %3681 = vmatmul.mubr.f32.gmra.mxu0 %v878_v45  ;;  %v3608_v51 = vpop.f32.mrf.mxu1 }
 0x1cd   : > { %v879_v52 = vmax.f32 %v761_v49, 0.0  ;;  %v776_v53 = vadd.f32 %v3608_v51, %v4715_v16  ;;  %v1184_v49 = vld [vmem:[%s6479_s5 + $0x8] sm:$0xff]  ;;  %v4343_v51 = vmov 0.0  }
 0x1ce   : > { %v770_v54 = vpop.f32.mrf.mxu1  ;;  %1257 = vmatprep.subr.mxu1 %v1184_v49  ;;  %1291 = vmatprep.mubr.f32.mxu1 %v4343_v51 }
 0x1cf   : > { %3683 = vmatprep.mubr.f32.mxu0 %v879_v52  ;;  %v771_v55 = vadd.f32 %v4715_v16, %v770_v54  ;;  %v882_v56 = vmax.f32 %v776_v53, 0.0 }
 0x1d0   : > { %3684 = vmatmul.mubr.f32.gmra.mxu0 %v880_v50  ;;  %v3611_v57 = vpop.f32.mrf.mxu1  ;;  %v1183_v50 = vld [vmem:[%s6479_s5] sm:$0xff] }
 0x1d1   : > { %v881_v58 = vmax.f32 %v771_v55, 0.0  ;;  %v786_v59 = vadd.f32 %v3611_v57, %v4715_v16  ;;  %1258 = vmatpush1.msra.mxu1 %v1183_v50 }
 0x1d2   : > { %v780_v60 = vpop.f32.mrf.mxu1 }
 0x1d3   : > { %3686 = vmatprep.mubr.f32.mxu0 %v881_v58  ;;  %v781_v61 = vadd.f32 %v4715_v16, %v780_v60  ;;  %v884_v62 = vmax.f32 %v786_v59, 0.0 }
 0x1d4   : > { %3687 = vmatmul.mubr.f32.gmra.mxu0 %v882_v56  ;;  %v3614_v63 = vpop.f32.mrf.mxu1 }
 0x1d5   : > { %v883_v0 = vmax.f32 %v781_v61, 0.0  ;;  %v796_v1 = vadd.f32 %v3614_v63, %v4715_v16 }
 0x1d6   : > { %v790_v2 = vpop.f32.mrf.mxu1 }
 0x1d7   : > { %3689 = vmatprep.mubr.f32.mxu0 %v883_v0  ;;  %v791_v3 = vadd.f32 %v4715_v16, %v790_v2  ;;  %v886_v4 = vmax.f32 %v796_v1, 0.0 }
 0x1d8   : > { %3690 = vmatmul.mubr.f32.gmra.mxu0 %v884_v62  ;;  %v3617_v5 = vpop.f32.mrf.mxu1 }
 0x1d9   : > { %v885_v6 = vmax.f32 %v791_v3, 0.0  ;;  %v806_v7 = vadd.f32 %v3617_v5, %v4715_v16 }
 0x1da   : > { %v800_v8 = vpop.f32.mrf.mxu1 }
 0x1db   : > { %3692 = vmatprep.mubr.f32.mxu0 %v885_v6  ;;  %v801_v9 = vadd.f32 %v4715_v16, %v800_v8  ;;  %v888_v10 = vmax.f32 %v806_v7, 0.0 }
 0x1dc   : > { %3693 = vmatmul.mubr.f32.gmra.mxu0 %v886_v4  ;;  %v3620_v11 = vpop.f32.mrf.mxu1 }
 0x1dd   : > { %v887_v12 = vmax.f32 %v801_v9, 0.0  ;;  %v816_v14 = vadd.f32 %v3620_v11, %v4715_v16 }
 0x1de   : > { %v810_v15 = vpop.f32.mrf.mxu1 }
 0x1df   : > { %3695 = vmatprep.mubr.f32.mxu0 %v887_v12  ;;  %v811_v17 = vadd.f32 %v4715_v16, %v810_v15  ;;  %v890_v18 = vmax.f32 %v816_v14, 0.0 }
 0x1e0   : > { %3696 = vmatmul.mubr.f32.gmra.mxu0 %v888_v10  ;;  %v3623_v19 = vpop.f32.mrf.mxu1 }
 0x1e1   : > { %v889_v20 = vmax.f32 %v811_v17, 0.0  ;;  %v826_v21 = vadd.f32 %v3623_v19, %v4715_v16 }
 0x1e2   : > { %v820_v22 = vpop.f32.mrf.mxu1 }
 0x1e3   : > { %3698 = vmatprep.mubr.f32.mxu0 %v889_v20  ;;  %v821_v23 = vadd.f32 %v4715_v16, %v820_v22  ;;  %v892_v24 = vmax.f32 %v826_v21, 0.0 }
 0x1e4   : > { %3699 = vmatmul.mubr.f32.gmra.mxu0 %v890_v18  ;;  %v3626_v25 = vpop.f32.mrf.mxu1 }
 0x1e5   : > { %v891_v26 = vmax.f32 %v821_v23, 0.0  ;;  %v836_v27 = vadd.f32 %v3626_v25, %v4715_v16 }
 0x1e6   : > { %v830_v28 = vpop.f32.mrf.mxu1 }
 0x1e7   : > { %3701 = vmatprep.mubr.f32.mxu0 %v891_v26  ;;  %v831_v29 = vadd.f32 %v4715_v16, %v830_v28  ;;  %v894_v30 = vmax.f32 %v836_v27, 0.0 }
 0x1e8   : > { %3702 = vmatmul.mubr.f32.gmra.mxu0 %v892_v24  ;;  %v3629_v31 = vpop.f32.mrf.mxu1 }
 0x1e9   : > { %v893_v32 = vmax.f32 %v831_v29, 0.0  ;;  %v846_v33 = vadd.f32 %v3629_v31, %v4715_v16 }
 0x1ea   : > { %v840_v34 = vpop.f32.mrf.mxu1 }
 0x1eb   : > { %3704 = vmatprep.mubr.f32.mxu0 %v893_v32  ;;  %v841_v35 = vadd.f32 %v4715_v16, %v840_v34  ;;  %v896_v36 = vmax.f32 %v846_v33, 0.0 }
 0x1ec   : > { %3705 = vmatmul.mubr.f32.gmra.mxu0 %v894_v30  ;;  %v3632_v37 = vpop.f32.mrf.mxu1 }
 0x1ed   : > { %v895_v38 = vmax.f32 %v841_v35, 0.0  ;;  %v856_v39 = vadd.f32 %v3632_v37, %v4715_v16 }
 0x1ee   : > { %v850_v40 = vpop.f32.mrf.mxu1 }
 0x1ef   : > { %3707 = vmatprep.mubr.f32.mxu0 %v895_v38  ;;  %v851_v41 = vadd.f32 %v4715_v16, %v850_v40  ;;  %v898_v42 = vmax.f32 %v856_v39, 0.0 }
 0x1f0   : > { %3708 = vmatmul.mubr.f32.gmra.mxu0 %v896_v36  ;;  %v3635_v43 = vpop.f32.mrf.mxu1 }
 0x1f1   : > { %v897_v44 = vmax.f32 %v851_v41, 0.0  ;;  %v866_v45 = vadd.f32 %v3635_v43, %v4715_v16 }
 0x1f2   : > { %v860_v46 = vpop.f32.mrf.mxu1 }
 0x1f3   : > { %3710 = vmatprep.mubr.f32.mxu0 %v897_v44  ;;  %v861_v47 = vadd.f32 %v4715_v16, %v860_v46  ;;  %v900_v48 = vmax.f32 %v866_v45, 0.0  ;;  %v4759_v16 = vld [vmem:[%s6478_s4 + $0x1] ss:$0 sm:$0xff] }
 0x1f4   : > { %3711 = vmatmul.mubr.f32.gmra.mxu0 %v898_v42 }
 0x1f5   : > { %v899_v13 = vmax.f32 %v861_v47, 0.0 }
 0x1f7   : > { %3713 = vmatprep.mubr.f32.mxu0 %v899_v13 }
 0x1f8   : > { %3714 = vmatmul.mubr.f32.gmra.mxu0 %v900_v48 }
 0x27c   : > { %v3670_v52 = vpop.f32.mrf.mxu0 }
 0x27d   : > { %v998_v56 = vadd.f32 %v3670_v52, %v4759_v16 }
 0x27e   : > { %v992_v53 = vpop.f32.mrf.mxu0 }
 0x27f   : > { %v993_v54 = vadd.f32 %v4759_v16, %v992_v53  ;;  %v1152_v61 = vmax.f32 %v998_v56, 0.0 }
 0x280   : > { %v3673_v55 = vpop.f32.mrf.mxu0 }
 0x281   : > { %v1151_v57 = vmax.f32 %v993_v54, 0.0  ;;  %v1008_v62 = vadd.f32 %v3673_v55, %v4759_v16 }
 0x282   : > { %v1002_v58 = vpop.f32.mrf.mxu0 }
 0x283   : > { %1292 = vmatmul.mubr.f32.vlgmr.msra.gmra.mxu1 %v1151_v57  ;;  %v1003_v59 = vadd.f32 %v4759_v16, %v1002_v58  ;;  %v1154_v1 = vmax.f32 %v1008_v62, 0.0 }
 0x284   : > { %1297 = vmatprep.mubr.f32.mxu1 %v4343_v51  ;;  %v3676_v60 = vpop.f32.mrf.mxu0 }
 0x285   : > { %v1153_v63 = vmax.f32 %v1003_v59, 0.0  ;;  %v1018_v4 = vadd.f32 %v3676_v60, %v4759_v16 }
 0x286   : > { %v1012_v0 = vpop.f32.mrf.mxu0 }
 0x287   : > { %1298 = vmatmul.mubr.f32.gmra.mxu1 %v1152_v61  ;;  %v1013_v2 = vadd.f32 %v4759_v16, %v1012_v0  ;;  %v1156_v7 = vmax.f32 %v1018_v4, 0.0 }
 0x288   : > { %1303 = vmatprep.mubr.f32.mxu1 %v4343_v51  ;;  %v3679_v3 = vpop.f32.mrf.mxu0 }
 0x289   : > { %v1155_v5 = vmax.f32 %v1013_v2, 0.0  ;;  %v1028_v10 = vadd.f32 %v3679_v3, %v4759_v16 }
 0x28a   : > { %v1022_v6 = vpop.f32.mrf.mxu0 }
 0x28b   : > { %1304 = vmatmul.mubr.f32.gmra.mxu1 %v1153_v63  ;;  %v1023_v8 = vadd.f32 %v4759_v16, %v1022_v6  ;;  %v1158_v14 = vmax.f32 %v1028_v10, 0.0 }
 0x28c   : > { %1309 = vmatprep.mubr.f32.mxu1 %v4343_v51  ;;  %v3682_v9 = vpop.f32.mrf.mxu0 }
 0x28d   : > { %v1157_v11 = vmax.f32 %v1023_v8, 0.0  ;;  %v1038_v18 = vadd.f32 %v3682_v9, %v4759_v16 }
 0x28e   : > { %v1032_v12 = vpop.f32.mrf.mxu0 }
 0x28f   : > { %1310 = vmatmul.mubr.f32.gmra.mxu1 %v1154_v1  ;;  %v1033_v15 = vadd.f32 %v4759_v16, %v1032_v12  ;;  %v1160_v21 = vmax.f32 %v1038_v18, 0.0 }
 0x290   : > { %1315 = vmatprep.mubr.f32.mxu1 %v4343_v51  ;;  %v3685_v17 = vpop.f32.mrf.mxu0 }
 0x291   : > { %v1159_v19 = vmax.f32 %v1033_v15, 0.0  ;;  %v1048_v24 = vadd.f32 %v3685_v17, %v4759_v16 }
 0x292   : > { %v1042_v20 = vpop.f32.mrf.mxu0 }
 0x293   : > { %1316 = vmatmul.mubr.f32.gmra.mxu1 %v1155_v5  ;;  %v1043_v22 = vadd.f32 %v4759_v16, %v1042_v20  ;;  %v1162_v27 = vmax.f32 %v1048_v24, 0.0  ;;  %v6483_v24 = vlaneseq }
 0x294   : > { %1321 = vmatprep.mubr.f32.mxu1 %v4343_v51  ;;  %v3688_v23 = vpop.f32.mrf.mxu0 }
 0x295   : > { %v1161_v25 = vmax.f32 %v1043_v22, 0.0  ;;  %v1058_v30 = vadd.f32 %v3688_v23, %v4759_v16 }
 0x296   : > { %v1052_v26 = vpop.f32.mrf.mxu0 }
 0x297   : > { %1322 = vmatmul.mubr.f32.gmra.mxu1 %v1156_v7  ;;  %v1053_v28 = vadd.f32 %v4759_v16, %v1052_v26  ;;  %v1164_v33 = vmax.f32 %v1058_v30, 0.0 }
 0x298   : > { %1327 = vmatprep.mubr.f32.mxu1 %v4343_v51  ;;  %v3691_v29 = vpop.f32.mrf.mxu0 }
 0x299   : > { %v1163_v31 = vmax.f32 %v1053_v28, 0.0  ;;  %v1068_v36 = vadd.f32 %v3691_v29, %v4759_v16 }
 0x29a   : > { %v1062_v32 = vpop.f32.mrf.mxu0 }
 0x29b   : > { %1328 = vmatmul.mubr.f32.gmra.mxu1 %v1157_v11  ;;  %v1063_v34 = vadd.f32 %v4759_v16, %v1062_v32  ;;  %v1166_v39 = vmax.f32 %v1068_v36, 0.0  ;;  %v4850_v36 = vld [vmem:[%s6481_s7 + $0x70] sm:$0xff] }
 0x29c   : > { %1333 = vmatprep.mubr.f32.mxu1 %v4343_v51  ;;  %v3694_v35 = vpop.f32.mrf.mxu0 }
 0x29d   : > { %v1165_v37 = vmax.f32 %v1063_v34, 0.0  ;;  %v1078_v42 = vadd.f32 %v3694_v35, %v4759_v16  ;;  %v4845_v35 = vld [vmem:[%s6481_s7 + $0x78] sm:$0xff] }
 0x29e   : > { %v1072_v38 = vpop.f32.mrf.mxu0  ;;  %3716 = vmatprep.subr.mxu0 %v4845_v35 }
 0x29f   : > { %1334 = vmatmul.mubr.f32.gmra.mxu1 %v1158_v14  ;;  %v1073_v40 = vadd.f32 %v4759_v16, %v1072_v38  ;;  %v1168_v45 = vmax.f32 %v1078_v42, 0.0  ;;  %3717 = vmatpush3.msra.mxu0 %v4845_v35  ;;  %v4857_v38 = vld [vmem:[%s6481_s7 + $0x68] sm:$0xff]  ;;  %v4875_v42 = vld [vmem:[%s6481_s7 + $0x58] sm:$0xff] }
 0x2a0   : > { %1339 = vmatprep.mubr.f32.mxu1 %v4343_v51  ;;  %v3697_v41 = vpop.f32.mrf.mxu0  ;;  %3718 = vmatprep.subr.mxu0 %v4850_v36 }
 0x2a1   : > { %v1167_v43 = vmax.f32 %v1073_v40, 0.0  ;;  %v1088_v48 = vadd.f32 %v3697_v41, %v4759_v16  ;;  %3719 = vmatpush3.msra.mxu0 %v4850_v36  ;;  %v4867_v40 = vld [vmem:[%s6481_s7 + $0x60] sm:$0xff] }
 0x2a2   : > { %v1082_v44 = vpop.f32.mrf.mxu0  ;;  %3720 = vmatprep.subr.mxu0 %v4857_v38 }
 0x2a3   : > { %1340 = vmatmul.mubr.f32.gmra.mxu1 %v1159_v19  ;;  %v1083_v46 = vadd.f32 %v4759_v16, %v1082_v44  ;;  %v1170_v50 = vmax.f32 %v1088_v48, 0.0  ;;  %3721 = vmatpush3.msra.mxu0 %v4857_v38 }
 0x2a4   : > { %1345 = vmatprep.mubr.f32.mxu1 %v4343_v51  ;;  %v3700_v47 = vpop.f32.mrf.mxu0  ;;  %3722 = vmatprep.subr.mxu0 %v4867_v40 }
 0x2a5   : > { %v1169_v13 = vmax.f32 %v1083_v46, 0.0  ;;  %v1098_v54 = vadd.f32 %v3700_v47, %v4759_v16  ;;  %3723 = vmatpush3.msra.mxu0 %v4867_v40  ;;  %v4892_v47 = vld [vmem:[%s6481_s7 + $0x50] sm:$0xff] }
 0x2a6   : > { %v1092_v49 = vpop.f32.mrf.mxu0  ;;  %3724 = vmatprep.subr.mxu0 %v4875_v42 }
 0x2a7   : > { %1346 = vmatmul.mubr.f32.gmra.mxu1 %v1160_v21  ;;  %v1093_v52 = vadd.f32 %v4759_v16, %v1092_v49  ;;  %v1172_v57 = vmax.f32 %v1098_v54, 0.0  ;;  %3725 = vmatpush3.msra.mxu0 %v4875_v42  ;;  %v4910_v49 = vld [vmem:[%s6481_s7 + $0x40] sm:$0xff] }
 0x2a8   : > { %1351 = vmatprep.mubr.f32.mxu1 %v4343_v51  ;;  %v3703_v53 = vpop.f32.mrf.mxu0  ;;  %3726 = vmatprep.subr.mxu0 %v4892_v47  ;;  %v4938_v54 = vld [vmem:[%s6481_s7 + $0x20] sm:$0xff] }
 0x2a9   : > { %v1171_v55 = vmax.f32 %v1093_v52, 0.0  ;;  %v1108_v60 = vadd.f32 %v3703_v53, %v4759_v16  ;;  %3727 = vmatpush3.msra.mxu0 %v4892_v47  ;;  %v4924_v52 = vld [vmem:[%s6481_s7 + $0x30] sm:$0xff]  ;;  %v4931_v53 = vld [vmem:[%s6481_s7 + $0x28] sm:$0xff] }
 0x2aa   : > { %v1102_v56 = vpop.f32.mrf.mxu0 }
 0x2ab   : > { %1352 = vmatmul.mubr.f32.gmra.mxu1 %v1161_v25  ;;  %v1103_v58 = vadd.f32 %v4759_v16, %v1102_v56  ;;  %v1174_v63 = vmax.f32 %v1108_v60, 0.0  ;;  %v1218_v25 = vshrl.u32 %v6483_v24, 7 }
 0x2ac   : > { %1357 = vmatprep.mubr.f32.mxu1 %v4343_v51  ;;  %v3706_v59 = vpop.f32.mrf.mxu0 }
 0x2ad   : > { %v1173_v61 = vmax.f32 %v1103_v58, 0.0  ;;  %v1118_v2 = vadd.f32 %v3706_v59, %v4759_v16  ;;  %v1219_v26 = vsub.s32 0, %v1218_v25  ;;  %v1223_v32 = vsub.s32 1, %v1218_v25  ;;  %v4964_v59 = vld [vmem:[%s6481_s7 + $0x8] sm:$0xff] }
 0x2ae   : > { %v1112_v62 = vpop.f32.mrf.mxu0 }
 0x2af   : > { %1358 = vmatmul.mubr.f32.gmra.mxu1 %v1162_v27  ;;  %v1113_v0 = vadd.f32 %v4759_v16, %v1112_v62  ;;  %v1176_v5 = vmax.f32 %v1118_v2, 0.0  ;;  %v1215_v27 = vld [vmem:[%s6480_s6] sm:$0x3] }
 0x2b0   : > { %1363 = vmatprep.mubr.f32.mxu1 %v4343_v51  ;;  %v3709_v1 = vpop.f32.mrf.mxu0  ;;  %v4828_v28 = vrot.slane %v1215_v27, %v1219_v26  ;;  %v4976_v62 = vld [vmem:[%s6481_s7] sm:$0xff] }
 0x2b1   : > { %v1175_v3 = vmax.f32 %v1113_v0, 0.0  ;;  %v1128_v8 = vadd.f32 %v3709_v1, %v4759_v16 }
 0x2b2   : > { %v1122_v4 = vpop.f32.mrf.mxu0 }
 0x2b3   : > { %1364 = vmatmul.mubr.f32.gmra.mxu1 %v1163_v31  ;;  %v1123_v6 = vadd.f32 %v4759_v16, %v1122_v4  ;;  %v1178_v11 = vmax.f32 %v1128_v8, 0.0 }
 0x2b4   : > { %1369 = vmatprep.mubr.f32.mxu1 %v4343_v51  ;;  %v3712_v7 = vpop.f32.mrf.mxu0 }
 0x2b5   : > { %v1177_v9 = vmax.f32 %v1123_v6, 0.0  ;;  %v1138_v15 = vadd.f32 %v3712_v7, %v4759_v16 }
 0x2b6   : > { %v1132_v10 = vpop.f32.mrf.mxu0 }
 0x2b7   : > { %1370 = vmatmul.mubr.f32.gmra.mxu1 %v1164_v33  ;;  %v1133_v12 = vadd.f32 %v4759_v16, %v1132_v10  ;;  %v1180_v19 = vmax.f32 %v1138_v15, 0.0  ;;  %v4840_v33 = vrot.slane %v1215_v27, %v1223_v32 }
 0x2b8   : > { %1375 = vmatprep.mubr.f32.mxu1 %v4343_v51  ;;  %v3715_v14 = vpop.f32.mrf.mxu0 }
 0x2b9   : > { %v1179_v17 = vmax.f32 %v1133_v12, 0.0  ;;  %v1148_v21 = vadd.f32 %v3715_v14, %v4759_v16 }
 0x2ba   : > { %v1142_v18 = vpop.f32.mrf.mxu0 }
 0x2bb   : > { %1376 = vmatmul.mubr.f32.gmra.mxu1 %v1165_v37  ;;  %v1143_v20 = vadd.f32 %v4759_v16, %v1142_v18  ;;  %v1182_v23 = vmax.f32 %v1148_v21, 0.0 }
 0x2bc   : > { %1381 = vmatprep.mubr.f32.mxu1 %v4343_v51 }
 0x2bd   : > { %v1181_v22 = vmax.f32 %v1143_v20, 0.0 }
 0x2bf   : > { %1382 = vmatmul.mubr.f32.gmra.mxu1 %v1166_v39 }
 0x2c0   : > { %1387 = vmatprep.mubr.f32.mxu1 %v4343_v51 }
 0x2c3   : > { %1388 = vmatmul.mubr.f32.gmra.mxu1 %v1167_v43 }
 0x2c4   : > { %1393 = vmatprep.mubr.f32.mxu1 %v4343_v51 }
 0x2c7   : > { %1394 = vmatmul.mubr.f32.gmra.mxu1 %v1168_v45 }
 0x2c8   : > { %1399 = vmatprep.mubr.f32.mxu1 %v4343_v51 }
 0x2cb   : > { %1400 = vmatmul.mubr.f32.gmra.mxu1 %v1169_v13  ;;  %v4902_v13 = vld [vmem:[%s6481_s7 + $0x48] sm:$0xff] }
 0x2cc   : > { %1405 = vmatprep.mubr.f32.mxu1 %v4343_v51  ;;  %3728 = vmatprep.subr.mxu0 %v4902_v13 }
 0x2cd   : > { %3729 = vmatpush3.msra.mxu0 %v4902_v13 }
 0x2ce   : > { %3730 = vmatprep.subr.mxu0 %v4910_v49 }
 0x2cf   : > { %1406 = vmatmul.mubr.f32.gmra.mxu1 %v1170_v50  ;;  %3731 = vmatpush3.msra.mxu0 %v4910_v49  ;;  %v4917_v50 = vld [vmem:[%s6481_s7 + $0x38] sm:$0xff] }
 0x2d0   : > { %1411 = vmatprep.mubr.f32.mxu1 %v4343_v51  ;;  %3732 = vmatprep.subr.mxu0 %v4917_v50 }
 0x2d1   : > { %3733 = vmatpush3.msra.mxu0 %v4917_v50 }
 0x2d2   : > { %3734 = vmatprep.subr.mxu0 %v4924_v52 }
 0x2d3   : > { %1412 = vmatmul.mubr.f32.gmra.mxu1 %v1171_v55  ;;  %3735 = vmatpush3.msra.mxu0 %v4924_v52  ;;  %v4945_v55 = vld [vmem:[%s6481_s7 + $0x18] sm:$0xff] }
 0x2d4   : > { %1417 = vmatprep.mubr.f32.mxu1 %v4343_v51  ;;  %3736 = vmatprep.subr.mxu0 %v4931_v53 }
 0x2d5   : > { %3737 = vmatpush3.msra.mxu0 %v4931_v53 }
 0x2d6   : > { %3738 = vmatprep.subr.mxu0 %v4938_v54 }
 0x2d7   : > { %1418 = vmatmul.mubr.f32.gmra.mxu1 %v1172_v57  ;;  %3739 = vmatpush3.msra.mxu0 %v4938_v54  ;;  %v4955_v57 = vld [vmem:[%s6481_s7 + $0x10] sm:$0xff] }
 0x2d8   : > { %1423 = vmatprep.mubr.f32.mxu1 %v4343_v51  ;;  %3740 = vmatprep.subr.mxu0 %v4945_v55 }
 0x2d9   : > { %3741 = vmatpush3.msra.mxu0 %v4945_v55 }
 0x2da   : > { %3742 = vmatprep.subr.mxu0 %v4955_v57 }
 0x2db   : > { %1424 = vmatmul.mubr.f32.gmra.mxu1 %v1173_v61  ;;  %3743 = vmatpush3.msra.mxu0 %v4955_v57 }
 0x2dc   : > { %1429 = vmatprep.mubr.f32.mxu1 %v4343_v51  ;;  %3744 = vmatprep.subr.mxu0 %v4964_v59 }
 0x2dd   : > { %3745 = vmatpush3.msra.mxu0 %v4964_v59 }
 0x2de   : > { %3746 = vmatprep.subr.mxu0 %v4976_v62 }
 0x2df   : > { %1430 = vmatmul.mubr.f32.gmra.mxu1 %v1174_v63  ;;  %3747 = vmatpush3.msra.mxu0 %v4976_v62 }
 0x2e0   : > { %1435 = vmatprep.mubr.f32.mxu1 %v4343_v51  ;;  %3796 = vmatprep.subr.mxu0 %v4845_v35 }
 0x2e3   : > { %1436 = vmatmul.mubr.f32.gmra.mxu1 %v1175_v3 }
 0x2e4   : > { %1441 = vmatprep.mubr.f32.mxu1 %v4343_v51 }
 0x2e7   : > { %1442 = vmatmul.mubr.f32.gmra.mxu1 %v1176_v5 }
 0x2e8   : > { %1447 = vmatprep.mubr.f32.mxu1 %v4343_v51 }
 0x2eb   : > { %1448 = vmatmul.mubr.f32.gmra.mxu1 %v1177_v9 }
 0x2ec   : > { %1453 = vmatprep.mubr.f32.mxu1 %v4343_v51 }
 0x2ef   : > { %1454 = vmatmul.mubr.f32.gmra.mxu1 %v1178_v11 }
 0x2f0   : > { %1459 = vmatprep.mubr.f32.mxu1 %v4343_v51 }
 0x2f3   : > { %1460 = vmatmul.mubr.f32.gmra.mxu1 %v1179_v17 }
 0x2f4   : > { %1465 = vmatprep.mubr.f32.mxu1 %v4343_v51 }
 0x2f7   : > { %1466 = vmatmul.mubr.f32.gmra.mxu1 %v1180_v19 }
 0x2f8   : > { %1471 = vmatprep.mubr.f32.mxu1 %v4343_v51 }
 0x2fb   : > { %1472 = vmatmul.mubr.f32.gmra.mxu1 %v1181_v22 }
 0x2fc   : > { %1477 = vmatprep.mubr.f32.mxu1 %v4343_v51 }
 0x2ff   : > { %1478 = vmatmul.mubr.f32.gmra.mxu1 %v1182_v23 }
 0x343   : > { %v1293_v16 = vpop.f32.mrf.mxu1 }
 0x344   : > { %v4831_v29 = vadd.f32 %v1293_v16, %v4828_v28 }
 0x345   : > { %v1295_v30 = vpop.f32.mrf.mxu1 }
 0x346   : > { %6593 = vst [vmem:[#allocation2_spill] sm:$0xff] %v4831_v29  ;;  %1484 = vrot.lane.b32.xlu0 %v4831_v29, %s4344_s17  ;;  %v4860_v39 = vadd.f32 %v1295_v30, %v4840_v33 }
 0x347   : > { %v1299_v51 = vpop.f32.mrf.mxu1 }
 0x348   : > { %v4836_v31 = vadd.f32 %v1299_v51, %v4828_v28 }
 0x349   : > { %v1301_v34 = vpop.f32.mrf.mxu1 }
 0x34a   : > { %6594 = vst [vmem:[#allocation3_spill] sm:$0xff] %v4836_v31  ;;  %1486 = vrot.lane.b32.xlu1 %v4836_v31, %s4344_s17  ;;  %v4878_v43 = vadd.f32 %v1301_v34, %v4840_v33 }
 0x34b   : > { %v1305_v37 = vpop.f32.mrf.mxu1 }
 0x34c   : > { %v4948_v56 = vadd.f32 %v1305_v37, %v4828_v28 }
 0x34d   : > { %v1307_v41 = vpop.f32.mrf.mxu1 }
 0x34e   : > { %v4886_v45 = vadd.f32 %v1307_v41, %v4840_v33  ;;  %6595 = vst [vmem:[#allocation4_spill] sm:$0xff] %v4948_v56 }
 0x34f   : > { %v1311_v44 = vpop.f32.mrf.mxu1 }
 0x350   : > { %v4967_v60 = vadd.f32 %v1311_v44, %v4828_v28 }
 0x351   : > { %v1313_v46 = vpop.f32.mrf.mxu1 }
 0x352   : > { %v4896_v48 = vadd.f32 %v1313_v46, %v4840_v33  ;;  %6596 = vst [vmem:[#allocation5_spill] sm:$0xff] %v4967_v60 }
 0x353   : > { %v1317_v58 = vpop.f32.mrf.mxu1 }
 0x354   : > { %v4970_v61 = vadd.f32 %v1317_v58, %v4828_v28 }
 0x355   : > { %v1319_v63 = vpop.f32.mrf.mxu1 }
 0x356   : > { %6597 = vst [vmem:[#allocation6_spill] sm:$0xff] %v4970_v61  ;;  %v4987_v1 = vadd.f32 %v1319_v63, %v4840_v33 }
 0x357   : > { %v1323_v0 = vpop.f32.mrf.mxu1 }
 0x358   : > { %v4995_v7 = vadd.f32 %v1323_v0, %v4828_v28 }
 0x359   : > { %v1325_v2 = vpop.f32.mrf.mxu1 }
 0x35a   : > { %v4991_v3 = vadd.f32 %v1325_v2, %v4840_v33  ;;  %6598 = vst [vmem:[#allocation7_spill] sm:$0xff] %v4995_v7 }
 0x35b   : > { %v1329_v4 = vpop.f32.mrf.mxu1 }
 0x35c   : > { %v5005_v9 = vadd.f32 %v1329_v4, %v4828_v28 }
 0x35d   : > { %v1331_v5 = vpop.f32.mrf.mxu1 }
 0x35e   : > { %6600 = vst [vmem:[#allocation9_spill] sm:$0xff] %v5005_v9  ;;  %v5010_v14 = vadd.f32 %v1331_v5, %v4840_v33 }
 0x35f   : > { %v1335_v6 = vpop.f32.mrf.mxu1 }
 0x360   : > { %v4998_v8 = vadd.f32 %v1335_v6, %v4828_v28 }
 0x361   : > { %v1337_v10 = vpop.f32.mrf.mxu1 }
 0x362   : > { %6599 = vst [vmem:[#allocation8_spill] sm:$0xff] %v4998_v8  ;;  %v5015_v17 = vadd.f32 %v1337_v10, %v4840_v33 }
 0x363   : > { %v1341_v11 = vpop.f32.mrf.mxu1 }
 0x364   : > { %v5026_v23 = vadd.f32 %v1341_v11, %v4828_v28 }
 0x365   : > { %2028 = vmax.xlane.f32.xlu0 %v4860_v39  ;;  %v1343_v12 = vpop.f32.mrf.mxu1 }
 0x366   : > { %6601 = vst [vmem:[#allocation10_spill] sm:$0xff] %v5026_v23 }
 0x367   : > { %v5012_v15 = vpop.f32.mrf.mxu1 }
 0x369   : > { %2030 = vmax.xlane.f32.xlu0 %v4878_v43  ;;  %v1349_v18 = vpop.f32.mrf.mxu1 }
 0x36a   : > { %v5020_v19 = vadd.f32 %v1349_v18, %v4840_v33 }
 0x36b   : > { %v1353_v21 = vpop.f32.mrf.mxu1 }
 0x36c   : > { %v5029_v25 = vadd.f32 %v1353_v21, %v4828_v28 }
 0x36e   : > { %2032 = vmax.xlane.f32.xlu1 %v4886_v45  ;;  %6602 = vst [vmem:[#allocation11_spill] sm:$0xff] %v5029_v25 }
 0x372   : > { %2034 = vmax.xlane.f32.xlu1 %v4896_v48 }
 0x37f   : > { %1488 = vrot.lane.b32.xlu0 %v4948_v56, %s4344_s17 }
 0x383   : > { %1492 = vrot.lane.b32.xlu1 %v4970_v61, %s4344_s17  ;;  %1490 = vrot.lane.b32.xlu0 %v4967_v60, %s4344_s17 }
 0x3a2   : > { %2036 = vmax.xlane.f32.xlu0 %v4987_v1 }
 0x3a7   : > { %2038 = vmax.xlane.f32.xlu1 %v4991_v3 }
 0x3b8   : > { %1498 = vrot.lane.b32.xlu1 %v4998_v8, %s4344_s17  ;;  %1494 = vrot.lane.b32.xlu0 %v4995_v7, %s4344_s17  ;;  %v5023_v20 = vpop.permute.xlu0 %1484 }
 0x3bc   : > { %1496 = vrot.lane.b32.xlu0 %v5005_v9, %s4344_s17  ;;  %v5036_v30 = vpop.permute.xlu1 %1486 }
 0x3db   : > { %2040 = vmax.xlane.f32.xlu0 %v5010_v14 }
 0x3dc   : > { %2042 = vmax.xlane.f32.xlu1 %v5015_v17 }
 0x3e0   : > { %2046 = vmax.xlane.f32.xlu1 %v5020_v19 }
 0x3ee   : > { %v2029_v22 = vpop.xlane.xlu0 %2028 }
 0x3ef   : > { %v2092_v26 = vsub.f32 %v4860_v39, %v2029_v22 }
 0x3f1   : > { %v2124_v27 = vmul.f32 1.442695, %v2092_v26  ;;  %1504 = vrot.lane.b32.xlu1 %v5029_v25, %s4344_s17  ;;  %1500 = vrot.lane.b32.xlu0 %v5026_v23, %s4344_s17 }
 0x3f2   : > { %v2031_v16 = vpop.xlane.xlu0 %2030 }
 0x3f3   : > { %3919 = vpow2.f32 %v2124_v27  ;;  %v2093_v51 = vsub.f32 %v4878_v43, %v2031_v16 }
 0x3f5   : > { %v2126_v32 = vmul.f32 1.442695, %v2093_v51 }
 0x3f7   : > { %3921 = vpow2.f32 %v2126_v32  ;;  %v2033_v34 = vpop.xlane.xlu1 %2032 }
 0x3f8   : > { %v2094_v37 = vsub.f32 %v4886_v45, %v2033_v34  ;;  %v1355_v45 = vpop.f32.mrf.mxu1 }
 0x3f9   : > { %v5121_v10 = vadd.f32 %v1355_v45, %v4840_v33 }
 0x3fa   : > { %v2128_v41 = vmul.f32 1.442695, %v2094_v37 }
 0x3fb   : > { %v2035_v39 = vpop.xlane.xlu1 %2034 }
 0x3fc   : > { %3923 = vpow2.f32 %v2128_v41  ;;  %v2095_v44 = vsub.f32 %v4896_v48, %v2035_v39 }
 0x3fe   : > { %v2130_v46 = vmul.f32 1.442695, %v2095_v44 }
 0x400   : > { %v5041_v58 = vpop.eup %3919  ;;  %3925 = vpow2.f32 %v2130_v46 }
 0x401   : > { %6603 = vst [vmem:[#allocation12_spill] sm:$0xff] %v5041_v58  ;;  %3748 = vmatprep.mubr.f32.mxu0 %v5041_v58 }
 0x404   : > { %v5044_v63 = vpop.eup %3921 }
 0x405   : > { %6604 = vst [vmem:[#allocation13_spill] sm:$0xff] %v5044_v63  ;;  %3749 = vmatmul.mubr.f32.vlgmr.msra.gmra.mxu0 %v5044_v63 }
 0x406   : > { %3797 = vmatpush3.msra.mxu0 %v4845_v35  ;;  %v5061_v35 = vadd.f32 %v1343_v12, %v4840_v33 }
 0x407   : > { %3798 = vmatprep.subr.mxu0 %v4850_v36 }
 0x408   : > { %3799 = vmatpush3.msra.mxu0 %v4850_v36  ;;  %v5063_v36 = vpop.f32.mrf.mxu1 }
 0x409   : > { %v5050_v43 = vpop.eup %3923  ;;  %3800 = vmatprep.subr.mxu0 %v4857_v38  ;;  %v5139_v22 = vadd.f32 %v5063_v36, %v4828_v28 }
 0x40a   : > { %6605 = vst [vmem:[#allocation14_spill] sm:$0xff] %v5050_v43  ;;  %3751 = vmatprep.mubr.f32.mxu0 %v5050_v43  ;;  %3801 = vmatpush3.msra.mxu0 %v4857_v38  ;;  %v1361_v38 = vpop.f32.mrf.mxu1 }
 0x40b   : > { %3802 = vmatprep.subr.mxu0 %v4867_v40  ;;  %6611 = vst [vmem:[#allocation20_spill] sm:$0xff] %v5139_v22 }
 0x40c   : > { %3803 = vmatpush3.msra.mxu0 %v4867_v40  ;;  %v5072_v40 = vadd.f32 %v1361_v38, %v4840_v33 }
 0x40d   : > { %v5057_v48 = vpop.eup %3925  ;;  %3804 = vmatprep.subr.mxu0 %v4875_v42 }
 0x40e   : > { %6606 = vst [vmem:[#allocation15_spill] sm:$0xff] %v5057_v48  ;;  %3752 = vmatmul.mubr.f32.gmra.mxu0 %v5057_v48 }
 0x40f   : > { %3805 = vmatpush3.msra.mxu0 %v4875_v42  ;;  %v1365_v42 = vpop.f32.mrf.mxu1 }
 0x410   : > { %2044 = vmax.xlane.f32.xlu0 %v5061_v35  ;;  %3806 = vmatprep.subr.mxu0 %v4892_v47  ;;  %v5146_v27 = vadd.f32 %v1365_v42, %v4828_v28 }
 0x411   : > { %3807 = vmatpush3.msra.mxu0 %v4892_v47  ;;  %v5087_v47 = vpop.f32.mrf.mxu1 }
 0x412   : > { %3808 = vmatprep.subr.mxu0 %v4902_v13  ;;  %6612 = vst [vmem:[#allocation21_spill] sm:$0xff] %v5146_v27 }
 0x413   : > { %3809 = vmatpush3.msra.mxu0 %v4902_v13  ;;  %v5091_v13 = vpop.permute.xlu0 %1488 }
 0x414   : > { %3810 = vmatprep.subr.mxu0 %v4910_v49 }
 0x415   : > { %2050 = vmax.xlane.f32.xlu1 %v5072_v40  ;;  %3811 = vmatpush3.msra.mxu0 %v4910_v49  ;;  %v1371_v49 = vpop.f32.mrf.mxu1 }
 0x416   : > { %3812 = vmatprep.subr.mxu0 %v4917_v50 }
 0x417   : > { %3813 = vmatpush3.msra.mxu0 %v4917_v50  ;;  %v5098_v50 = vadd.f32 %v5012_v15, %v4828_v28  ;;  %v1373_v5 = vpop.f32.mrf.mxu1 }
 0x418   : > { %3814 = vmatprep.subr.mxu0 %v4924_v52 }
 0x419   : > { %3815 = vmatpush3.msra.mxu0 %v4924_v52  ;;  %6607 = vst [vmem:[#allocation16_spill] sm:$0xff] %v5098_v50  ;;  %v5101_v52 = vadd.f32 %v1371_v49, %v4828_v28  ;;  %v1377_v11 = vpop.f32.mrf.mxu1  ;;  %v5169_v49 = vadd.f32 %v5087_v47, %v4840_v33 }
 0x41a   : > { %3816 = vmatprep.subr.mxu0 %v4931_v53 }
 0x41b   : > { %3817 = vmatpush3.msra.mxu0 %v4931_v53  ;;  %6608 = vst [vmem:[#allocation17_spill] sm:$0xff] %v5101_v52  ;;  %v5109_v53 = vpop.permute.xlu0 %1490 }
 0x41c   : > { %3818 = vmatprep.subr.mxu0 %v4938_v54 }
 0x41d   : > { %3819 = vmatpush3.msra.mxu0 %v4938_v54 }
 0x41e   : > { %3820 = vmatprep.subr.mxu0 %v4945_v55 }
 0x41f   : > { %3821 = vmatpush3.msra.mxu0 %v4945_v55  ;;  %v5111_v55 = vpop.permute.xlu1 %1492 }
 0x420   : > { %3822 = vmatprep.subr.mxu0 %v4955_v57 }
 0x421   : > { %3823 = vmatpush3.msra.mxu0 %v4955_v57 }
 0x422   : > { %3824 = vmatprep.subr.mxu0 %v4964_v59 }
 0x423   : > { %3825 = vmatpush3.msra.mxu0 %v4964_v59 }
 0x424   : > { %3826 = vmatprep.subr.mxu0 %v4976_v62 }
 0x425   : > { %3827 = vmatpush3.msra.mxu0 %v4976_v62 }
 0x426   : > { %1510 = vrot.lane.b32.xlu1 %v5101_v52, %s4344_s17  ;;  %1502 = vrot.lane.b32.xlu0 %v5098_v50, %s4344_s17 }
 0x42b   : > { %v2037_v54 = vpop.xlane.xlu0 %2036 }
 0x42c   : > { %v2096_v57 = vsub.f32 %v4987_v1, %v2037_v54  ;;  %v1379_v1 = vpop.f32.mrf.mxu1 }
 0x42d   : > { %v5130_v15 = vadd.f32 %v1379_v1, %v4840_v33 }
 0x42e   : > { %v2132_v59 = vmul.f32 1.442695, %v2096_v57  ;;  %v1383_v12 = vpop.f32.mrf.mxu1 }
 0x42f   : > { %v5141_v26 = vpop.permute.xlu0 %1494  ;;  %v5188_v1 = vadd.f32 %v1383_v12, %v4828_v28 }
 0x430   : > { %3927 = vpow2.f32 %v2132_v59  ;;  %v2039_v0 = vpop.xlane.xlu1 %2038  ;;  %v1385_v18 = vpop.f32.mrf.mxu1 }
 0x431   : > { %v2097_v2 = vsub.f32 %v4991_v3, %v2039_v0  ;;  %v5126_v3 = vadd.f32 %v1373_v5, %v4840_v33  ;;  %v5134_v21 = vadd.f32 %v1385_v18, %v4840_v33  ;;  %6617 = vst [vmem:[#allocation26_spill] sm:$0xff] %v5188_v1 }
 0x432   : > { %v1389_v16 = vpop.f32.mrf.mxu1 }
 0x433   : > { %v2134_v4 = vmul.f32 1.442695, %v2097_v2  ;;  %v5150_v51 = vpop.permute.xlu0 %1496  ;;  %v5153_v32 = vadd.f32 %v1389_v16, %v4828_v28  ;;  %v5181_v2 = vadd.f32 %v1377_v11, %v4828_v28 }
 0x434   : > { %v5155_v34 = vpop.permute.xlu1 %1498  ;;  %v1391_v42 = vpop.f32.mrf.mxu1 }
 0x435   : > { %3929 = vpow2.f32 %v2134_v4  ;;  %6613 = vst [vmem:[#allocation22_spill] sm:$0xff] %v5153_v32  ;;  %6616 = vst [vmem:[#allocation25_spill] sm:$0xff] %v5181_v2 }
 0x43d   : > { %v5115_v62 = vpop.eup %3927 }
 0x43e   : > { %6609 = vst [vmem:[#allocation18_spill] sm:$0xff] %v5115_v62  ;;  %3754 = vmatprep.mubr.f32.mxu0 %v5115_v62 }
 0x442   : > { %v5118_v6 = vpop.eup %3929 }
 0x443   : > { %6610 = vst [vmem:[#allocation19_spill] sm:$0xff] %v5118_v6  ;;  %3755 = vmatmul.mubr.f32.gmra.mxu0 %v5118_v6 }
 0x445   : > { %2048 = vmax.xlane.f32.xlu0 %v5121_v10 }
 0x44a   : > { %2054 = vmax.xlane.f32.xlu1 %v5126_v3 }
 0x44e   : > { %2056 = vmax.xlane.f32.xlu1 %v5130_v15 }
 0x452   : > { %2058 = vmax.xlane.f32.xlu1 %v5134_v21 }
 0x45b   : > { %1506 = vrot.lane.b32.xlu0 %v5139_v22, %s4344_s17 }
 0x45f   : > { %1508 = vrot.lane.b32.xlu0 %v5146_v27, %s4344_s17 }
 0x463   : > { %1516 = vrot.lane.b32.xlu1 %v5153_v32, %s4344_s17 }
 0x464   : > { %v2041_v37 = vpop.xlane.xlu0 %2040 }
 0x465   : > { %v2098_v41 = vsub.f32 %v5010_v14, %v2041_v37  ;;  %v2043_v39 = vpop.xlane.xlu1 %2042  ;;  %v1395_v14 = vpop.f32.mrf.mxu1 }
 0x466   : > { %v2099_v44 = vsub.f32 %v5015_v17, %v2043_v39 }
 0x467   : > { %v2136_v46 = vmul.f32 1.442695, %v2098_v41  ;;  %v1397_v17 = vpop.f32.mrf.mxu1 }
 0x468   : > { %v2138_v45 = vmul.f32 1.442695, %v2099_v44  ;;  %v5173_v57 = vadd.f32 %v1397_v17, %v4840_v33  ;;  %v5185_v5 = vpop.permute.xlu0 %1500 }
 0x469   : > { %3931 = vpow2.f32 %v2136_v46  ;;  %v1401_v54 = vpop.f32.mrf.mxu1  ;;  %v2047_v47 = vpop.xlane.xlu1 %2046 }
 0x46a   : > { %3933 = vpow2.f32 %v2138_v45  ;;  %v2101_v18 = vsub.f32 %v5020_v19, %v2047_v47 }
 0x46b   : > { %v1403_v59 = vpop.f32.mrf.mxu1 }
 0x46c   : > { %v5177_v0 = vadd.f32 %v1403_v59, %v4840_v33  ;;  %v2142_v39 = vmul.f32 1.442695, %v2101_v18 }
 0x46d   : > { %v1407_v4 = vpop.f32.mrf.mxu1  ;;  %v5218_v47 = vpop.permute.xlu1 %1504 }
 0x46e   : > { %v5194_v11 = vadd.f32 %v1407_v4, %v4828_v28 }
 0x46f   : > { %v1409_v16 = vpop.f32.mrf.mxu1 }
 0x470   : > { %6618 = vst [vmem:[#allocation27_spill] sm:$0xff] %v5194_v11 }
 0x471   : > { %v1413_v46 = vpop.f32.mrf.mxu1 }
 0x472   : > { %v5200_v12 = vadd.f32 %v1413_v46, %v4828_v28 }
 0x473   : > { %v1415_v17 = vpop.f32.mrf.mxu1 }
 0x474   : > { %6619 = vst [vmem:[#allocation28_spill] sm:$0xff] %v5200_v12  ;;  %v5215_v59 = vadd.f32 %v1415_v17, %v4840_v33 }
 0x475   : > { %v1419_v24 = vpop.f32.mrf.mxu1 }
 0x476   : > { %v5161_v36 = vpop.eup %3931 }
 0x477   : > { %6614 = vst [vmem:[#allocation23_spill] sm:$0xff] %v5161_v36  ;;  %v5163_v38 = vpop.eup %3933  ;;  %3757 = vmatprep.mubr.f32.mxu0 %v5161_v36 }
 0x478   : > { %6615 = vst [vmem:[#allocation24_spill] sm:$0xff] %v5163_v38  ;;  %3758 = vmatmul.mubr.f32.gmra.mxu0 %v5163_v38 }
 0x47e   : > { %2052 = vmax.xlane.f32.xlu0 %v5169_v49 }
 0x487   : > { %2062 = vmax.xlane.f32.xlu1 %v5173_v57 }
 0x48b   : > { %2064 = vmax.xlane.f32.xlu1 %v5177_v0 }
 0x494   : > { %1512 = vrot.lane.b32.xlu0 %v5181_v2, %s4344_s17 }
 0x498   : > { %1514 = vrot.lane.b32.xlu0 %v5188_v1, %s4344_s17 }
 0x499   : > { %v2045_v37 = vpop.xlane.xlu0 %2044 }
 0x49a   : > { %v2100_v41 = vsub.f32 %v5061_v35, %v2045_v37  ;;  %v5211_v35 = vadd.f32 %v1391_v42, %v4840_v33  ;;  %v5223_v37 = vadd.f32 %v1395_v14, %v4828_v28  ;;  %v5235_v14 = vadd.f32 %v1419_v24, %v4828_v28  ;;  %v1421_v24 = vpop.f32.mrf.mxu1 }
 0x49c   : > { %v2140_v44 = vmul.f32 1.442695, %v2100_v41  ;;  %1522 = vrot.lane.b32.xlu1 %v5194_v11, %s4344_s17  ;;  %6622 = vst [vmem:[#allocation31_spill] sm:$0xff] %v5223_v37  ;;  %6624 = vst [vmem:[#allocation33_spill] sm:$0xff] %v5235_v14 }
 0x49d   : > { %v5220_v18 = vpop.permute.xlu0 %1502 }
 0x49e   : > { %3935 = vpow2.f32 %v2140_v44  ;;  %v2051_v4 = vpop.xlane.xlu1 %2050 }
 0x49f   : > { %3937 = vpow2.f32 %v2142_v39  ;;  %v2103_v41 = vsub.f32 %v5072_v40, %v2051_v4  ;;  %v5229_v39 = vadd.f32 %v1401_v54, %v4828_v28 }
 0x4a0   : > { %1524 = vrot.lane.b32.xlu1 %v5200_v12, %s4344_s17 }
 0x4a1   : > { %6623 = vst [vmem:[#allocation32_spill] sm:$0xff] %v5229_v39  ;;  %v2146_v46 = vmul.f32 1.442695, %v2103_v41  ;;  %v5252_v41 = vadd.f32 %v1421_v24, %v4840_v33 }
 0x4a2   : > { %v5249_v4 = vpop.permute.xlu1 %1510 }
 0x4ab   : > { %v5204_v19 = vpop.eup %3935 }
 0x4ac   : > { %6620 = vst [vmem:[#allocation29_spill] sm:$0xff] %v5204_v19  ;;  %v5206_v45 = vpop.eup %3937  ;;  %3760 = vmatprep.mubr.f32.mxu0 %v5204_v19 }
 0x4ad   : > { %6621 = vst [vmem:[#allocation30_spill] sm:$0xff] %v5206_v45  ;;  %3761 = vmatmul.mubr.f32.gmra.mxu0 %v5206_v45 }
 0x4b7   : > { %2060 = vmax.xlane.f32.xlu0 %v5211_v35 }
 0x4c4   : > { %2068 = vmax.xlane.f32.xlu1 %v5215_v59 }
 0x4cd   : > { %1518 = vrot.lane.b32.xlu0 %v5223_v37, %s4344_s17 }
 0x4ce   : > { %v2049_v42 = vpop.xlane.xlu0 %2048 }
 0x4cf   : > { %v2102_v44 = vsub.f32 %v5121_v10, %v2049_v42  ;;  %v5246_v10 = vadd.f32 %v1409_v16, %v4840_v33 }
 0x4d1   : > { %v2144_v17 = vmul.f32 1.442695, %v2102_v44  ;;  %1520 = vrot.lane.b32.xlu0 %v5229_v39, %s4344_s17 }
 0x4d2   : > { %v5255_v44 = vpop.permute.xlu0 %1506 }
 0x4d3   : > { %3939 = vpow2.f32 %v2144_v17  ;;  %v2055_v42 = vpop.xlane.xlu1 %2054 }
 0x4d4   : > { %3941 = vpow2.f32 %v2146_v46  ;;  %v1425_v46 = vpop.f32.mrf.mxu1 }
 0x4d5   : > { %1526 = vrot.lane.b32.xlu1 %v5235_v14, %s4344_s17  ;;  %v5260_v16 = vadd.f32 %v1425_v46, %v4828_v28 }
 0x4d6   : > { %v1427_v45 = vpop.f32.mrf.mxu1 }
 0x4d7   : > { %v2057_v17 = vpop.xlane.xlu1 %2056  ;;  %6627 = vst [vmem:[#allocation36_spill] sm:$0xff] %v5260_v16 }
 0x4d8   : > { %v2106_v19 = vsub.f32 %v5130_v15, %v2057_v17  ;;  %v1431_v24 = vpop.f32.mrf.mxu1 }
 0x4d9   : > { %v5267_v6 = vadd.f32 %v1431_v24, %v4828_v28 }
 0x4da   : > { %v2152_v46 = vmul.f32 1.442695, %v2106_v19 }
 0x4db   : > { %v2059_v38 = vpop.xlane.xlu1 %2058  ;;  %6628 = vst [vmem:[#allocation37_spill] sm:$0xff] %v5267_v6 }
 0x4dc   : > { %v2107_v63 = vsub.f32 %v5134_v21, %v2059_v38 }
 0x4df   : > { %v5296_v19 = vpop.permute.xlu1 %1516 }
 0x4e0   : > { %v5239_v40 = vpop.eup %3939 }
 0x4e1   : > { %6625 = vst [vmem:[#allocation34_spill] sm:$0xff] %v5239_v40  ;;  %v5241_v54 = vpop.eup %3941  ;;  %3763 = vmatprep.mubr.f32.mxu0 %v5239_v40  ;;  %v2105_v40 = vsub.f32 %v5126_v3, %v2055_v42  ;;  %v2154_v3 = vmul.f32 1.442695, %v2107_v63  ;;  %v5286_v63 = vadd.f32 %v1427_v45, %v4840_v33 }
 0x4e2   : > { %6626 = vst [vmem:[#allocation35_spill] sm:$0xff] %v5241_v54  ;;  %3764 = vmatmul.mubr.f32.gmra.mxu0 %v5241_v54  ;;  %v5257_v54 = vpop.permute.xlu0 %1508 }
 0x4e3   : > { %v2150_v48 = vmul.f32 1.442695, %v2105_v40 }
 0x4f0   : > { %2066 = vmax.xlane.f32.xlu0 %v5246_v10 }
 0x4f9   : > { %2070 = vmax.xlane.f32.xlu1 %v5252_v41 }
 0x506   : > { %1528 = vrot.lane.b32.xlu0 %v5260_v16, %s4344_s17 }
 0x507   : > { %v2053_v36 = vpop.xlane.xlu0 %2052 }
 0x508   : > { %v2104_v62 = vsub.f32 %v5169_v49, %v2053_v36 }
 0x50a   : > { %v2148_v43 = vmul.f32 1.442695, %v2104_v62  ;;  %1530 = vrot.lane.b32.xlu1 %v5267_v6, %s4344_s17 }
 0x50b   : > { %v5299_v40 = vpop.permute.xlu0 %1512 }
 0x50c   : > { %3943 = vpow2.f32 %v2148_v43  ;;  %v1433_v43 = vpop.f32.mrf.mxu1 }
 0x50d   : > { %3945 = vpow2.f32 %v2150_v48  ;;  %v5290_v21 = vadd.f32 %v1433_v43, %v4840_v33 }
 0x50e   : > { %3947 = vpow2.f32 %v2152_v46  ;;  %v1437_v48 = vpop.f32.mrf.mxu1 }
 0x50f   : > { %3949 = vpow2.f32 %v2154_v3  ;;  %v5302_v17 = vadd.f32 %v1437_v48, %v4828_v28  ;;  %v5306_v24 = vpop.permute.xlu0 %1514 }
 0x510   : > { %v1439_v38 = vpop.f32.mrf.mxu1  ;;  %v2063_v45 = vpop.xlane.xlu1 %2062 }
 0x511   : > { %v5294_v49 = vadd.f32 %v1439_v38, %v4840_v33  ;;  %6633 = vst [vmem:[#allocation42_spill] sm:$0xff] %v5302_v17  ;;  %v2109_v3 = vsub.f32 %v5173_v57, %v2063_v45 }
 0x512   : > { %v1443_v38 = vpop.f32.mrf.mxu1 }
 0x514   : > { %v2065_v46 = vpop.xlane.xlu1 %2064 }
 0x515   : > { %v2110_v43 = vsub.f32 %v5177_v0, %v2065_v46 }
 0x517   : > { %v2160_v48 = vmul.f32 1.442695, %v2110_v43 }
 0x518   : > { %v5333_v46 = vpop.permute.xlu1 %1522 }
 0x519   : > { %v5273_v15 = vpop.eup %3943  ;;  %6638 = vst [vmem:[#allocation47_spill] sm:$0xff] %v5333_v46 }
 0x51a   : > { %6629 = vst [vmem:[#allocation38_spill] sm:$0xff] %v5273_v15  ;;  %v5275_v42 = vpop.eup %3945  ;;  %3766 = vmatprep.mubr.f32.mxu0 %v5273_v15  ;;  %v2158_v15 = vmul.f32 1.442695, %v2109_v3 }
 0x51b   : > { %6630 = vst [vmem:[#allocation39_spill] sm:$0xff] %v5275_v42  ;;  %v5278_v36 = vpop.eup %3947  ;;  %3767 = vmatmul.mubr.f32.gmra.mxu0 %v5275_v42 }
 0x51c   : > { %6631 = vst [vmem:[#allocation40_spill] sm:$0xff] %v5278_v36  ;;  %3769 = vmatprep.mubr.f32.mxu0 %v5278_v36  ;;  %v5282_v62 = vpop.eup %3949  ;;  %v5311_v36 = vadd.f32 %v1443_v38, %v4828_v28 }
 0x51d   : > { %6632 = vst [vmem:[#allocation41_spill] sm:$0xff] %v5282_v62 }
 0x51e   : > { %6634 = vst [vmem:[#allocation43_spill] sm:$0xff] %v5311_v36 }
 0x51f   : > { %3770 = vmatmul.mubr.f32.gmra.mxu0 %v5282_v62 }
 0x525   : > { %2072 = vmax.xlane.f32.xlu0 %v5286_v63 }
 0x52e   : > { %2074 = vmax.xlane.f32.xlu1 %v5290_v21 }
 0x532   : > { %2076 = vmax.xlane.f32.xlu1 %v5294_v49 }
 0x53b   : > { %1532 = vrot.lane.b32.xlu0 %v5302_v17, %s4344_s17 }
 0x540   : > { %v2061_v62 = vpop.xlane.xlu0 %2060 }
 0x541   : > { %v2108_v42 = vsub.f32 %v5211_v35, %v2061_v62  ;;  %v1445_v35 = vpop.f32.mrf.mxu1 }
 0x543   : > { %v2156_v58 = vmul.f32 1.442695, %v2108_v42  ;;  %1534 = vrot.lane.b32.xlu1 %v5311_v36, %s4344_s17  ;;  %v5326_v42 = vadd.f32 %v1445_v35, %v4840_v33 }
 0x544   : > { %v5338_v38 = vpop.permute.xlu0 %1518 }
 0x545   : > { %3951 = vpow2.f32 %v2156_v58  ;;  %v1449_v58 = vpop.f32.mrf.mxu1  ;;  %6640 = vst [vmem:[#allocation49_spill] sm:$0xff] %v5338_v38 }
 0x546   : > { %3953 = vpow2.f32 %v2158_v15  ;;  %v5336_v43 = vadd.f32 %v1449_v58, %v4828_v28 }
 0x547   : > { %3955 = vpow2.f32 %v2160_v48  ;;  %v1451_v15 = vpop.f32.mrf.mxu1  ;;  %v5340_v48 = vpop.permute.xlu1 %1524 }
 0x548   : > { %v5330_v62 = vadd.f32 %v1451_v15, %v4840_v33  ;;  %6639 = vst [vmem:[#allocation48_spill] sm:$0xff] %v5336_v43 }
 0x549   : > { %v1455_v45 = vpop.f32.mrf.mxu1 }
 0x54a   : > { %v5352_v58 = vadd.f32 %v1455_v45, %v4828_v28 }
 0x54b   : > { %v1457_v3 = vpop.f32.mrf.mxu1 }
 0x54c   : > { %6642 = vst [vmem:[#allocation51_spill] sm:$0xff] %v5352_v58 }
 0x54d   : > { %v1461_v35 = vpop.f32.mrf.mxu1 }
 0x54e   : > { %v5345_v15 = vadd.f32 %v1461_v35, %v4828_v28 }
 0x550   : > { %6641 = vst [vmem:[#allocation50_spill] sm:$0xff] %v5345_v15 }
 0x552   : > { %v5316_v6 = vpop.eup %3951 }
 0x553   : > { %6635 = vst [vmem:[#allocation44_spill] sm:$0xff] %v5316_v6  ;;  %v5318_v57 = vpop.eup %3953  ;;  %3772 = vmatprep.mubr.f32.mxu0 %v5316_v6 }
 0x554   : > { %6636 = vst [vmem:[#allocation45_spill] sm:$0xff] %v5318_v57  ;;  %v5321_v0 = vpop.eup %3955  ;;  %3773 = vmatmul.mubr.f32.gmra.mxu0 %v5318_v57  ;;  %v5349_v57 = vpop.permute.xlu0 %1520 }
 0x555   : > { %6637 = vst [vmem:[#allocation46_spill] sm:$0xff] %v5321_v0  ;;  %3775 = vmatprep.mubr.f32.mxu0 %v5321_v0  ;;  %v2069_v0 = vpop.xlane.xlu1 %2068 }
 0x556   : > { %v2112_v6 = vsub.f32 %v5215_v59, %v2069_v0 }
 0x558   : > { %v2164_v11 = vmul.f32 1.442695, %v2112_v6 }
 0x559   : > { %v5358_v46 = vpop.permute.xlu1 %1526 }
 0x55a   : > { %2078 = vmax.xlane.f32.xlu0 %v5326_v42  ;;  %6643 = vst [vmem:[#allocation52_spill] sm:$0xff] %v5358_v46 }
 0x567   : > { %2080 = vmax.xlane.f32.xlu1 %v5330_v62 }
 0x570   : > { %1536 = vrot.lane.b32.xlu0 %v5336_v43, %s4344_s17 }
 0x574   : > { %1540 = vrot.lane.b32.xlu0 %v5345_v15, %s4344_s17 }
 0x578   : > { %1538 = vrot.lane.b32.xlu1 %v5352_v58, %s4344_s17 }
 0x579   : > { %v2067_v36 = vpop.xlane.xlu0 %2066 }
 0x57a   : > { %v2111_v14 = vsub.f32 %v5246_v10, %v2067_v36  ;;  %v1463_v10 = vpop.f32.mrf.mxu1 }
 0x57b   : > { %v5368_v6 = vadd.f32 %v1463_v10, %v4840_v33 }
 0x57c   : > { %v2162_v35 = vmul.f32 1.442695, %v2111_v14 }
 0x57e   : > { %3957 = vpow2.f32 %v2162_v35  ;;  %v5385_v35 = vpop.permute.xlu0 %1528 }
 0x57f   : > { %3959 = vpow2.f32 %v2164_v11 }
 0x582   : > { %v2071_v37 = vpop.xlane.xlu1 %2070 }
 0x583   : > { %v2113_v38 = vsub.f32 %v5252_v41, %v2071_v37  ;;  %v1467_v37 = vpop.f32.mrf.mxu1 }
 0x584   : > { %v5388_v10 = vadd.f32 %v1467_v37, %v4828_v28 }
 0x585   : > { %v2166_v1 = vmul.f32 1.442695, %v2113_v38  ;;  %v1469_v14 = vpop.f32.mrf.mxu1 }
 0x586   : > { %6648 = vst [vmem:[#allocation57_spill] sm:$0xff] %v5388_v10 }
 0x587   : > { %3961 = vpow2.f32 %v2166_v1  ;;  %v5375_v1 = vadd.f32 %v1457_v3, %v4840_v33  ;;  %v1473_v41 = vpop.f32.mrf.mxu1 }
 0x588   : > { %v5381_v0 = vadd.f32 %v1473_v41, %v4828_v28 }
 0x589   : > { %v5378_v36 = vpop.f32.mrf.mxu1 }
 0x58a   : > { %6647 = vst [vmem:[#allocation56_spill] sm:$0xff] %v5381_v0 }
 0x58b   : > { %v5361_v45 = vpop.eup %3957  ;;  %v1479_v38 = vpop.f32.mrf.mxu1 }
 0x58c   : > { %6644 = vst [vmem:[#allocation53_spill] sm:$0xff] %v5361_v45  ;;  %v5363_v59 = vpop.eup %3959  ;;  %3776 = vmatmul.mubr.f32.gmra.mxu0 %v5361_v45  ;;  %v5391_v3 = vadd.f32 %v1479_v38, %v4828_v28  ;;  %v5404_v28 = vpop.permute.xlu1 %1530 }
 0x58d   : > { %6645 = vst [vmem:[#allocation54_spill] sm:$0xff] %v5363_v59  ;;  %3778 = vmatprep.mubr.f32.mxu0 %v5363_v59 }
 0x58e   : > { %6649 = vst [vmem:[#allocation58_spill] sm:$0xff] %v5391_v3 }
 0x593   : > { %2084 = vmax.xlane.f32.xlu0 %v5368_v6 }
 0x594   : > { %v5371_v11 = vpop.eup %3961 }
 0x595   : > { %6646 = vst [vmem:[#allocation55_spill] sm:$0xff] %v5371_v11  ;;  %3779 = vmatmul.mubr.f32.gmra.mxu0 %v5371_v11  ;;  %v5399_v11 = vmax.f32 %v4831_v29, %v5023_v20 }
 0x59c   : > { %2082 = vmax.xlane.f32.xlu1 %v5375_v1 }
 0x5a9   : > { %1544 = vrot.lane.b32.xlu0 %v5381_v0, %s4344_s17 }
 0x5ad   : > { %1542 = vrot.lane.b32.xlu1 %v5388_v10, %s4344_s17  ;;  %1546 = vrot.lane.b32.xlu0 %v5391_v3, %s4344_s17 }
 0x5ae   : > { %v2073_v41 = vpop.xlane.xlu0 %2072 }
 0x5af   : > { %v2114_v59 = vsub.f32 %v5286_v63, %v2073_v41  ;;  %v1481_v63 = vpop.f32.mrf.mxu1 }
 0x5b0   : > { %v5414_v41 = vadd.f32 %v1481_v63, %v4840_v33 }
 0x5b1   : > { %v2168_v45 = vmul.f32 1.442695, %v2114_v59  ;;  %1580 = vrot.lane.b32.xlu1 %v5399_v11, %s4345_s14 }
 0x5b3   : > { %3963 = vpow2.f32 %v2168_v45  ;;  %v5427_v45 = vmax.f32 %v4948_v56, %v5091_v13  ;;  %v5446_v13 = vmax.f32 %v5005_v9, %v5150_v51 }
 0x5b7   : > { %v2075_v37 = vpop.xlane.xlu1 %2074 }
 0x5b8   : > { %v2115_v38 = vsub.f32 %v5290_v21, %v2075_v37  ;;  %v5437_v37 = vmax.f32 %v4970_v61, %v5111_v55 }
 0x5ba   : > { %v2170_v10 = vmul.f32 1.442695, %v2115_v38 }
 0x5bb   : > { %v2077_v3 = vpop.xlane.xlu1 %2076 }
 0x5bc   : > { %3965 = vpow2.f32 %v2170_v10  ;;  %v2116_v58 = vsub.f32 %v5294_v49, %v2077_v3  ;;  %v5422_v49 = vadd.f32 %v1469_v14, %v4840_v33  ;;  %v5433_v3 = vmax.f32 %v4836_v31, %v5036_v30 }
 0x5bd   : > { %v5452_v30 = vmax.f32 %v5026_v23, %v5185_v5  ;;  %v5467_v5 = vmax.f32 %v5146_v27, %v5257_v54  ;;  %v5488_v54 = vmax.f32 %v5229_v39, %v5349_v57  ;;  %v5507_v57 = vmax.f32 %v5260_v16, %v5385_v35 }
 0x5be   : > { %v2172_v20 = vmul.f32 1.442695, %v2116_v58  ;;  %v1533_v58 = vpop.permute.xlu0 %1532  ;;  %v5529_v35 = vmax.f32 %v4967_v60, %v5109_v53 }
 0x5bf   : > { %v5454_v55 = vpop.permute.xlu1 %1534 }
 0x5c0   : > { %v5408_v46 = vpop.eup %3963  ;;  %3967 = vpow2.f32 %v2172_v20 }
 0x5c1   : > { %6650 = vst [vmem:[#allocation59_spill] sm:$0xff] %v5408_v46  ;;  %3781 = vmatprep.mubr.f32.mxu0 %v5408_v46 }
 0x5c9   : > { %v5411_v59 = vpop.eup %3965 }
 0x5ca   : > { %6651 = vst [vmem:[#allocation60_spill] sm:$0xff] %v5411_v59  ;;  %3782 = vmatmul.mubr.f32.gmra.mxu0 %v5411_v59 }
 0x5cc   : > { %2090 = vmax.xlane.f32.xlu0 %v5414_v41 }
 0x5cd   : > { %v5418_v21 = vpop.eup %3967 }
 0x5ce   : > { %6652 = vst [vmem:[#allocation61_spill] sm:$0xff] %v5418_v21  ;;  %3784 = vmatprep.mubr.f32.mxu0 %v5418_v21 }
 0x5d5   : > { %2086 = vmax.xlane.f32.xlu1 %v5422_v49 }
 0x5e2   : > { %1584 = vrot.lane.b32.xlu0 %v5427_v45, %s4345_s14 }
 0x5e3   : > { %v2079_v10 = vpop.xlane.xlu0 %2078 }
 0x5e4   : > { %v2117_v14 = vsub.f32 %v5326_v42, %v2079_v10  ;;  %v5460_v42 = vmax.f32 %v5029_v25, %v5218_v47  ;;  %v5476_v47 = vmax.f32 %v5181_v2, %v5299_v40  ;;  %v5497_v40 = vmax.f32 %v5200_v12, %v5340_v48 }
 0x5e5   : > { %v5513_v48 = vmax.f32 %v5302_v17, %v1533_v58 }
 0x5e6   : > { %v2174_v38 = vmul.f32 1.442695, %v2117_v14  ;;  %1582 = vrot.lane.b32.xlu1 %v5433_v3, %s4345_s14  ;;  %1588 = vrot.lane.b32.xlu0 %v5437_v37, %s4345_s14 }
 0x5e8   : > { %3969 = vpow2.f32 %v2174_v38  ;;  %v1537_v38 = vpop.permute.xlu0 %1536 }
 0x5ea   : > { %1592 = vrot.lane.b32.xlu0 %v5446_v13, %s4345_s14 }
 0x5ee   : > { %1596 = vrot.lane.b32.xlu0 %v5452_v30, %s4345_s14 }
 0x5f0   : > { %v2081_v20 = vpop.xlane.xlu1 %2080 }
 0x5f1   : > { %v2118_v51 = vsub.f32 %v5330_v62, %v2081_v20  ;;  %v5482_v62 = vmax.f32 %v5153_v32, %v5296_v19  ;;  %v5503_v19 = vadd.f32 %v5378_v36, %v4840_v33  ;;  %v5518_v20 = vmax.f32 %v5336_v43, %v1537_v38  ;;  %v1541_v33 = vpop.permute.xlu0 %1540 }
 0x5f2   : > { %1600 = vrot.lane.b32.xlu0 %v5460_v42, %s4345_s14  ;;  %v5523_v36 = vmax.f32 %v5345_v15, %v1541_v33  ;;  %v5541_v38 = vmax.f32 %v4998_v8, %v5155_v34 }
 0x5f3   : > { %v2176_v63 = vmul.f32 1.442695, %v2118_v51  ;;  %v5535_v51 = vmax.f32 %v4995_v7, %v5141_v26  ;;  %v5553_v26 = vmax.f32 %v5098_v50, %v5220_v18  ;;  %v5566_v18 = vmax.f32 %v5101_v52, %v5249_v4  ;;  %v6657_v4 = vld [vmem:[#allocation31_spill] sm:$0xff] }
 0x5f4   : > { %v1539_v33 = vpop.permute.xlu1 %1538 }
 0x5f5   : > { %v5469_v10 = vpop.eup %3969  ;;  %3971 = vpow2.f32 %v2176_v63 }
 0x5f6   : > { %6653 = vst [vmem:[#allocation62_spill] sm:$0xff] %v5469_v10  ;;  %1604 = vrot.lane.b32.xlu0 %v5467_v5, %s4345_s14  ;;  %3785 = vmatmul.mubr.f32.gmra.mxu0 %v5469_v10 }
 0x5fa   : > { %1608 = vrot.lane.b32.xlu0 %v5476_v47, %s4345_s14 }
 0x5fe   : > { %1612 = vrot.lane.b32.xlu0 %v5482_v62, %s4345_s14 }
 0x602   : > { %v5490_v14 = vpop.eup %3971  ;;  %1616 = vrot.lane.b32.xlu0 %v5488_v54, %s4345_s14 }
 0x603   : > { %6654 = vst [vmem:[#allocation63_spill] sm:$0xff] %v5490_v14  ;;  %3787 = vmatprep.mubr.f32.mxu0 %v5490_v14 }
 0x606   : > { %1620 = vrot.lane.b32.xlu0 %v5497_v40, %s4345_s14 }
 0x60a   : > { %2088 = vmax.xlane.f32.xlu1 %v5503_v19  ;;  %1624 = vrot.lane.b32.xlu0 %v5507_v57, %s4345_s14 }
 0x60e   : > { %1628 = vrot.lane.b32.xlu0 %v5513_v48, %s4345_s14 }
 0x612   : > { %1632 = vrot.lane.b32.xlu0 %v5518_v20, %s4345_s14 }
 0x616   : > { %1636 = vrot.lane.b32.xlu0 %v5523_v36, %s4345_s14 }
 0x61b   : > { %1586 = vrot.lane.b32.xlu1 %v5529_v35, %s4345_s14 }
 0x61c   : > { %v2085_v58 = vpop.xlane.xlu0 %2084 }
 0x61d   : > { %v2120_v10 = vsub.f32 %v5368_v6, %v2085_v58  ;;  %v5560_v6 = vmax.f32 %v5139_v22, %v5255_v44  ;;  %v6655_v44 = vld [vmem:[#allocation26_spill] sm:$0xff] }
 0x61f   : > { %1590 = vrot.lane.b32.xlu1 %v5535_v51, %s4345_s14  ;;  %v2180_v21 = vmul.f32 1.442695, %v2120_v10 }
 0x620   : > { %v1545_v63 = vpop.permute.xlu0 %1544 }
 0x621   : > { %v5544_v53 = vmax.f32 %v5381_v0, %v1545_v63 }
 0x623   : > { %1594 = vrot.lane.b32.xlu1 %v5541_v38, %s4345_s14  ;;  %1640 = vrot.lane.b32.xlu0 %v5544_v53, %s4345_s14 }
 0x625   : > { %v2083_v14 = vpop.xlane.xlu1 %2082 }
 0x626   : > { %v2119_v34 = vsub.f32 %v5375_v1, %v2083_v14 }
 0x627   : > { %1598 = vrot.lane.b32.xlu1 %v5553_v26, %s4345_s14 }
 0x628   : > { %v2178_v63 = vmul.f32 1.442695, %v2119_v34  ;;  %v5574_v34 = vmax.f32 %v6655_v44, %v5306_v24  ;;  %v6661_v24 = vld [vmem:[#allocation47_spill] sm:$0xff] }
 0x629   : > { %v1543_v58 = vpop.permute.xlu1 %1542 }
 0x62a   : > { %3973 = vpow2.f32 %v2178_v63  ;;  %v6656_v63 = vld [vmem:[#allocation49_spill] sm:$0xff] }
 0x62b   : > { %3975 = vpow2.f32 %v2180_v21  ;;  %1602 = vrot.lane.b32.xlu1 %v5560_v6, %s4345_s14  ;;  %v5580_v59 = vmax.f32 %v6657_v4, %v6656_v63 }
 0x62d   : > { %v1581_v1 = vpop.permute.xlu1 %1580  ;;  %6658 = vst [vmem:[#allocation49_spill] sm:$0xff] %v5580_v59 }
 0x62e   : > { %v1644_v10 = vmax.f32 %v5399_v11, %v1581_v1  ;;  %v6662_v1 = vld [vmem:[#allocation27_spill] sm:$0xff] }
 0x62f   : > { %1606 = vrot.lane.b32.xlu1 %v5566_v18, %s4345_s14 }
 0x630   : > { %v1676_v14 = vsub.f32 %v4831_v29, %v1644_v10  ;;  %v5591_v10 = vmax.f32 %v6662_v1, %v6661_v24  ;;  %v6670_v24 = vld [vmem:[#allocation43_spill] sm:$0xff] }
 0x632   : > { %v1708_v21 = vmul.f32 1.442695, %v1676_v14  ;;  %6663 = vst [vmem:[#allocation47_spill] sm:$0xff] %v5591_v10  ;;  %v6664_v14 = vld [vmem:[#allocation52_spill] sm:$0xff] }
 0x633   : > { %1610 = vrot.lane.b32.xlu1 %v5574_v34, %s4345_s14 }
 0x634   : > { %3977 = vpow2.f32 %v1708_v21  ;;  %v6665_v21 = vld [vmem:[#allocation33_spill] sm:$0xff] }
 0x635   : > { %v5598_v63 = vmax.f32 %v6665_v21, %v6664_v14  ;;  %v6672_v14 = vld [vmem:[#allocation51_spill] sm:$0xff] }
 0x636   : > { %v5619_v21 = vmax.f32 %v6672_v14, %v1539_v33 }
 0x637   : > { %v5582_v46 = vpop.eup %3973  ;;  %1614 = vrot.lane.b32.xlu1 %v5580_v59, %s4345_s14  ;;  %6666 = vst [vmem:[#allocation52_spill] sm:$0xff] %v5598_v63 }
 0x638   : > { %6659 = vst [vmem:[#allocation64_spill] sm:$0xff] %v5582_v46  ;;  %v5586_v11 = vpop.eup %3975  ;;  %3788 = vmatmul.mubr.f32.gmra.mxu0 %v5582_v46  ;;  %v6668_v46 = vld [vmem:[#allocation37_spill] sm:$0xff]  ;;  %6673 = vst [vmem:[#allocation69_spill] sm:$0xff] %v5619_v21 }
 0x639   : > { %6660 = vst [vmem:[#allocation65_spill] sm:$0xff] %v5586_v11  ;;  %3790 = vmatprep.mubr.f32.mxu0 %v5586_v11  ;;  %v5606_v4 = vmax.f32 %v6668_v46, %v5404_v28  ;;  %v5614_v11 = vmax.f32 %v6670_v24, %v5454_v55  ;;  %v6674_v28 = vld [vmem:[#allocation57_spill] sm:$0xff] }
 0x63a   : > { %v5624_v46 = vmax.f32 %v6674_v28, %v1543_v58 }
 0x63b   : > { %1618 = vrot.lane.b32.xlu1 %v5591_v10, %s4345_s14  ;;  %6669 = vst [vmem:[#allocation67_spill] sm:$0xff] %v5606_v4  ;;  %6671 = vst [vmem:[#allocation68_spill] sm:$0xff] %v5614_v11 }
 0x63c   : > { %6675 = vst [vmem:[#allocation70_spill] sm:$0xff] %v5624_v46 }
 0x63f   : > { %1622 = vrot.lane.b32.xlu1 %v5598_v63, %s4345_s14 }
 0x641   : > { %v5602_v29 = vpop.eup %3977 }
 0x642   : > { %6667 = vst [vmem:[#allocation66_spill] sm:$0xff] %v5602_v29  ;;  %1772 = vrot.lane.b32.xlu0 %v5602_v29, %s4344_s17  ;;  %v1547_v29 = vpop.permute.xlu0 %1546 }
 0x643   : > { %1626 = vrot.lane.b32.xlu1 %v5606_v4, %s4345_s14  ;;  %v6676_v4 = vld [vmem:[#allocation58_spill] sm:$0xff] }
 0x644   : > { %v5629_v63 = vmax.f32 %v6676_v4, %v1547_v29 }
 0x646   : > { %6677 = vst [vmem:[#allocation71_spill] sm:$0xff] %v5629_v63 }
 0x647   : > { %1630 = vrot.lane.b32.xlu1 %v5614_v11, %s4345_s14 }
 0x64b   : > { %1634 = vrot.lane.b32.xlu1 %v5619_v21, %s4345_s14 }
 0x64f   : > { %1638 = vrot.lane.b32.xlu1 %v5624_v46, %s4345_s14 }
 0x653   : > { %1642 = vrot.lane.b32.xlu1 %v5629_v63, %s4345_s14 }
 0x655   : > { %v5633_v55 = vpop.xlane.xlu0 %2090 }
 0x659   : > { %v1585_v33 = vpop.permute.xlu0 %1584 }
 0x65a   : > { %v1646_v14 = vmax.f32 %v5427_v45, %v1585_v33 }
 0x65c   : > { %v1678_v21 = vsub.f32 %v4948_v56, %v1646_v14 }
 0x65d   : > { %v1589_v24 = vpop.permute.xlu0 %1588 }
 0x65e   : > { %v1712_v58 = vmul.f32 1.442695, %v1678_v21  ;;  %v1648_v28 = vmax.f32 %v5437_v37, %v1589_v24  ;;  %v2087_v11 = vpop.xlane.xlu1 %2086 }
 0x65f   : > { %v2121_v46 = vsub.f32 %v5422_v49, %v2087_v11 }
 0x660   : > { %3979 = vpow2.f32 %v1712_v58  ;;  %v1680_v29 = vsub.f32 %v4970_v61, %v1648_v28 }
 0x661   : > { %v2182_v4 = vmul.f32 1.442695, %v2121_v46  ;;  %v1593_v1 = vpop.permute.xlu0 %1592 }
 0x662   : > { %v1716_v63 = vmul.f32 1.442695, %v1680_v29  ;;  %v1650_v10 = vmax.f32 %v5446_v13, %v1593_v1  ;;  %v1583_v59 = vpop.permute.xlu1 %1582 }
 0x663   : > { %3981 = vpow2.f32 %v2182_v4  ;;  %v1645_v45 = vmax.f32 %v5433_v3, %v1583_v59 }
 0x664   : > { %3983 = vpow2.f32 %v1716_v63  ;;  %v1682_v21 = vsub.f32 %v5005_v9, %v1650_v10 }
 0x665   : > { %v1677_v37 = vsub.f32 %v4836_v31, %v1645_v45  ;;  %v1597_v24 = vpop.permute.xlu0 %1596 }
 0x666   : > { %v1720_v14 = vmul.f32 1.442695, %v1682_v21  ;;  %v1652_v49 = vmax.f32 %v5452_v30, %v1597_v24 }
 0x667   : > { %v1710_v11 = vmul.f32 1.442695, %v1677_v37 }
 0x668   : > { %3985 = vpow2.f32 %v1720_v14  ;;  %v1684_v46 = vsub.f32 %v5026_v23, %v1652_v49 }
 0x669   : > { %3987 = vpow2.f32 %v1710_v11  ;;  %v1601_v28 = vpop.permute.xlu0 %1600 }
 0x66a   : > { %v1724_v13 = vmul.f32 1.442695, %v1684_v46  ;;  %v1654_v4 = vmax.f32 %v5460_v42, %v1601_v28 }
 0x66c   : > { %3989 = vpow2.f32 %v1724_v13  ;;  %v1686_v59 = vsub.f32 %v5029_v25, %v1654_v4 }
 0x66d   : > { %v5648_v3 = vpop.eup %3979  ;;  %v1605_v1 = vpop.permute.xlu0 %1604 }
 0x66e   : > { %v1728_v10 = vmul.f32 1.442695, %v1686_v59  ;;  %v1656_v63 = vmax.f32 %v5467_v5, %v1605_v1  ;;  %1776 = vrot.lane.b32.xlu0 %v5648_v3, %s4344_s17 }
 0x670   : > { %v5653_v30 = vpop.eup %3981  ;;  %3991 = vpow2.f32 %v1728_v10  ;;  %v1688_v33 = vsub.f32 %v5146_v27, %v1656_v63 }
 0x671   : > { %6678 = vst [vmem:[#allocation72_spill] sm:$0xff] %v5653_v30  ;;  %v5656_v58 = vpop.eup %3983  ;;  %3791 = vmatmul.mubr.f32.gmra.mxu0 %v5653_v30  ;;  %v1609_v42 = vpop.permute.xlu0 %1608 }
 0x672   : > { %v1732_v29 = vmul.f32 1.442695, %v1688_v33  ;;  %v1658_v45 = vmax.f32 %v5476_v47, %v1609_v42  ;;  %1780 = vrot.lane.b32.xlu0 %v5656_v58, %s4344_s17 }
 0x674   : > { %3993 = vpow2.f32 %v1732_v29  ;;  %v1690_v5 = vsub.f32 %v5181_v2, %v1658_v45 }
 0x675   : > { %v5663_v21 = vpop.eup %3985  ;;  %v1613_v37 = vpop.permute.xlu0 %1612 }
 0x676   : > { %v5665_v24 = vpop.eup %3987  ;;  %v1736_v14 = vmul.f32 1.442695, %v1690_v5  ;;  %v1660_v49 = vmax.f32 %v5482_v62, %v1613_v37  ;;  %1784 = vrot.lane.b32.xlu0 %v5663_v21, %s4344_s17 }
 0x677   : > { %1774 = vrot.lane.b32.xlu1 %v5665_v24, %s4344_s17 }
 0x678   : > { %3995 = vpow2.f32 %v1736_v14  ;;  %v1692_v47 = vsub.f32 %v5153_v32, %v1660_v49 }
 0x679   : > { %v5673_v11 = vpop.eup %3989  ;;  %v1617_v46 = vpop.permute.xlu0 %1616 }
 0x67a   : > { %v1740_v28 = vmul.f32 1.442695, %v1692_v47  ;;  %v1662_v13 = vmax.f32 %v5488_v54, %v1617_v46  ;;  %1788 = vrot.lane.b32.xlu0 %v5673_v11, %s4344_s17 }
 0x67c   : > { %3997 = vpow2.f32 %v1740_v28  ;;  %v1694_v62 = vsub.f32 %v5229_v39, %v1662_v13 }
 0x67d   : > { %v5679_v4 = vpop.eup %3991  ;;  %v1621_v59 = vpop.permute.xlu0 %1620 }
 0x67e   : > { %v1744_v1 = vmul.f32 1.442695, %v1694_v62  ;;  %v1664_v10 = vmax.f32 %v5497_v40, %v1621_v59  ;;  %1792 = vrot.lane.b32.xlu0 %v5679_v4, %s4344_s17 }
 0x680   : > { %3999 = vpow2.f32 %v1744_v1  ;;  %v1696_v63 = vsub.f32 %v5200_v12, %v1664_v10 }
 0x681   : > { %v5685_v33 = vpop.eup %3993  ;;  %v1625_v54 = vpop.permute.xlu0 %1624 }
 0x682   : > { %v1748_v42 = vmul.f32 1.442695, %v1696_v63  ;;  %v1666_v29 = vmax.f32 %v5507_v57, %v1625_v54  ;;  %1796 = vrot.lane.b32.xlu0 %v5685_v33, %s4344_s17 }
 0x684   : > { %4001 = vpow2.f32 %v1748_v42  ;;  %v1698_v45 = vsub.f32 %v5260_v16, %v1666_v29  ;;  %v6706_v16 = vld [vmem:[#allocation71_spill] sm:$0xff] }
 0x685   : > { %v5691_v5 = vpop.eup %3995  ;;  %v1629_v40 = vpop.permute.xlu0 %1628 }
 0x686   : > { %v1752_v37 = vmul.f32 1.442695, %v1698_v45  ;;  %v1668_v14 = vmax.f32 %v5513_v48, %v1629_v40  ;;  %1800 = vrot.lane.b32.xlu0 %v5691_v5, %s4344_s17 }
 0x688   : > { %4003 = vpow2.f32 %v1752_v37  ;;  %v1700_v49 = vsub.f32 %v5302_v17, %v1668_v14  ;;  %v6703_v17 = vld [vmem:[#allocation70_spill] sm:$0xff] }
 0x689   : > { %v5697_v47 = vpop.eup %3997  ;;  %v1633_v57 = vpop.permute.xlu0 %1632 }
 0x68a   : > { %v1756_v46 = vmul.f32 1.442695, %v1700_v49  ;;  %v1670_v28 = vmax.f32 %v5518_v20, %v1633_v57  ;;  %1804 = vrot.lane.b32.xlu0 %v5697_v47, %s4344_s17  ;;  %v2123_v20 = vsub.f32 %v5414_v41, %v5633_v55 }
 0x68c   : > { %4005 = vpow2.f32 %v1756_v46  ;;  %v1702_v13 = vsub.f32 %v5336_v43, %v1670_v28  ;;  %v2186_v45 = vmul.f32 1.442695, %v2123_v20 }
 0x68d   : > { %v5703_v62 = vpop.eup %3999  ;;  %v1637_v48 = vpop.permute.xlu0 %1636 }
 0x68e   : > { %6679 = vst [vmem:[#allocation73_spill] sm:$0xff] %v5703_v62  ;;  %v1760_v59 = vmul.f32 1.442695, %v1702_v13  ;;  %v1672_v1 = vmax.f32 %v5523_v36, %v1637_v48  ;;  %1808 = vrot.lane.b32.xlu0 %v5703_v62, %s4344_s17 }
 0x690   : > { %4007 = vpow2.f32 %v1760_v59  ;;  %v1704_v10 = vsub.f32 %v5345_v15, %v1672_v1  ;;  %v6700_v15 = vld [vmem:[#allocation69_spill] sm:$0xff] }
 0x691   : > { %v5709_v63 = vpop.eup %4001 }
 0x692   : > { %6680 = vst [vmem:[#allocation74_spill] sm:$0xff] %v5709_v63  ;;  %v1764_v54 = vmul.f32 1.442695, %v1704_v10  ;;  %1812 = vrot.lane.b32.xlu0 %v5709_v63, %s4344_s17 }
 0x693   : > { %v2089_v42 = vpop.xlane.xlu1 %2088 }
 0x694   : > { %4009 = vpow2.f32 %v1764_v54  ;;  %v2122_v29 = vsub.f32 %v5503_v19, %v2089_v42 }
 0x695   : > { %v5716_v36 = vpop.eup %4003  ;;  %v1641_v40 = vpop.permute.xlu0 %1640 }
 0x696   : > { %6681 = vst [vmem:[#allocation75_spill] sm:$0xff] %v5716_v36  ;;  %v2184_v37 = vmul.f32 1.442695, %v2122_v29  ;;  %v1674_v14 = vmax.f32 %v5544_v53, %v1641_v40  ;;  %1816 = vrot.lane.b32.xlu0 %v5716_v36, %s4344_s17 }
 0x697   : > { %v1587_v49 = vpop.permute.xlu1 %1586 }
 0x698   : > { %4011 = vpow2.f32 %v2184_v37  ;;  %v1706_v41 = vsub.f32 %v5381_v0, %v1674_v14  ;;  %v1647_v55 = vmax.f32 %v5529_v35, %v1587_v49 }
 0x699   : > { %v5723_v57 = vpop.eup %4005  ;;  %4013 = vpow2.f32 %v2186_v45 }
 0x69a   : > { %6682 = vst [vmem:[#allocation76_spill] sm:$0xff] %v5723_v57  ;;  %v1768_v19 = vmul.f32 1.442695, %v1706_v41  ;;  %v1679_v46 = vsub.f32 %v4967_v60, %v1647_v55  ;;  %1820 = vrot.lane.b32.xlu0 %v5723_v57, %s4344_s17 }
 0x69b   : > { %v1591_v28 = vpop.permute.xlu1 %1590 }
 0x69c   : > { %4015 = vpow2.f32 %v1768_v19  ;;  %v1714_v53 = vmul.f32 1.442695, %v1679_v46  ;;  %v1649_v13 = vmax.f32 %v5535_v51, %v1591_v28 }
 0x69d   : > { %v5729_v48 = vpop.eup %4007 }
 0x69e   : > { %6683 = vst [vmem:[#allocation77_spill] sm:$0xff] %v5729_v48  ;;  %4017 = vpow2.f32 %v1714_v53  ;;  %v1681_v59 = vsub.f32 %v4995_v7, %v1649_v13  ;;  %1824 = vrot.lane.b32.xlu0 %v5729_v48, %s4344_s17 }
 0x69f   : > { %v1595_v35 = vpop.permute.xlu1 %1594 }
 0x6a0   : > { %v1718_v1 = vmul.f32 1.442695, %v1681_v59  ;;  %v1651_v10 = vmax.f32 %v5541_v38, %v1595_v35 }
 0x6a1   : > { %v5735_v20 = vpop.eup %4009 }
 0x6a2   : > { %6684 = vst [vmem:[#allocation78_spill] sm:$0xff] %v5735_v20  ;;  %4019 = vpow2.f32 %v1718_v1  ;;  %v1683_v54 = vsub.f32 %v4998_v8, %v1651_v10  ;;  %1828 = vrot.lane.b32.xlu0 %v5735_v20, %s4344_s17 }
 0x6a3   : > { %v1599_v51 = vpop.permute.xlu1 %1598 }
 0x6a4   : > { %v1722_v42 = vmul.f32 1.442695, %v1683_v54  ;;  %v1653_v29 = vmax.f32 %v5553_v26, %v1599_v51  ;;  %v6688_v51 = vld [vmem:[#allocation49_spill] sm:$0xff] }
 0x6a5   : > { %v5741_v45 = vpop.eup %4011 }
 0x6a6   : > { %6685 = vst [vmem:[#allocation79_spill] sm:$0xff] %v5741_v45  ;;  %v5743_v40 = vpop.eup %4013  ;;  %4021 = vpow2.f32 %v1722_v42  ;;  %v1685_v37 = vsub.f32 %v5098_v50, %v1653_v29  ;;  %3793 = vmatprep.mubr.f32.mxu0 %v5741_v45  ;;  %v6689_v29 = vld [vmem:[#allocation31_spill] sm:$0xff] }
 0x6a7   : > { %6686 = vst [vmem:[#allocation80_spill] sm:$0xff] %v5743_v40  ;;  %v1603_v38 = vpop.permute.xlu1 %1602  ;;  %3794 = vmatmul.mubr.f32.gmra.mxu0 %v5743_v40 }
 0x6a8   : > { %v1726_v14 = vmul.f32 1.442695, %v1685_v37  ;;  %v1655_v49 = vmax.f32 %v5560_v6, %v1603_v38 }
 0x6a9   : > { %v5749_v41 = vpop.eup %4015 }
 0x6aa   : > { %6687 = vst [vmem:[#allocation81_spill] sm:$0xff] %v5749_v41  ;;  %4023 = vpow2.f32 %v1726_v14  ;;  %v1687_v26 = vsub.f32 %v5139_v22, %v1655_v49  ;;  %1832 = vrot.lane.b32.xlu0 %v5749_v41, %s4344_s17  ;;  %v6690_v49 = vld [vmem:[#allocation47_spill] sm:$0xff] }
 0x6ab   : > { %v5754_v55 = vpop.eup %4017  ;;  %v1607_v19 = vpop.permute.xlu1 %1606 }
 0x6ac   : > { %v1730_v46 = vmul.f32 1.442695, %v1687_v26  ;;  %v1657_v28 = vmax.f32 %v5566_v18, %v1607_v19  ;;  %1778 = vrot.lane.b32.xlu1 %v5754_v55, %s4344_s17  ;;  %v6691_v19 = vld [vmem:[#allocation27_spill] sm:$0xff] }
 0x6ae   : > { %4025 = vpow2.f32 %v1730_v46  ;;  %v1689_v6 = vsub.f32 %v5101_v52, %v1657_v28 }
 0x6af   : > { %v5760_v53 = vpop.eup %4019  ;;  %v1611_v13 = vpop.permute.xlu1 %1610 }
 0x6b0   : > { %v1734_v59 = vmul.f32 1.442695, %v1689_v6  ;;  %v1659_v35 = vmax.f32 %v5574_v34, %v1611_v13  ;;  %1782 = vrot.lane.b32.xlu1 %v5760_v53, %s4344_s17 }
 0x6b2   : > { %4027 = vpow2.f32 %v1734_v59  ;;  %v1691_v1 = vsub.f32 %v6655_v44, %v1659_v35  ;;  %v6692_v59 = vld [vmem:[#allocation52_spill] sm:$0xff] }
 0x6b3   : > { %v5766_v10 = vpop.eup %4021  ;;  %v1615_v18 = vpop.permute.xlu1 %1614 }
 0x6b4   : > { %v1738_v54 = vmul.f32 1.442695, %v1691_v1  ;;  %v1661_v42 = vmax.f32 %v6688_v51, %v1615_v18  ;;  %1786 = vrot.lane.b32.xlu1 %v5766_v10, %s4344_s17  ;;  %v6693_v1 = vld [vmem:[#allocation33_spill] sm:$0xff] }
 0x6b6   : > { %4029 = vpow2.f32 %v1738_v54  ;;  %v1693_v37 = vsub.f32 %v6689_v29, %v1661_v42 }
 0x6b7   : > { %v5772_v38 = vpop.eup %4023  ;;  %v1619_v34 = vpop.permute.xlu1 %1618 }
 0x6b8   : > { %v1742_v14 = vmul.f32 1.442695, %v1693_v37  ;;  %v1663_v26 = vmax.f32 %v6690_v49, %v1619_v34  ;;  %1790 = vrot.lane.b32.xlu1 %v5772_v38, %s4344_s17  ;;  %v6694_v37 = vld [vmem:[#allocation67_spill] sm:$0xff] }
 0x6ba   : > { %4031 = vpow2.f32 %v1742_v14  ;;  %v1695_v46 = vsub.f32 %v6691_v19, %v1663_v26  ;;  %v6695_v14 = vld [vmem:[#allocation37_spill] sm:$0xff] }
 0x6bb   : > { %v5778_v28 = vpop.eup %4025  ;;  %v1623_v6 = vpop.permute.xlu1 %1622 }
 0x6bc   : > { %v1746_v13 = vmul.f32 1.442695, %v1695_v46  ;;  %v1665_v35 = vmax.f32 %v6692_v59, %v1623_v6  ;;  %1794 = vrot.lane.b32.xlu1 %v5778_v28, %s4344_s17  ;;  %v6697_v59 = vld [vmem:[#allocation68_spill] sm:$0xff] }
 0x6be   : > { %4033 = vpow2.f32 %v1746_v13  ;;  %v1697_v18 = vsub.f32 %v6693_v1, %v1665_v35  ;;  %v6698_v35 = vld [vmem:[#allocation43_spill] sm:$0xff] }
 0x6bf   : > { %v5784_v54 = vpop.eup %4027  ;;  %v1627_v51 = vpop.permute.xlu1 %1626 }
 0x6c0   : > { %v1750_v42 = vmul.f32 1.442695, %v1697_v18  ;;  %v1667_v34 = vmax.f32 %v6694_v37, %v1627_v51  ;;  %1798 = vrot.lane.b32.xlu1 %v5784_v54, %s4344_s17 }
 0x6c2   : > { %4035 = vpow2.f32 %v1750_v42  ;;  %v1699_v49 = vsub.f32 %v6695_v14, %v1667_v34  ;;  %v6701_v34 = vld [vmem:[#allocation51_spill] sm:$0xff] }
 0x6c3   : > { %v5790_v26 = vpop.eup %4029  ;;  %v1631_v46 = vpop.permute.xlu1 %1630 }
 0x6c4   : > { %6696 = vst [vmem:[#allocation49_spill] sm:$0xff] %v5790_v26  ;;  %v1754_v6 = vmul.f32 1.442695, %v1699_v49  ;;  %v1669_v13 = vmax.f32 %v6697_v59, %v1631_v46  ;;  %1802 = vrot.lane.b32.xlu1 %v5790_v26, %s4344_s17 }
 0x6c6   : > { %4037 = vpow2.f32 %v1754_v6  ;;  %v1701_v18 = vsub.f32 %v6698_v35, %v1669_v13  ;;  %v6704_v13 = vld [vmem:[#allocation57_spill] sm:$0xff] }
 0x6c7   : > { %v5796_v0 = vpop.eup %4031  ;;  %v1635_v51 = vpop.permute.xlu1 %1634 }
 0x6c8   : > { %6699 = vst [vmem:[#allocation47_spill] sm:$0xff] %v5796_v0  ;;  %v1758_v37 = vmul.f32 1.442695, %v1701_v18  ;;  %v1671_v42 = vmax.f32 %v6700_v15, %v1635_v51  ;;  %1806 = vrot.lane.b32.xlu1 %v5796_v0, %s4344_s17 }
 0x6ca   : > { %4039 = vpow2.f32 %v1758_v37  ;;  %v1703_v49 = vsub.f32 %v6701_v34, %v1671_v42  ;;  %v6707_v42 = vld [vmem:[#allocation58_spill] sm:$0xff] }
 0x6cb   : > { %v5802_v43 = vpop.eup %4033  ;;  %v1639_v46 = vpop.permute.xlu1 %1638 }
 0x6cc   : > { %6702 = vst [vmem:[#allocation52_spill] sm:$0xff] %v5802_v43  ;;  %v1762_v59 = vmul.f32 1.442695, %v1703_v49  ;;  %v1673_v6 = vmax.f32 %v6703_v17, %v1639_v46  ;;  %1810 = vrot.lane.b32.xlu1 %v5802_v43, %s4344_s17 }
 0x6ce   : > { %4041 = vpow2.f32 %v1762_v59  ;;  %v1705_v18 = vsub.f32 %v6704_v13, %v1673_v6 }
 0x6cf   : > { %v5808_v35 = vpop.eup %4035  ;;  %v1643_v15 = vpop.permute.xlu1 %1642 }
 0x6d0   : > { %6705 = vst [vmem:[#allocation67_spill] sm:$0xff] %v5808_v35  ;;  %v1766_v51 = vmul.f32 1.442695, %v1705_v18  ;;  %v1675_v37 = vmax.f32 %v6706_v16, %v1643_v15  ;;  %1814 = vrot.lane.b32.xlu1 %v5808_v35, %s4344_s17  ;;  %v1773_v16 = vpop.permute.xlu0 %1772  ;;  %v6712_v15 = vld [vmem:[#allocation66_spill] sm:$0xff] }
 0x6d2   : > { %4043 = vpow2.f32 %v1766_v51  ;;  %v1707_v49 = vsub.f32 %v6707_v42, %v1675_v37  ;;  %v5831_v51 = vadd.f32 %v6712_v15, %v1773_v16 }
 0x6d3   : > { %v5814_v34 = vpop.eup %4037 }
 0x6d4   : > { %6708 = vst [vmem:[#allocation68_spill] sm:$0xff] %v5814_v34  ;;  %v1770_v17 = vmul.f32 1.442695, %v1707_v49  ;;  %1818 = vrot.lane.b32.xlu1 %v5814_v34, %s4344_s17 }
 0x6d6   : > { %4045 = vpow2.f32 %v1770_v17 }
 0x6d7   : > { %v5818_v46 = vpop.eup %4039 }
 0x6d8   : > { %6709 = vst [vmem:[#allocation69_spill] sm:$0xff] %v5818_v46  ;;  %1822 = vrot.lane.b32.xlu1 %v5818_v46, %s4344_s17 }
 0x6db   : > { %v5822_v59 = vpop.eup %4041 }
 0x6dc   : > { %6710 = vst [vmem:[#allocation70_spill] sm:$0xff] %v5822_v59  ;;  %1826 = vrot.lane.b32.xlu1 %v5822_v59, %s4344_s17 }
 0x6df   : > { %v5826_v6 = vpop.eup %4043 }
 0x6e0   : > { %6711 = vst [vmem:[#allocation71_spill] sm:$0xff] %v5826_v6  ;;  %1830 = vrot.lane.b32.xlu1 %v5826_v6, %s4344_s17  ;;  %v1777_v18 = vpop.permute.xlu0 %1776 }
 0x6e1   : > { %v5840_v17 = vadd.f32 %v5648_v3, %v1777_v18 }
 0x6e3   : > { %v5833_v37 = vpop.eup %4045 }
 0x6e4   : > { %6713 = vst [vmem:[#allocation66_spill] sm:$0xff] %v5833_v37  ;;  %1834 = vrot.lane.b32.xlu0 %v5833_v37, %s4344_s17  ;;  %1868 = vrot.lane.b32.xlu1 %v5831_v51, %s4345_s14  ;;  %v1781_v49 = vpop.permute.xlu0 %1780 }
 0x6e5   : > { %v5845_v16 = vadd.f32 %v5656_v58, %v1781_v49 }
 0x6e8   : > { %1872 = vrot.lane.b32.xlu0 %v5840_v17, %s4345_s14  ;;  %v1785_v42 = vpop.permute.xlu0 %1784 }
 0x6e9   : > { %v1775_v13 = vpop.permute.xlu1 %1774  ;;  %v5855_v18 = vadd.f32 %v5663_v21, %v1785_v42 }
 0x6ea   : > { %v5848_v14 = vadd.f32 %v5665_v24, %v1775_v13 }
 0x6ec   : > { %1870 = vrot.lane.b32.xlu1 %v5848_v14, %s4345_s14  ;;  %1876 = vrot.lane.b32.xlu0 %v5845_v16, %s4345_s14  ;;  %v1789_v12 = vpop.permute.xlu0 %1788 }
 0x6ed   : > { %v5860_v49 = vadd.f32 %v5673_v11, %v1789_v12 }
 0x6f0   : > { %1880 = vrot.lane.b32.xlu0 %v5855_v18, %s4345_s14  ;;  %v1793_v1 = vpop.permute.xlu0 %1792 }
 0x6f1   : > { %v5865_v39 = vadd.f32 %v5679_v4, %v1793_v1 }
 0x6f4   : > { %1884 = vrot.lane.b32.xlu0 %v5860_v49, %s4345_s14  ;;  %v1797_v13 = vpop.permute.xlu0 %1796 }
 0x6f5   : > { %v5870_v42 = vadd.f32 %v5685_v33, %v1797_v13 }
 0x6f8   : > { %1888 = vrot.lane.b32.xlu0 %v5865_v39, %s4345_s14  ;;  %v1801_v19 = vpop.permute.xlu0 %1800 }
 0x6f9   : > { %v5875_v12 = vadd.f32 %v5691_v5, %v1801_v19 }
 0x6fc   : > { %1892 = vrot.lane.b32.xlu0 %v5870_v42, %s4345_s14  ;;  %v1805_v32 = vpop.permute.xlu0 %1804 }
 0x6fd   : > { %v5880_v1 = vadd.f32 %v5697_v47, %v1805_v32 }
 0x700   : > { %1896 = vrot.lane.b32.xlu0 %v5875_v12, %s4345_s14  ;;  %v1809_v29 = vpop.permute.xlu0 %1808 }
 0x701   : > { %v5885_v13 = vadd.f32 %v5703_v62, %v1809_v29 }
 0x704   : > { %1900 = vrot.lane.b32.xlu0 %v5880_v1, %s4345_s14  ;;  %v1813_v2 = vpop.permute.xlu0 %1812 }
 0x705   : > { %v5890_v19 = vadd.f32 %v5709_v63, %v1813_v2 }
 0x708   : > { %1904 = vrot.lane.b32.xlu0 %v5885_v13, %s4345_s14  ;;  %v1817_v44 = vpop.permute.xlu0 %1816 }
 0x709   : > { %v5895_v32 = vadd.f32 %v5716_v36, %v1817_v44 }
 0x70c   : > { %1908 = vrot.lane.b32.xlu0 %v5890_v19, %s4345_s14  ;;  %v1821_v27 = vpop.permute.xlu0 %1820 }
 0x70d   : > { %v5900_v29 = vadd.f32 %v5723_v57, %v1821_v27 }
 0x710   : > { %1912 = vrot.lane.b32.xlu0 %v5895_v32, %s4345_s14  ;;  %v1825_v52 = vpop.permute.xlu0 %1824 }
 0x711   : > { %v5905_v2 = vadd.f32 %v5729_v48, %v1825_v52 }
 0x714   : > { %1916 = vrot.lane.b32.xlu0 %v5900_v29, %s4345_s14  ;;  %v1829_v25 = vpop.permute.xlu0 %1828 }
 0x715   : > { %v5910_v44 = vadd.f32 %v5735_v20, %v1829_v25 }
 0x717   : > { %6714 = vst [vmem:[#allocation82_spill] sm:$0xff] %v5910_v44 }
 0x718   : > { %1920 = vrot.lane.b32.xlu0 %v5905_v2, %s4345_s14 }
 0x71c   : > { %1924 = vrot.lane.b32.xlu0 %v5910_v44, %s4345_s14  ;;  %v1833_v22 = vpop.permute.xlu0 %1832 }
 0x71d   : > { %v5915_v27 = vadd.f32 %v5749_v41, %v1833_v22  ;;  %v3750_v41 = vpop.f32.mrf.mxu0 }
 0x71e   : > { %v1779_v23 = vpop.permute.xlu1 %1778 }
 0x71f   : > { %6715 = vst [vmem:[#allocation83_spill] sm:$0xff] %v5915_v27  ;;  %v5918_v50 = vadd.f32 %v5754_v55, %v1779_v23  ;;  %v2270_v48 = vpop.f32.mrf.mxu0 }
 0x720   : > { %1928 = vrot.lane.b32.xlu0 %v5915_v27, %s4345_s14 }
 0x721   : > { %1874 = vrot.lane.b32.xlu1 %v5918_v50, %s4345_s14  ;;  %v5984_v57 = vpop.f32.mrf.mxu0 }
 0x722   : > { %v1783_v52 = vpop.permute.xlu1 %1782 }
 0x723   : > { %v5925_v25 = vadd.f32 %v5760_v53, %v1783_v52  ;;  %v2280_v36 = vpop.f32.mrf.mxu0 }
 0x725   : > { %1878 = vrot.lane.b32.xlu1 %v5925_v25, %s4345_s14 }
 0x726   : > { %v1787_v9 = vpop.permute.xlu1 %1786 }
 0x727   : > { %v5930_v22 = vadd.f32 %v5766_v10, %v1787_v9 }
 0x729   : > { %1882 = vrot.lane.b32.xlu1 %v5930_v22, %s4345_s14 }
 0x72a   : > { %v1791_v23 = vpop.permute.xlu1 %1790 }
 0x72b   : > { %v5935_v8 = vadd.f32 %v5772_v38, %v1791_v23 }
 0x72d   : > { %1886 = vrot.lane.b32.xlu1 %v5935_v8, %s4345_s14 }
 0x72e   : > { %v1795_v61 = vpop.permute.xlu1 %1794 }
 0x72f   : > { %v5940_v52 = vadd.f32 %v5778_v28, %v1795_v61 }
 0x731   : > { %1890 = vrot.lane.b32.xlu1 %v5940_v52, %s4345_s14 }
 0x732   : > { %v1799_v7 = vpop.permute.xlu1 %1798 }
 0x733   : > { %v5945_v9 = vadd.f32 %v5784_v54, %v1799_v7 }
 0x735   : > { %1894 = vrot.lane.b32.xlu1 %v5945_v9, %s4345_s14 }
 0x736   : > { %v1803_v56 = vpop.permute.xlu1 %1802 }
 0x737   : > { %v5950_v23 = vadd.f32 %v5790_v26, %v1803_v56 }
 0x739   : > { %1898 = vrot.lane.b32.xlu1 %v5950_v23, %s4345_s14 }
 0x73a   : > { %v1807_v60 = vpop.permute.xlu1 %1806 }
 0x73b   : > { %v5955_v61 = vadd.f32 %v5796_v0, %v1807_v60 }
 0x73d   : > { %1902 = vrot.lane.b32.xlu1 %v5955_v61, %s4345_s14 }
 0x73e   : > { %v1811_v31 = vpop.permute.xlu1 %1810 }
 0x73f   : > { %v5960_v7 = vadd.f32 %v5802_v43, %v1811_v31 }
 0x741   : > { %1906 = vrot.lane.b32.xlu1 %v5960_v7, %s4345_s14 }
 0x742   : > { %v1815_v40 = vpop.permute.xlu1 %1814 }
 0x743   : > { %v5965_v56 = vadd.f32 %v5808_v35, %v1815_v40 }
 0x745   : > { %1910 = vrot.lane.b32.xlu1 %v5965_v56, %s4345_s14 }
 0x746   : > { %v1819_v30 = vpop.permute.xlu1 %1818 }
 0x747   : > { %v5970_v60 = vadd.f32 %v5814_v34, %v1819_v30  ;;  %v2429_v34 = vmax.f32 %v2270_v48, 1e-30  ;;  %v2431_v48 = vmax.f32 %v2280_v36, 1e-30 }
 0x749   : > { %1914 = vrot.lane.b32.xlu1 %v5970_v60, %s4345_s14  ;;  %4047 = vrcp.f32 %v2429_v34 }
 0x74a   : > { %v1823_v45 = vpop.permute.xlu1 %1822 }
 0x74b   : > { %v5975_v31 = vadd.f32 %v5818_v46, %v1823_v45 }
 0x74d   : > { %6716 = vst [vmem:[#allocation84_spill] sm:$0xff] %v5975_v31  ;;  %1918 = vrot.lane.b32.xlu1 %v5975_v31, %s4345_s14 }
 0x74e   : > { %v1827_v40 = vpop.permute.xlu1 %1826 }
 0x74f   : > { %v5980_v20 = vadd.f32 %v5822_v59, %v1827_v40 }
 0x751   : > { %6717 = vst [vmem:[#allocation85_spill] sm:$0xff] %v5980_v20  ;;  %1922 = vrot.lane.b32.xlu1 %v5980_v20, %s4345_s14 }
 0x752   : > { %v1831_v30 = vpop.permute.xlu1 %1830 }
 0x753   : > { %v5987_v35 = vadd.f32 %v5826_v6, %v1831_v30  ;;  %v2430_v30 = vmax.f32 %v3750_v41, 1e-30  ;;  %v3756_v41 = vpop.f32.mrf.mxu0 }
 0x755   : > { %6718 = vst [vmem:[#allocation86_spill] sm:$0xff] %v5987_v35  ;;  %1926 = vrot.lane.b32.xlu1 %v5987_v35, %s4345_s14 }
 0x756   : > { %v1869_v45 = vpop.permute.xlu1 %1868  ;;  %v1835_v46 = vpop.permute.xlu0 %1834 }
 0x757   : > { %v1932_v40 = vadd.f32 %v1869_v45, %v5831_v51  ;;  %v5993_v59 = vadd.f32 %v5833_v37, %v1835_v46  ;;  %v4048_v51 = vpop.eup %4047 }
 0x759   : > { %6719 = vst [vmem:[#allocation87_spill] sm:$0xff] %v5993_v59  ;;  %4049 = vrcp.f32 %v1932_v40  ;;  %1930 = vrot.lane.b32.xlu1 %v5993_v59, %s4345_s14  ;;  %v6720_v40 = vld [vmem:[#allocation12_spill] sm:$0xff] }
 0x75a   : > { %v1873_v43 = vpop.permute.xlu0 %1872  ;;  %v2493_v37 = vmul.f32 %v4048_v51, %v6720_v40 }
 0x75b   : > { %v1934_v6 = vadd.f32 %v1873_v43, %v5840_v17  ;;  %v4303_v43 = vld [vmem:[%s4422_s21] sm:$0xff] }
 0x75d   : > { %4051 = vrcp.f32 %v1934_v6 }
 0x75e   : > { %4053 = vrcp.f32 %v2431_v48  ;;  %v1871_v35 = vpop.permute.xlu1 %1870  ;;  %v2290_v48 = vpop.f32.mrf.mxu0 }
 0x75f   : > { %4055 = vrcp.f32 %v2430_v30  ;;  %v1933_v34 = vadd.f32 %v1871_v35, %v5848_v14  ;;  %v6722_v30 = vld [vmem:[#allocation14_spill] sm:$0xff]  ;;  %v2433_v0 = vmax.f32 %v2290_v48, 1e-30 }
 0x761   : > { %4057 = vrcp.f32 %v1933_v34  ;;  %v6723_v34 = vld [vmem:[#allocation13_spill] sm:$0xff] }
 0x766   : > { %v4050_v46 = vpop.eup %4049 }
 0x767   : > { %v1996_v45 = vmul.f32 %v4050_v46, %v6712_v15  ;;  %v3759_v46 = vpop.f32.mrf.mxu0 }
 0x769   : > { %v6001_v59 = vmin.f32 %v1996_v45, %v2493_v37  ;;  %v1877_v45 = vpop.permute.xlu0 %1876  ;;  %v2300_v27 = vpop.f32.mrf.mxu0 }
 0x76a   : > { %v4052_v36 = vpop.eup %4051  ;;  %v2435_v31 = vmax.f32 %v2300_v27, 1e-30 }
 0x76b   : > { %6721 = vst [vmem:[#allocation12_spill] sm:$0xff] %v6001_v59  ;;  %v4054_v20 = vpop.eup %4053  ;;  %v2557_v6 = vmul.f32 %v4303_v43, %v6001_v59  ;;  %v1998_v14 = vmul.f32 %v4052_v36, %v5648_v3  ;;  %v4304_v43 = vld [vmem:[%s4422_s21 + $0x8] sm:$0xff]  ;;  %v4305_v3 = vld [vmem:[%s4422_s21 + $0x10] sm:$0xff] }
 0x76c   : > { %v4056_v17 = vpop.eup %4055  ;;  %v2495_v15 = vmul.f32 %v4054_v20, %v6722_v30 }
 0x76d   : > { %3828 = vmatprep.mubr.f32.mxu0 %v2557_v6  ;;  %v2494_v51 = vmul.f32 %v4056_v17, %v6723_v34  ;;  %v3762_v6 = vpop.f32.mrf.mxu0  ;;  %v1881_v20 = vpop.permute.xlu0 %1880 }
 0x76e   : > { %v4058_v35 = vpop.eup %4057  ;;  %v6009_v40 = vmin.f32 %v1998_v14, %v2495_v15  ;;  %v2432_v15 = vmax.f32 %v5984_v57, 1e-30  ;;  %v1938_v27 = vadd.f32 %v1881_v20, %v5855_v18 }
 0x76f   : > { %v1997_v37 = vmul.f32 %v4058_v35, %v5665_v24  ;;  %v2310_v17 = vpop.f32.mrf.mxu0 }
 0x770   : > { %6724 = vst [vmem:[#allocation14_spill] sm:$0xff] %v6009_v40  ;;  %v2559_v36 = vmul.f32 %v4305_v3, %v6009_v40  ;;  %4059 = vrcp.f32 %v2432_v15  ;;  %v1936_v40 = vadd.f32 %v1877_v45, %v5845_v16 }
 0x771   : > { %v6011_v63 = vmin.f32 %v1997_v37, %v2494_v51  ;;  %v3765_v30 = vpop.f32.mrf.mxu0  ;;  %v1885_v24 = vpop.permute.xlu0 %1884  ;;  %v2434_v37 = vmax.f32 %v3756_v41, 1e-30 }
 0x772   : > { %v2440_v62 = vmax.f32 %v3765_v30, 1e-30  ;;  %v1940_v45 = vadd.f32 %v1885_v24, %v5860_v49 }
 0x773   : > { %6725 = vst [vmem:[#allocation13_spill] sm:$0xff] %v6011_v63  ;;  %v2558_v59 = vmul.f32 %v4304_v43, %v6011_v63  ;;  %v2320_v35 = vpop.f32.mrf.mxu0  ;;  %v2436_v63 = vmax.f32 %v3759_v46, 1e-30  ;;  %4061 = vrcp.f32 %v2434_v37 }
 0x774   : > { %4063 = vrcp.f32 %v2433_v0  ;;  %v2439_v57 = vmax.f32 %v2320_v35, 1e-30 }
 0x775   : > { %3829 = vmatmul.mubr.f32.vlgmr.msra.gmra.mxu0 %v2558_v59  ;;  %v3768_v34 = vpop.f32.mrf.mxu0  ;;  %v1889_v14 = vpop.permute.xlu0 %1888  ;;  %v2438_v59 = vmax.f32 %v3762_v6, 1e-30  ;;  %4065 = vrcp.f32 %v2436_v63 }
 0x776   : > { %3831 = vmatprep.mubr.f32.mxu0 %v2559_v36  ;;  %v2437_v36 = vmax.f32 %v2310_v17, 1e-30  ;;  %4067 = vrcp.f32 %v2435_v31  ;;  %v2442_v41 = vmax.f32 %v3768_v34, 1e-30 }
 0x777   : > { %v2330_v51 = vpop.f32.mrf.mxu0  ;;  %4069 = vrcp.f32 %v2438_v59 }
 0x778   : > { %4071 = vrcp.f32 %v2437_v36  ;;  %v2441_v46 = vmax.f32 %v2330_v51, 1e-30 }
 0x779   : > { %v1893_v43 = vpop.permute.xlu0 %1892  ;;  %v3771_v3 = vpop.f32.mrf.mxu0  ;;  %4073 = vrcp.f32 %v1936_v40 }
 0x77a   : > { %4075 = vrcp.f32 %v2440_v62  ;;  %v2444_v63 = vmax.f32 %v3771_v3, 1e-30  ;;  %v1942_v62 = vadd.f32 %v1889_v14, %v5865_v39  ;;  %v1944_v14 = vadd.f32 %v1893_v43, %v5870_v42 }
 0x77b   : > { %v2340_v44 = vpop.f32.mrf.mxu0  ;;  %4077 = vrcp.f32 %v2439_v57 }
 0x77c   : > { %4079 = vrcp.f32 %v2442_v41  ;;  %v2443_v40 = vmax.f32 %v2340_v44, 1e-30 }
 0x77d   : > { %v1897_v26 = vpop.permute.xlu0 %1896  ;;  %v3774_v48 = vpop.f32.mrf.mxu0  ;;  %4081 = vrcp.f32 %v1938_v27 }
 0x77e   : > { %v4060_v30 = vpop.eup %4059  ;;  %v2446_v15 = vmax.f32 %v3774_v48, 1e-30  ;;  %v1946_v42 = vadd.f32 %v1897_v26, %v5875_v12 }
 0x77f   : > { %v2350_v6 = vpop.f32.mrf.mxu0 }
 0x780   : > { %v6022_v18 = vpop.eup %4061  ;;  %v2445_v44 = vmax.f32 %v2350_v6, 1e-30 }
 0x781   : > { %v1901_v16 = vpop.permute.xlu0 %1900  ;;  %v3777_v17 = vpop.f32.mrf.mxu0 }
 0x782   : > { %v4064_v34 = vpop.eup %4063  ;;  %v2448_v59 = vmax.f32 %v3777_v17, 1e-30 }
 0x783   : > { %v2360_v51 = vpop.f32.mrf.mxu0 }
 0x784   : > { %v2447_v48 = vmax.f32 %v2360_v51, 1e-30 }
 0x785   : > { %v6028_v49 = vpop.permute.xlu0 %1904  ;;  %v3780_v36 = vpop.f32.mrf.mxu0 }
 0x789   : > { %v6040_v6 = vpop.permute.xlu0 %1908 }
 0x793   : > { %v1875_v0 = vpop.permute.xlu1 %1874 }
 0x794   : > { %v1935_v31 = vadd.f32 %v1875_v0, %v5918_v50  ;;  %v6026_v50 = vpop.eup %4065  ;;  %v2450_v0 = vmax.f32 %v3780_v36, 1e-30 }
 0x795   : > { %v4068_v24 = vpop.eup %4067 }
 0x796   : > { %4083 = vrcp.f32 %v1935_v31  ;;  %v6030_v3 = vpop.eup %4069 }
 0x797   : > { %4085 = vrcp.f32 %v2441_v46  ;;  %v1879_v35 = vpop.permute.xlu1 %1878 }
 0x798   : > { %4087 = vrcp.f32 %v2444_v63  ;;  %v1937_v20 = vadd.f32 %v1879_v35, %v5925_v25  ;;  %v6033_v25 = vpop.eup %4071  ;;  %v2370_v63 = vpop.f32.mrf.mxu0 }
 0x799   : > { %4089 = vrcp.f32 %v1940_v45  ;;  %v4074_v57 = vpop.eup %4073 }
 0x79a   : > { %4091 = vrcp.f32 %v1937_v20  ;;  %v6036_v41 = vpop.eup %4075  ;;  %v2000_v43 = vmul.f32 %v4074_v57, %v5656_v58  ;;  %v6729_v57 = vld [vmem:[#allocation23_spill] sm:$0xff] }
 0x79b   : > { %4093 = vrcp.f32 %v2443_v40  ;;  %v1883_v37 = vpop.permute.xlu1 %1882  ;;  %v6038_v46 = vpop.eup %4077  ;;  %v2449_v40 = vmax.f32 %v2370_v63, 1e-30  ;;  %v4306_v63 = vld [vmem:[%s4422_s21 + $0x18] sm:$0xff] }
 0x79c   : > { %4095 = vrcp.f32 %v1942_v62  ;;  %v1939_v39 = vadd.f32 %v1883_v37, %v5930_v22  ;;  %v6043_v31 = vpop.eup %4079  ;;  %v6726_v62 = vld [vmem:[#allocation15_spill] sm:$0xff]  ;;  %v1948_v37 = vadd.f32 %v1901_v16, %v5880_v1 }
 0x79d   : > { %4097 = vrcp.f32 %v2446_v15  ;;  %v4082_v45 = vpop.eup %4081  ;;  %v2496_v20 = vmul.f32 %v4060_v30, %v6726_v62  ;;  %v6727_v15 = vld [vmem:[#allocation18_spill] sm:$0xff] }
 0x79e   : > { %4099 = vrcp.f32 %v1939_v39  ;;  %v2497_v51 = vmul.f32 %v4064_v34, %v6727_v15  ;;  %v2002_v30 = vmul.f32 %v4082_v45, %v5663_v21  ;;  %v6059_v34 = vpop.permute.xlu0 %1912  ;;  %v1950_v45 = vadd.f32 %v6028_v49, %v5885_v13  ;;  %v6730_v49 = vld [vmem:[#allocation24_spill] sm:$0xff] }
 0x79f   : > { %4101 = vrcp.f32 %v2445_v44  ;;  %v1887_v27 = vpop.permute.xlu1 %1886  ;;  %v2500_v15 = vmul.f32 %v6026_v50, %v6730_v49  ;;  %v1952_v50 = vadd.f32 %v6040_v6, %v5890_v19  ;;  %v6733_v6 = vld [vmem:[#allocation30_spill] sm:$0xff] }
 0x7a0   : > { %4103 = vrcp.f32 %v2448_v59  ;;  %v1941_v22 = vadd.f32 %v1887_v27, %v5935_v8  ;;  %v3783_v8 = vpop.f32.mrf.mxu0  ;;  %v6056_v59 = vmin.f32 %v2000_v43, %v2497_v51  ;;  %v6731_v51 = vld [vmem:[#allocation29_spill] sm:$0xff] }
 0x7a1   : > { %4105 = vrcp.f32 %v1944_v14 }
 0x7a2   : > { %4107 = vrcp.f32 %v1941_v22 }
 0x7a3   : > { %v4084_v17 = vpop.eup %4083  ;;  %4109 = vrcp.f32 %v2447_v48  ;;  %v1891_v35 = vpop.permute.xlu1 %1890  ;;  %v2499_v48 = vmul.f32 %v4068_v24, %v6729_v57 }
 0x7a4   : > { %v6049_v44 = vpop.eup %4085  ;;  %4111 = vrcp.f32 %v2450_v0  ;;  %v1943_v26 = vadd.f32 %v1891_v35, %v5940_v52  ;;  %v1999_v58 = vmul.f32 %v4084_v17, %v5754_v55  ;;  %v2452_v52 = vmax.f32 %v3783_v8, 1e-30  ;;  %v6728_v55 = vld [vmem:[#allocation19_spill] sm:$0xff]  ;;  %v2380_v0 = vpop.f32.mrf.mxu0  ;;  %v4307_v17 = vld [vmem:[%s4422_s21 + $0x20] sm:$0xff] }
 0x7a5   : > { %v6054_v12 = vpop.eup %4087  ;;  %4113 = vrcp.f32 %v1946_v42  ;;  %v2498_v14 = vmul.f32 %v6022_v18, %v6728_v55  ;;  %v2561_v18 = vmul.f32 %v4307_v17, %v6056_v59 }
 0x7a6   : > { %v4090_v36 = vpop.eup %4089  ;;  %4115 = vrcp.f32 %v1943_v26  ;;  %v6061_v39 = vmin.f32 %v1999_v58, %v2496_v20  ;;  %v2451_v20 = vmax.f32 %v2380_v0, 1e-30  ;;  %v4308_v58 = vld [vmem:[%s4422_s21 + $0x28] sm:$0xff] }
 0x7a7   : > { %v4092_v1 = vpop.eup %4091  ;;  %4117 = vrcp.f32 %v2449_v40  ;;  %v1895_v16 = vpop.permute.xlu1 %1894  ;;  %v6076_v40 = vmin.f32 %v2002_v30, %v2499_v48  ;;  %v2004_v24 = vmul.f32 %v4090_v36, %v5673_v11  ;;  %v2501_v11 = vmul.f32 %v6033_v25, %v6731_v51  ;;  %v6734_v51 = vld [vmem:[#allocation35_spill] sm:$0xff] }
 0x7a8   : > { %v6066_v27 = vpop.eup %4093  ;;  %4119 = vrcp.f32 %v1948_v37  ;;  %v1945_v21 = vadd.f32 %v1895_v16, %v5945_v9  ;;  %v2560_v22 = vmul.f32 %v4306_v63, %v6061_v39  ;;  %v2001_v42 = vmul.f32 %v4092_v1, %v5760_v53  ;;  %v3786_v9 = vpop.f32.mrf.mxu0  ;;  %v4309_v16 = vld [vmem:[%s4422_s21 + $0x30] sm:$0xff] }
 0x7a9   : > { %v4096_v43 = vpop.eup %4095  ;;  %v1917_v37 = vpop.permute.xlu0 %1916  ;;  %v2563_v25 = vmul.f32 %v4309_v16, %v6076_v40  ;;  %v6100_v55 = vmin.f32 %v2004_v24, %v2501_v11  ;;  %v2454_v0 = vmax.f32 %v3786_v9, 1e-30  ;;  %v1954_v24 = vadd.f32 %v6059_v34, %v5895_v32  ;;  %v6735_v34 = vld [vmem:[#allocation38_spill] sm:$0xff] }
 0x7aa   : > { %v6079_v35 = vpop.eup %4097  ;;  %4121 = vrcp.f32 %v1945_v21  ;;  %3832 = vmatmul.mubr.f32.gmra.mxu0 %v2560_v22  ;;  %v6081_v62 = vmin.f32 %v2001_v42, %v2498_v14  ;;  %v2006_v1 = vmul.f32 %v4096_v43, %v5679_v4  ;;  %v2390_v14 = vpop.f32.mrf.mxu0  ;;  %v2502_v21 = vmul.f32 %v6030_v3, %v6733_v6  ;;  %v4310_v43 = vld [vmem:[%s4422_s21 + $0x38] sm:$0xff]  ;;  %v4311_v3 = vld [vmem:[%s4422_s21 + $0x40] sm:$0xff] }
 0x7ab   : > { %v4100_v53 = vpop.eup %4099  ;;  %4123 = vrcp.f32 %v2452_v52  ;;  %v1899_v13 = vpop.permute.xlu1 %1898  ;;  %3834 = vmatprep.mubr.f32.mxu0 %v2561_v18  ;;  %v2565_v9 = vmul.f32 %v4311_v3, %v6100_v55  ;;  %v2453_v49 = vmax.f32 %v2390_v14, 1e-30  ;;  %v2504_v32 = vmul.f32 %v6036_v41, %v6734_v51  ;;  %v4316_v51 = vld [vmem:[%s4422_s21 + $0x68] sm:$0xff] }
 0x7ac   : > { %v6087_v8 = vpop.eup %4101  ;;  %v1947_v26 = vadd.f32 %v1899_v13, %v5950_v23  ;;  %v2562_v30 = vmul.f32 %v4308_v58, %v6081_v62  ;;  %v2003_v36 = vmul.f32 %v4100_v53, %v5766_v10  ;;  %4125 = vrcp.f32 %v1950_v45  ;;  %v6732_v10 = vld [vmem:[#allocation34_spill] sm:$0xff]  ;;  %v6110_v22 = vpop.f32.mrf.mxu0 }
 0x7ad   : > { %v6094_v52 = vpop.eup %4103  ;;  %v2503_v4 = vmul.f32 %v6038_v46, %v6732_v10  ;;  %v2505_v11 = vmul.f32 %v6049_v44, %v6735_v34  ;;  %v1956_v41 = vadd.f32 %v1917_v37, %v5900_v29  ;;  %v6737_v37 = vld [vmem:[#allocation40_spill] sm:$0xff] }
 0x7ae   : > { %v4106_v23 = vpop.eup %4105  ;;  %4127 = vrcp.f32 %v1947_v26  ;;  %3835 = vmatmul.mubr.f32.gmra.mxu0 %v2562_v30  ;;  %v6102_v57 = vmin.f32 %v2003_v36, %v2500_v15  ;;  %v6133_v26 = vpop.f32.mrf.mxu0  ;;  %v4312_v30 = vld [vmem:[%s4422_s21 + $0x48] sm:$0xff] }
 0x7af   : > { %v4108_v48 = vpop.eup %4107  ;;  %4129 = vrcp.f32 %v2451_v20  ;;  %v1903_v19 = vpop.permute.xlu1 %1902  ;;  %3837 = vmatprep.mubr.f32.mxu0 %v2563_v25  ;;  %v6116_v17 = vmin.f32 %v2006_v1, %v2503_v4  ;;  %v2008_v53 = vmul.f32 %v4106_v23, %v5685_v33  ;;  %v4313_v1 = vld [vmem:[%s4422_s21 + $0x50] sm:$0xff] }
 0x7b0   : > { %v6108_v63 = vpop.eup %4109  ;;  %v1949_v42 = vadd.f32 %v1903_v19, %v5955_v61  ;;  %v2564_v45 = vmul.f32 %v4310_v43, %v6102_v57  ;;  %v2005_v46 = vmul.f32 %v4108_v48, %v5772_v38  ;;  %4131 = vrcp.f32 %v1952_v50  ;;  %v1921_v20 = vpop.permute.xlu0 %1920  ;;  %v6736_v48 = vld [vmem:[#allocation39_spill] sm:$0xff] }
 0x7b1   : > { %v6118_v18 = vpop.eup %4111  ;;  %v2567_v50 = vmul.f32 %v4313_v1, %v6116_v17  ;;  %v6142_v23 = vmin.f32 %v2008_v53, %v2505_v11  ;;  %v6145_v14 = vpop.f32.mrf.mxu0  ;;  %v2506_v29 = vmul.f32 %v6043_v31, %v6736_v48  ;;  %v6744_v48 = vld [vmem:[#allocation46_spill] sm:$0xff] }
 0x7b2   : > { %v4114_v61 = vpop.eup %4113  ;;  %4133 = vrcp.f32 %v1949_v42  ;;  %3838 = vmatmul.mubr.f32.gmra.mxu0 %v2564_v45  ;;  %v6125_v38 = vmin.f32 %v2005_v46, %v2502_v21  ;;  %v4314_v21 = vld [vmem:[%s4422_s21 + $0x58] sm:$0xff]  ;;  %v1958_v45 = vadd.f32 %v1921_v20, %v5905_v2  ;;  %v4315_v46 = vld [vmem:[%s4422_s21 + $0x60] sm:$0xff]  ;;  %v2455_v2 = vmax.f32 %v6133_v26, 1e-30 }
 0x7b3   : > { %v4116_v13 = vpop.eup %4115  ;;  %4135 = vrcp.f32 %v2454_v0  ;;  %v1907_v15 = vpop.permute.xlu1 %1906  ;;  %3840 = vmatprep.mubr.f32.mxu0 %v2565_v9  ;;  %v2010_v44 = vmul.f32 %v4114_v61, %v5691_v5  ;;  %v2507_v0 = vmul.f32 %v6066_v27, %v6737_v37  ;;  %v2569_v31 = vmul.f32 %v4315_v46, %v6142_v23  ;;  %v6738_v9 = vld [vmem:[#allocation44_spill] sm:$0xff]  ;;  %v6739_v61 = vld [vmem:[#allocation41_spill] sm:$0xff]  ;;  %v6741_v26 = vld [vmem:[#allocation82_spill] sm:$0xff] }
 0x7b4   : > { %v6131_v33 = vpop.eup %4117  ;;  %v1951_v58 = vadd.f32 %v1907_v15, %v5960_v7  ;;  %v2566_v36 = vmul.f32 %v4312_v30, %v6125_v38  ;;  %v2007_v16 = vmul.f32 %v4116_v13, %v5778_v28  ;;  %4137 = vrcp.f32 %v1954_v24  ;;  %v1925_v19 = vpop.permute.xlu0 %1924  ;;  %v4317_v30 = vld [vmem:[%s4422_s21 + $0x70] sm:$0xff] }
 0x7b5   : > { %v4120_v25 = vpop.eup %4119  ;;  %v2456_v28 = vmax.f32 %v6110_v22, 1e-30  ;;  %v6164_v24 = vmin.f32 %v2010_v44, %v2507_v0  ;;  %v2410_v3 = vpop.f32.mrf.mxu0  ;;  %v2508_v20 = vmul.f32 %v6054_v12, %v6739_v61  ;;  %v6742_v12 = vld [vmem:[#allocation73_spill] sm:$0xff] }
 0x7b6   : > { %4139 = vrcp.f32 %v1951_v58  ;;  %3841 = vmatmul.mubr.f32.gmra.mxu0 %v2566_v36  ;;  %v6147_v7 = vmin.f32 %v2007_v16, %v2504_v32  ;;  %v2012_v22 = vmul.f32 %v4120_v25, %v5697_v47  ;;  %v1960_v58 = vadd.f32 %v1925_v19, %v6741_v26  ;;  %v6743_v25 = vld [vmem:[#allocation45_spill] sm:$0xff]  ;;  %v6745_v19 = vld [vmem:[#allocation84_spill] sm:$0xff] }
 0x7b7   : > { %v4122_v10 = vpop.eup %4121  ;;  %4141 = vrcp.f32 %v2453_v49  ;;  %v1911_v4 = vpop.permute.xlu1 %1910  ;;  %3843 = vmatprep.mubr.f32.mxu0 %v2567_v50  ;;  %v2571_v36 = vmul.f32 %v4317_v30, %v6164_v24 }
 0x7b8   : > { %v6154_v5 = vpop.eup %4123  ;;  %v1953_v6 = vadd.f32 %v1911_v4, %v5965_v56  ;;  %v2568_v42 = vmul.f32 %v4314_v21, %v6147_v7  ;;  %v2009_v43 = vmul.f32 %v4122_v10, %v5784_v54  ;;  %4143 = vrcp.f32 %v1956_v41  ;;  %v6175_v49 = vpop.f32.mrf.mxu0  ;;  %v4318_v21 = vld [vmem:[%s4422_s21 + $0x78] sm:$0xff] }
 0x7b9   : > { %v4126_v27 = vpop.eup %4125  ;;  %v2509_v54 = vmul.f32 %v6087_v8, %v6738_v9  ;;  %v6740_v8 = vld [vmem:[#allocation49_spill] sm:$0xff]  ;;  %v1929_v16 = vpop.permute.xlu0 %1928  ;;  %v2510_v41 = vmul.f32 %v6079_v35, %v6743_v25  ;;  %v2458_v10 = vmax.f32 %v6145_v14, 1e-30  ;;  %v6747_v14 = vld [vmem:[#allocation83_spill] sm:$0xff] }
 0x7ba   : > { %4145 = vrcp.f32 %v1953_v6  ;;  %3844 = vmatmul.mubr.f32.gmra.mxu0 %v2568_v42  ;;  %v6166_v56 = vmin.f32 %v2009_v43, %v2506_v29  ;;  %v2014_v1 = vmul.f32 %v4126_v27, %v6742_v12  ;;  %v2511_v29 = vmul.f32 %v6108_v63, %v6744_v48  ;;  %v2420_v0 = vpop.f32.mrf.mxu0  ;;  %v4319_v43 = vld [vmem:[%s4422_s21 + $0x80] sm:$0xff] }
 0x7bb   : > { %v4128_v47 = vpop.eup %4127  ;;  %4147 = vrcp.f32 %v2456_v28  ;;  %v1915_v53 = vpop.permute.xlu1 %1914  ;;  %3846 = vmatprep.mubr.f32.mxu0 %v2569_v31  ;;  %v6181_v11 = vmin.f32 %v2012_v22, %v2509_v54  ;;  %v2457_v28 = vmax.f32 %v2410_v3, 1e-30  ;;  %v6746_v22 = vld [vmem:[#allocation47_spill] sm:$0xff]  ;;  %v1962_v46 = vadd.f32 %v1929_v16, %v6747_v14  ;;  %v6748_v27 = vld [vmem:[#allocation74_spill] sm:$0xff] }
 0x7bc   : > { %v6173_v13 = vpop.eup %4129  ;;  %v1955_v15 = vadd.f32 %v1915_v53, %v5970_v60  ;;  %v2570_v32 = vmul.f32 %v4316_v51, %v6166_v56  ;;  %v2011_v34 = vmul.f32 %v4128_v47, %v6740_v8  ;;  %4149 = vrcp.f32 %v1958_v45  ;;  %v6749_v53 = vld [vmem:[#allocation53_spill] sm:$0xff] }
 0x7bd   : > { %v4132_v50 = vpop.eup %4131  ;;  %v2573_v35 = vmul.f32 %v4319_v43, %v6181_v11  ;;  %v6203_v31 = vmin.f32 %v2014_v1, %v2511_v29  ;;  %v2459_v47 = vmax.f32 %v2420_v0, 1e-30  ;;  %v2512_v61 = vmul.f32 %v6094_v52, %v6749_v53  ;;  %v6753_v52 = vld [vmem:[#allocation75_spill] sm:$0xff]  ;;  %v6756_v0 = vld [vmem:[#allocation86_spill] sm:$0xff] }
 0x7be   : > { %4151 = vrcp.f32 %v1955_v15  ;;  %3847 = vmatmul.mubr.f32.gmra.mxu0 %v2570_v32  ;;  %v6187_v60 = vmin.f32 %v2011_v34, %v2508_v20  ;;  %v2016_v63 = vmul.f32 %v4132_v50, %v6748_v27  ;;  %v6750_v20 = vld [vmem:[#allocation54_spill] sm:$0xff]  ;;  %v6751_v32 = vld [vmem:[#allocation85_spill] sm:$0xff]  ;;  %v4320_v34 = vld [vmem:[%s4422_s21 + $0x88] sm:$0xff]  ;;  %v2460_v29 = vmax.f32 %v6175_v49, 1e-30 }
 0x7bf   : > { %v4134_v44 = vpop.eup %4133  ;;  %4153 = vrcp.f32 %v2455_v2  ;;  %v1919_v4 = vpop.permute.xlu1 %1918  ;;  %3849 = vmatprep.mubr.f32.mxu0 %v2571_v36  ;;  %v2513_v15 = vmul.f32 %v6131_v33, %v6750_v20  ;;  %v4321_v36 = vld [vmem:[%s4422_s21 + $0x90] sm:$0xff]  ;;  %v6761_v53 = vld [vmem:[#allocation87_spill] sm:$0xff] }
 0x7c0   : > { %v6194_v37 = vpop.eup %4135  ;;  %v1957_v6 = vadd.f32 %v1919_v4, %v6745_v19  ;;  %v2572_v42 = vmul.f32 %v4318_v21, %v6187_v60  ;;  %v2013_v45 = vmul.f32 %v4134_v44, %v6746_v22  ;;  %4155 = vrcp.f32 %v1960_v58  ;;  %v6752_v58 = vld [vmem:[#allocation52_spill] sm:$0xff]  ;;  %v6754_v44 = vld [vmem:[#allocation55_spill] sm:$0xff] }
 0x7c1   : > { %v4138_v3 = vpop.eup %4137  ;;  %v2575_v12 = vmul.f32 %v4321_v36, %v6203_v31  ;;  %v6218_v1 = vmin.f32 %v2016_v63, %v2513_v15  ;;  %v6759_v63 = vld [vmem:[#allocation60_spill] sm:$0xff]  ;;  %v4324_v20 = vld [vmem:[%s4422_s21 + $0xa8] sm:$0xff] }
 0x7c2   : > { %4157 = vrcp.f32 %v1957_v6  ;;  %3850 = vmatmul.mubr.f32.gmra.mxu0 %v2572_v42  ;;  %v6206_v9 = vmin.f32 %v2013_v45, %v2510_v41  ;;  %v2018_v50 = vmul.f32 %v4138_v3, %v6753_v52  ;;  %v4322_v6 = vld [vmem:[%s4422_s21 + $0x98] sm:$0xff]  ;;  %v6757_v42 = vld [vmem:[#allocation67_spill] sm:$0xff]  ;;  %v2516_v3 = vmul.f32 %v6154_v5, %v6759_v63 }
 0x7c3   : > { %v4140_v54 = vpop.eup %4139  ;;  %4159 = vrcp.f32 %v2457_v28  ;;  %v1923_v2 = vpop.permute.xlu1 %1922  ;;  %3852 = vmatprep.mubr.f32.mxu0 %v2573_v35  ;;  %v6755_v28 = vld [vmem:[#allocation59_spill] sm:$0xff]  ;;  %v4323_v35 = vld [vmem:[%s4422_s21 + $0xa0] sm:$0xff] }
 0x7c4   : > { %v4142_v51 = vpop.eup %4141  ;;  %4161 = vrcp.f32 %v2458_v10  ;;  %v1959_v8 = vadd.f32 %v1923_v2, %v6751_v32  ;;  %v2574_v26 = vmul.f32 %v4320_v34, %v6206_v9  ;;  %v2015_v30 = vmul.f32 %v4140_v54, %v6752_v58  ;;  %v6760_v54 = vld [vmem:[#allocation61_spill] sm:$0xff]  ;;  %v6762_v32 = vld [vmem:[#allocation68_spill] sm:$0xff]  ;;  %v6764_v52 = vld [vmem:[#allocation63_spill] sm:$0xff] }
 0x7c5   : > { %4163 = vrcp.f32 %v1962_v46  ;;  %v4144_v16 = vpop.eup %4143  ;;  %v2514_v10 = vmul.f32 %v6118_v18, %v6754_v44  ;;  %v2515_v4 = vmul.f32 %v6173_v13, %v6755_v28  ;;  %v2577_v22 = vmul.f32 %v4323_v35, %v6218_v1  ;;  %v6758_v18 = vld [vmem:[#allocation76_spill] sm:$0xff]  ;;  %v6765_v44 = vld [vmem:[#allocation69_spill] sm:$0xff]  ;;  %v6766_v28 = vld [vmem:[#allocation62_spill] sm:$0xff] }
 0x7c6   : > { %4165 = vrcp.f32 %v1959_v8  ;;  %3853 = vmatmul.mubr.f32.gmra.mxu0 %v2574_v26  ;;  %v6221_v33 = vmin.f32 %v2015_v30, %v2512_v61  ;;  %v2020_v14 = vmul.f32 %v4144_v16, %v6758_v18  ;;  %v4325_v34 = vld [vmem:[%s4422_s21 + $0xb0] sm:$0xff]  ;;  %v6763_v30 = vld [vmem:[#allocation77_spill] sm:$0xff] }
 0x7c7   : > { %v4146_v25 = vpop.eup %4145  ;;  %4167 = vrcp.f32 %v2459_v47  ;;  %v1927_v41 = vpop.permute.xlu1 %1926  ;;  %3855 = vmatprep.mubr.f32.mxu0 %v2575_v12  ;;  %v6234_v45 = vmin.f32 %v2018_v50, %v2515_v4  ;;  %v2517_v47 = vmul.f32 %v4142_v51, %v6760_v54  ;;  %v2518_v4 = vmul.f32 %v6194_v37, %v6766_v28  ;;  %v6768_v18 = vld [vmem:[#allocation65_spill] sm:$0xff]  ;;  %v4328_v37 = vld [vmem:[%s4422_s21 + $0xc8] sm:$0xff] }
 0x7c8   : > { %v4148_v48 = vpop.eup %4147  ;;  %v1961_v19 = vadd.f32 %v1927_v41, %v6756_v0  ;;  %v2576_v21 = vmul.f32 %v4322_v6, %v6221_v33  ;;  %v2017_v43 = vmul.f32 %v4146_v25, %v6757_v42  ;;  %v4326_v25 = vld [vmem:[%s4422_s21 + $0xb8] sm:$0xff]  ;;  %v4327_v0 = vld [vmem:[%s4422_s21 + $0xc0] sm:$0xff] }
 0x7c9   : > { %v4150_v13 = vpop.eup %4149  ;;  %v2579_v26 = vmul.f32 %v4325_v34, %v6234_v45  ;;  %v6248_v58 = vmin.f32 %v2020_v14, %v2517_v47  ;;  %v4329_v47 = vld [vmem:[%s4422_s21 + $0xd0] sm:$0xff] }
 0x7ca   : > { %4169 = vrcp.f32 %v1961_v19  ;;  %3856 = vmatmul.mubr.f32.gmra.mxu0 %v2576_v21  ;;  %v6237_v49 = vmin.f32 %v2017_v43, %v2514_v10  ;;  %v2022_v5 = vmul.f32 %v4150_v13, %v6763_v30  ;;  %v6767_v21 = vld [vmem:[#allocation78_spill] sm:$0xff] }
 0x7cb   : > { %v4152_v46 = vpop.eup %4151  ;;  %v1931_v27 = vpop.permute.xlu1 %1930  ;;  %3858 = vmatprep.mubr.f32.mxu0 %v2577_v22  ;;  %4171 = vrcp.f32 %v2460_v29  ;;  %v2581_v19 = vmul.f32 %v4327_v0, %v6248_v58 }
 0x7cc   : > { %v4154_v2 = vpop.eup %4153  ;;  %v1963_v61 = vadd.f32 %v1931_v27, %v6761_v53  ;;  %v2578_v15 = vmul.f32 %v4324_v20, %v6237_v49  ;;  %v2019_v8 = vmul.f32 %v4152_v46, %v6762_v32  ;;  %v6769_v27 = vld [vmem:[#allocation70_spill] sm:$0xff] }
 0x7cd   : > { %v4156_v36 = vpop.eup %4155  ;;  %v2519_v50 = vmul.f32 %v4154_v2, %v6764_v52 }
 0x7ce   : > { %4173 = vrcp.f32 %v1963_v61  ;;  %3859 = vmatmul.mubr.f32.gmra.mxu0 %v2578_v15  ;;  %v6251_v51 = vmin.f32 %v2019_v8, %v2516_v3  ;;  %v2024_v42 = vmul.f32 %v4156_v36, %v6767_v21  ;;  %v6770_v3 = vld [vmem:[#allocation64_spill] sm:$0xff]  ;;  %v6771_v61 = vld [vmem:[#allocation81_spill] sm:$0xff]  ;;  %v6772_v8 = vld [vmem:[#allocation79_spill] sm:$0xff] }
 0x7cf   : > { %v4158_v12 = vpop.eup %4157  ;;  %3861 = vmatprep.mubr.f32.mxu0 %v2579_v26  ;;  %v6261_v6 = vmin.f32 %v2022_v5, %v2519_v50  ;;  %v2520_v54 = vmul.f32 %v4148_v48, %v6770_v3  ;;  %v4330_v26 = vld [vmem:[%s4422_s21 + $0xd8] sm:$0xff]  ;;  %v6773_v48 = vld [vmem:[#allocation71_spill] sm:$0xff]  ;;  %v6774_v36 = vld [vmem:[#allocation72_spill] sm:$0xff] }
 0x7d0   : > { %v4160_v16 = vpop.eup %4159  ;;  %v2580_v41 = vmul.f32 %v4326_v25, %v6251_v51  ;;  %v2021_v10 = vmul.f32 %v4158_v12, %v6765_v44  ;;  %v4331_v50 = vld [vmem:[%s4422_s21 + $0xe0] sm:$0xff] }
 0x7d1   : > { %v4162_v29 = vpop.eup %4161  ;;  %v2521_v14 = vmul.f32 %v4160_v16, %v6768_v18  ;;  %v2583_v2 = vmul.f32 %v4329_v47, %v6261_v6  ;;  %v6779_v47 = vlaneseq }
 0x7d2   : > { %v4164_v43 = vpop.eup %4163  ;;  %3862 = vmatmul.mubr.f32.gmra.mxu0 %v2580_v41  ;;  %v6264_v35 = vmin.f32 %v2021_v10, %v2518_v4  ;;  %v2522_v12 = vmul.f32 %v4162_v29, %v6774_v36  ;;  %v4332_v10 = vld [vmem:[%s4422_s21 + $0xe8] sm:$0xff]  ;;  %v6775_v4 = vld [vmem:[#allocation66_spill] sm:$0xff]  ;;  %v4333_v29 = vld [vmem:[%s4422_s21 + $0xf0] sm:$0xff] }
 0x7d3   : > { %v4166_v22 = vpop.eup %4165  ;;  %3864 = vmatprep.mubr.f32.mxu0 %v2581_v19  ;;  %v6273_v53 = vmin.f32 %v2024_v42, %v2521_v14  ;;  %v2026_v20 = vmul.f32 %v4164_v43, %v6771_v61  ;;  %v6776_v19 = vld [vmem:[#allocation80_spill] sm:$0xff]  ;;  %v6777_v14 = vld [vmem:[#allocation3_spill] sm:$0xff] }
 0x7d4   : > { %v4168_v13 = vpop.eup %4167  ;;  %v2582_v46 = vmul.f32 %v4328_v37, %v6264_v35  ;;  %v2023_v63 = vmul.f32 %v4166_v22, %v6769_v27  ;;  %v4334_v22 = vld [vmem:[%s4422_s21 + $0xf8] sm:$0xff]  ;;  %v6778_v37 = vld [vmem:[#allocation2_spill] sm:$0xff] }
 0x7d5   : > { %v2523_v34 = vmul.f32 %v4168_v13, %v6772_v8  ;;  %v2585_v16 = vmul.f32 %v4331_v50, %v6273_v53  ;;  %v3203_v13 = vmul.f32 -1.442695, %v6777_v14  ;;  %v6784_v50 = vld [vmem:[#allocation5_spill] sm:$0xff] }
 0x7d6   : > { %3865 = vmatmul.mubr.f32.gmra.mxu0 %v2582_v46  ;;  %v6276_v15 = vmin.f32 %v2023_v63, %v2520_v54  ;;  %v3202_v46 = vmul.f32 -1.442695, %v6778_v37 }
 0x7d7   : > { %v4170_v32 = vpop.eup %4169  ;;  %3867 = vmatprep.mubr.f32.mxu0 %v2583_v2  ;;  %v6285_v25 = vmin.f32 %v2026_v20, %v2523_v34  ;;  %4175 = vpow2.f32 %v3203_v13  ;;  %v3039_v2 = vand.u32 127, %v6779_v47  ;;  %v6791_v13 = vld [vmem:[#allocation10_spill] sm:$0xff] }
 0x7d8   : > { %v2584_v30 = vmul.f32 %v4330_v26, %v6276_v15  ;;  %v2025_v5 = vmul.f32 %v4170_v32, %v6773_v48  ;;  %v4172_v52 = vpop.eup %4171  ;;  %4177 = vpow2.f32 %v3202_v46  ;;  %v6782_v48 = vld [vmem:[#allocation13_spill] sm:$0xff]  ;;  %v3210_v37 = vmul.f32 -1.442695, %v6791_v13  ;;  %v6792_v46 = vld [vmem:[#allocation20_spill] sm:$0xff] }
 0x7d9   : > { %v2524_v21 = vmul.f32 %v4172_v52, %v6776_v19  ;;  %v2587_v42 = vmul.f32 %v4333_v29, %v6285_v25  ;;  %v3044_v61 = vand.u32 31, %v3039_v2  ;;  %v6794_v2 = vld [vmem:[#allocation17_spill] sm:$0xff] }
 0x7da   : > { %3868 = vmatmul.mubr.f32.gmra.mxu0 %v2584_v30  ;;  %v6287_v41 = vmin.f32 %v2025_v5, %v2522_v12  ;;  %v6783_v12 = vld [vmem:[#allocation12_spill] sm:$0xff] }
 0x7db   : > { %v4174_v44 = vpop.eup %4173  ;;  %3870 = vmatprep.mubr.f32.mxu0 %v2585_v16  ;;  %vm6302_vm0 = vcmp.eq.s32.totalorder %v3044_v61, 8  ;;  %v3205_v16 = vmul.f32 -1.442695, %v6784_v50  ;;  %v3215_v61 = vmul.f32 -1.442695, %v6794_v2  ;;  %v6797_v50 = vld [vmem:[#allocation25_spill] sm:$0xff] }
 0x7dc   : > { %v2586_v28 = vmul.f32 %v4332_v10, %v6287_v41  ;;  %v2027_v0 = vmul.f32 %v4174_v44, %v6775_v4  ;;  %v6785_v44 = vld [vmem:[#allocation4_spill] sm:$0xff] }
 0x7dd   : > { %v3204_v10 = vmul.f32 -1.442695, %v6785_v44 }
 0x7de   : > { %3871 = vmatmul.mubr.f32.gmra.mxu0 %v2586_v28  ;;  %v6295_v43 = vmin.f32 %v2027_v0, %v2524_v21  ;;  %v6786_v28 = vld [vmem:[#allocation7_spill] sm:$0xff]  ;;  %v6787_v0 = vld [vmem:[#allocation6_spill] sm:$0xff]  ;;  %v6788_v21 = vld [vmem:[#allocation8_spill] sm:$0xff] }
 0x7df   : > { %3873 = vmatprep.mubr.f32.mxu0 %v2587_v42  ;;  %v3207_v4 = vmul.f32 -1.442695, %v6786_v28  ;;  %v3206_v19 = vmul.f32 -1.442695, %v6787_v0  ;;  %v3209_v29 = vmul.f32 -1.442695, %v6788_v21 }
 0x7e0   : > { %v2588_v18 = vmul.f32 %v4334_v22, %v6295_v43  ;;  %v6789_v42 = vld [vmem:[#allocation9_spill] sm:$0xff]  ;;  %v6798_v28 = vld [vmem:[#allocation31_spill] sm:$0xff]  ;;  %v6799_v21 = vld [vmem:[#allocation22_spill] sm:$0xff] }
 0x7e1   : > { %v3208_v22 = vmul.f32 -1.442695, %v6789_v42 }
 0x7e2   : > { %3874 = vmatmul.mubr.f32.gmra.mxu0 %v2588_v18  ;;  %v6790_v18 = vld [vmem:[#allocation16_spill] sm:$0xff] }
 0x7e3   : > { %v3211_v14 = vmul.f32 -1.442695, %v6790_v18  ;;  %v6800_v18 = vld [vmem:[#allocation27_spill] sm:$0xff] }
 0x7e4   : > { %v4176_v27 = vpop.eup %4175 }
 0x7e5   : > { %v4178_v63 = vpop.eup %4177  ;;  %v2911_v3 = vadd.f32 1.0, %v4176_v27  ;;  %v3213_v27 = vmul.f32 -1.442695, %v6792_v46  ;;  %v6801_v46 = vld [vmem:[#allocation32_spill] sm:$0xff] }
 0x7e6   : > { %v2910_v54 = vadd.f32 1.0, %v4178_v63 }
 0x7e7   : > { %4179 = vrcp.f32 %v2911_v3  ;;  %v6793_v3 = vld [vmem:[#allocation11_spill] sm:$0xff] }
 0x7e8   : > { %4181 = vrcp.f32 %v2910_v54  ;;  %v3212_v54 = vmul.f32 -1.442695, %v6793_v3 }
 0x7e9   : > { %4183 = vpow2.f32 %v3205_v16  ;;  %v3216_v16 = vmul.f32 -1.442695, %v6797_v50 }
 0x7ea   : > { %4185 = vpow2.f32 %v3204_v10 }
 0x7eb   : > { %4187 = vpow2.f32 %v3207_v4  ;;  %v3219_v4 = vmul.f32 -1.442695, %v6798_v28 }
 0x7ec   : > { %4189 = vpow2.f32 %v3206_v19 }
 0x7ed   : > { %4191 = vpow2.f32 %v3209_v29  ;;  %v3218_v29 = vmul.f32 -1.442695, %v6799_v21 }
 0x7ee   : > { %4193 = vpow2.f32 %v3208_v22 }
 0x7ef   : > { %4195 = vpow2.f32 %v3211_v14  ;;  %v3221_v14 = vmul.f32 -1.442695, %v6800_v18 }
 0x7f0   : > { %4197 = vpow2.f32 %v3210_v37 }
 0x7f1   : > { %4199 = vpow2.f32 %v3213_v27  ;;  %v3220_v27 = vmul.f32 -1.442695, %v6801_v46 }
 0x7f2   : > { %4201 = vpow2.f32 %v3212_v54  ;;  %v6802_v54 = vld [vmem:[#allocation33_spill] sm:$0xff] }
 0x7f3   : > { %4203 = vpow2.f32 %v3215_v61 }
 0x7f4   : > { %v4180_v20 = vpop.eup %4179 }
 0x7f5   : > { %v4182_v26 = vpop.eup %4181 }
 0x7f6   : > { %v4184_v63 = vpop.eup %4183 }
 0x7f7   : > { %v4186_v47 = vpop.eup %4185 }
 0x835   : > { %v3830_v32 = vpop.f32.mrf.mxu0 }
 0x836   : > { %v3007_v34 = vmul.f32 %v4180_v20, %v3830_v32  ;;  %v2913_v20 = vadd.f32 1.0, %v4184_v63  ;;  %v4188_v32 = vpop.eup %4187 }
 0x837   : > { %v2655_v30 = vpop.f32.mrf.mxu0 }
 0x838   : > { %v3054_v5 = vsel %vm6302_vm0, %v3007_v34, %v6782_v48  ;;  %v3006_v36 = vmul.f32 %v4182_v26, %v2655_v30  ;;  %v6795_v34 = vld [vmem:[#allocation21_spill] sm:$0xff]  ;;  %v2912_v30 = vadd.f32 1.0, %v4186_v47  ;;  %v4190_v48 = vpop.eup %4189  ;;  %4205 = vrcp.f32 %v2913_v20 }
 0x839   : > { %3086 = vst [vmem:[%s6311_s15 + $0x8] sm:$0xff] %v3054_v5  ;;  %v3214_v26 = vmul.f32 -1.442695, %v6795_v34  ;;  %v6796_v5 = vld [vmem:[#allocation26_spill] sm:$0xff]  ;;  %v2914_v44 = vadd.f32 1.0, %v4190_v48 }
 0x83a   : > { %v3053_v52 = vsel %vm6302_vm0, %v3006_v36, %v6783_v12  ;;  %v3217_v36 = vmul.f32 -1.442695, %v6796_v5  ;;  %v2915_v12 = vadd.f32 1.0, %v4188_v32  ;;  %v3223_v47 = vmul.f32 -1.442695, %v6802_v54  ;;  %v6803_v32 = vld [vmem:[#allocation28_spill] sm:$0xff] }
 0x83b   : > { %3085 = vst [vmem:[%s6311_s15] sm:$0xff] %v3053_v52  ;;  %v4192_v52 = vpop.eup %4191  ;;  %4207 = vpow2.f32 %v3214_v26  ;;  %v3222_v34 = vmul.f32 -1.442695, %v6803_v32  ;;  %v6808_v32 = vld [vmem:[#allocation42_spill] sm:$0xff] }
 0x83c   : > { %4209 = vrcp.f32 %v2912_v30  ;;  %v4194_v10 = vpop.eup %4193  ;;  %v2917_v0 = vadd.f32 1.0, %v4192_v52 }
 0x83d   : > { %4211 = vpow2.f32 %v3217_v36  ;;  %v4196_v19 = vpop.eup %4195  ;;  %v2916_v42 = vadd.f32 1.0, %v4194_v10 }
 0x83e   : > { %4213 = vrcp.f32 %v2915_v12  ;;  %v4198_v22 = vpop.eup %4197  ;;  %v2919_v13 = vadd.f32 1.0, %v4196_v19 }
 0x83f   : > { %4215 = vpow2.f32 %v3216_v16  ;;  %v4200_v37 = vpop.eup %4199  ;;  %v2918_v63 = vadd.f32 1.0, %v4198_v22  ;;  %v6804_v16 = vld [vmem:[#allocation37_spill] sm:$0xff]  ;;  %v6806_v22 = vld [vmem:[#allocation14_spill] sm:$0xff] }
 0x840   : > { %4217 = vrcp.f32 %v2914_v44  ;;  %v4202_v3 = vpop.eup %4201  ;;  %v2921_v61 = vadd.f32 1.0, %v4200_v37  ;;  %v3225_v44 = vmul.f32 -1.442695, %v6804_v16 }
 0x841   : > { %4219 = vpow2.f32 %v3219_v4  ;;  %v4204_v2 = vpop.eup %4203  ;;  %v2920_v48 = vadd.f32 1.0, %v4202_v3 }
 0x842   : > { %4221 = vrcp.f32 %v2917_v0  ;;  %v2923_v12 = vadd.f32 1.0, %v4204_v2 }
 0x843   : > { %4223 = vpow2.f32 %v3218_v29  ;;  %v6805_v29 = vld [vmem:[#allocation36_spill] sm:$0xff] }
 0x844   : > { %4225 = vrcp.f32 %v2916_v42  ;;  %v3224_v42 = vmul.f32 -1.442695, %v6805_v29 }
 0x845   : > { %4227 = vpow2.f32 %v3221_v14  ;;  %v4206_v20 = vpop.eup %4205 }
 0x846   : > { %4229 = vrcp.f32 %v2919_v13 }
 0x847   : > { %4231 = vpow2.f32 %v3220_v27  ;;  %v6807_v27 = vld [vmem:[#allocation43_spill] sm:$0xff] }
 0x848   : > { %v4208_v30 = vpop.eup %4207  ;;  %4233 = vrcp.f32 %v2918_v63  ;;  %v3227_v63 = vmul.f32 -1.442695, %v6807_v27 }
 0x849   : > { %v4210_v36 = vpop.eup %4209  ;;  %4235 = vpow2.f32 %v3223_v47  ;;  %v2922_v0 = vadd.f32 1.0, %v4208_v30 }
 0x84a   : > { %v4212_v50 = vpop.eup %4211  ;;  %4237 = vrcp.f32 %v2921_v61 }
 0x84b   : > { %v4214_v4 = vpop.eup %4213  ;;  %4239 = vpow2.f32 %v3222_v34  ;;  %v2925_v37 = vadd.f32 1.0, %v4212_v50  ;;  %v3226_v34 = vmul.f32 -1.442695, %v6808_v32  ;;  %v6813_v32 = vld [vmem:[#allocation58_spill] sm:$0xff] }
 0x84c   : > { %v4216_v21 = vpop.eup %4215  ;;  %4241 = vrcp.f32 %v2920_v48 }
 0x84d   : > { %v4218_v13 = vpop.eup %4217  ;;  %4243 = vrcp.f32 %v2923_v12  ;;  %v2924_v2 = vadd.f32 1.0, %v4216_v21  ;;  %v6809_v12 = vld [vmem:[#allocation51_spill] sm:$0xff] }
 0x84e   : > { %v4220_v46 = vpop.eup %4219  ;;  %4245 = vpow2.f32 %v3225_v44 }
 0x84f   : > { %v4222_v47 = vpop.eup %4221  ;;  %4247 = vrcp.f32 %v2922_v0 }
 0x850   : > { %4249 = vpow2.f32 %v3224_v42 }
 0x851   : > { %4251 = vrcp.f32 %v2925_v37 }
 0x852   : > { %4253 = vpow2.f32 %v3227_v63  ;;  %v6812_v63 = vld [vmem:[#allocation50_spill] sm:$0xff] }
 0x86a   : > { %v3833_v26 = vpop.f32.mrf.mxu0 }
 0x86b   : > { %v3009_v5 = vmul.f32 %v4206_v20, %v3833_v26  ;;  %v4224_v20 = vpop.eup %4223  ;;  %4255 = vrcp.f32 %v2924_v2 }
 0x86c   : > { %v2665_v52 = vpop.f32.mrf.mxu0  ;;  %v4226_v48 = vpop.eup %4225  ;;  %4257 = vpow2.f32 %v3226_v34  ;;  %v3233_v34 = vmul.f32 -1.442695, %v6813_v32 }
 0x86d   : > { %v3056_v10 = vsel %vm6302_vm0, %v3009_v5, %v6061_v39  ;;  %v3008_v28 = vmul.f32 %v4210_v36, %v2665_v52  ;;  %v2927_v5 = vadd.f32 1.0, %v4220_v46  ;;  %v4228_v36 = vpop.eup %4227  ;;  %v3229_v52 = vmul.f32 -1.442695, %v6809_v12 }
 0x86e   : > { %3088 = vst [vmem:[%s6311_s15 + $0x18] sm:$0xff] %v3056_v10  ;;  %v3836_v19 = vpop.f32.mrf.mxu0  ;;  %v4230_v44 = vpop.eup %4229  ;;  %v2926_v10 = vadd.f32 1.0, %v4224_v20  ;;  %v2929_v42 = vadd.f32 1.0, %v4228_v36  ;;  %v6814_v36 = vld [vmem:[#allocation56_spill] sm:$0xff] }
 0x86f   : > { %v3055_v18 = vsel %vm6302_vm0, %v3008_v28, %v6806_v22  ;;  %v3011_v14 = vmul.f32 %v4214_v4, %v3836_v19  ;;  %v4232_v28 = vpop.eup %4231  ;;  %v6810_v4 = vld [vmem:[#allocation48_spill] sm:$0xff]  ;;  %4259 = vrcp.f32 %v2927_v5  ;;  %v3232_v12 = vmul.f32 -1.442695, %v6814_v36 }
 0x870   : > { %3087 = vst [vmem:[%s6311_s15 + $0x10] sm:$0xff] %v3055_v18  ;;  %v2675_v39 = vpop.f32.mrf.mxu0  ;;  %v3228_v0 = vmul.f32 -1.442695, %v6810_v4  ;;  %v4234_v29 = vpop.eup %4233  ;;  %4261 = vpow2.f32 %v3229_v52  ;;  %v6811_v18 = vld [vmem:[#allocation57_spill] sm:$0xff]  ;;  %v2928_v46 = vadd.f32 1.0, %v4232_v28 }
 0x871   : > { %v3058_v3 = vsel %vm6302_vm0, %v3011_v14, %v6081_v62  ;;  %v3010_v54 = vmul.f32 %v4218_v13, %v2675_v39  ;;  %v4236_v22 = vpop.eup %4235  ;;  %v3231_v14 = vmul.f32 -1.442695, %v6811_v18  ;;  %4263 = vrcp.f32 %v2926_v10 }
 0x872   : > { %3090 = vst [vmem:[%s6311_s15 + $0x28] sm:$0xff] %v3058_v3  ;;  %v3839_v61 = vpop.f32.mrf.mxu0  ;;  %v4238_v39 = vpop.eup %4237  ;;  %4265 = vpow2.f32 %v3228_v0  ;;  %v3230_v3 = vmul.f32 -1.442695, %v6812_v63 }
 0x873   : > { %v3057_v26 = vsel %vm6302_vm0, %v3010_v54, %v6056_v59  ;;  %v3013_v30 = vmul.f32 %v4222_v47, %v3839_v61  ;;  %v4240_v27 = vpop.eup %4239  ;;  %4267 = vrcp.f32 %v2929_v42  ;;  %v2931_v61 = vadd.f32 1.0, %v4236_v22 }
 0x874   : > { %3089 = vst [vmem:[%s6311_s15 + $0x20] sm:$0xff] %v3057_v26  ;;  %v2685_v62 = vpop.f32.mrf.mxu0  ;;  %v4242_v2 = vpop.eup %4241  ;;  %4269 = vpow2.f32 %v3231_v14  ;;  %v2930_v5 = vadd.f32 1.0, %v4240_v27 }
 0x875   : > { %v3060_v50 = vsel %vm6302_vm0, %v3013_v30, %v6102_v57  ;;  %v3012_v16 = vmul.f32 %v4226_v48, %v2685_v62  ;;  %v4244_v20 = vpop.eup %4243  ;;  %4271 = vrcp.f32 %v2928_v46 }
 0x876   : > { %3092 = vst [vmem:[%s6311_s15 + $0x38] sm:$0xff] %v3060_v50  ;;  %v3842_v59 = vpop.f32.mrf.mxu0  ;;  %v4246_v48 = vpop.eup %4245  ;;  %4273 = vpow2.f32 %v3230_v3 }
 0x877   : > { %v3059_v19 = vsel %vm6302_vm0, %v3012_v16, %v6076_v40  ;;  %v3015_v21 = vmul.f32 %v4230_v44, %v3842_v59  ;;  %v4248_v62 = vpop.eup %4247  ;;  %4275 = vrcp.f32 %v2931_v61  ;;  %v2933_v10 = vadd.f32 1.0, %v4246_v48 }
 0x878   : > { %3091 = vst [vmem:[%s6311_s15 + $0x30] sm:$0xff] %v3059_v19  ;;  %v2695_v57 = vpop.f32.mrf.mxu0  ;;  %v4250_v16 = vpop.eup %4249  ;;  %4277 = vpow2.f32 %v3233_v34 }
 0x879   : > { %v3062_v13 = vsel %vm6302_vm0, %v3015_v21, %v6125_v38  ;;  %v3014_v37 = vmul.f32 %v4234_v29, %v2695_v57  ;;  %v4252_v44 = vpop.eup %4251  ;;  %4279 = vrcp.f32 %v2930_v5  ;;  %v2932_v19 = vadd.f32 1.0, %v4250_v16 }
 0x87a   : > { %3094 = vst [vmem:[%s6311_s15 + $0x48] sm:$0xff] %v3062_v13  ;;  %v3845_v40 = vpop.f32.mrf.mxu0  ;;  %v4254_v4 = vpop.eup %4253  ;;  %4281 = vpow2.f32 %v3232_v12 }
 0x87b   : > { %v3061_v54 = vsel %vm6302_vm0, %v3014_v37, %v6100_v55  ;;  %v3017_v47 = vmul.f32 %v4238_v39, %v3845_v40  ;;  %4283 = vrcp.f32 %v2933_v10 }
 0x87c   : > { %3093 = vst [vmem:[%s6311_s15 + $0x40] sm:$0xff] %v3061_v54  ;;  %v2705_v38 = vpop.f32.mrf.mxu0  ;;  %4285 = vrcp.f32 %v2932_v19 }
 0x87d   : > { %v3064_v26 = vsel %vm6302_vm0, %v3017_v47, %v6147_v7  ;;  %v3016_v30 = vmul.f32 %v4242_v2, %v2705_v38 }
 0x87e   : > { %3096 = vst [vmem:[%s6311_s15 + $0x58] sm:$0xff] %v3064_v26  ;;  %v3848_v55 = vpop.f32.mrf.mxu0 }
 0x87f   : > { %v3063_v52 = vsel %vm6302_vm0, %v3016_v30, %v6116_v17  ;;  %v3019_v50 = vmul.f32 %v4244_v20, %v3848_v55  ;;  %v4256_v17 = vpop.eup %4255 }
 0x880   : > { %3095 = vst [vmem:[%s6311_s15 + $0x50] sm:$0xff] %v3063_v52  ;;  %v2715_v7 = vpop.f32.mrf.mxu0  ;;  %v4258_v42 = vpop.eup %4257 }
 0x881   : > { %v3066_v59 = vsel %vm6302_vm0, %v3019_v50, %v6166_v56  ;;  %v3018_v28 = vmul.f32 %v4248_v62, %v2715_v7  ;;  %v4260_v22 = vpop.eup %4259  ;;  %v2935_v56 = vadd.f32 1.0, %v4254_v4 }
 0x882   : > { %3098 = vst [vmem:[%s6311_s15 + $0x68] sm:$0xff] %v3066_v59  ;;  %v3851_v0 = vpop.f32.mrf.mxu0  ;;  %v4262_v13 = vpop.eup %4261 }
 0x883   : > { %v3065_v21 = vsel %vm6302_vm0, %v3018_v28, %v6142_v23  ;;  %v3021_v29 = vmul.f32 %v4252_v44, %v3851_v0  ;;  %v4264_v39 = vpop.eup %4263  ;;  %v2934_v23 = vadd.f32 1.0, %v4258_v42  ;;  %4287 = vrcp.f32 %v2935_v56 }
 0x884   : > { %3097 = vst [vmem:[%s6311_s15 + $0x60] sm:$0xff] %v3065_v21  ;;  %v2725_v57 = vpop.f32.mrf.mxu0  ;;  %v4266_v27 = vpop.eup %4265 }
 0x885   : > { %v3068_v18 = vsel %vm6302_vm0, %v3021_v29, %v6187_v60  ;;  %v3020_v14 = vmul.f32 %v4256_v17, %v2725_v57  ;;  %v4268_v3 = vpop.eup %4267  ;;  %v2937_v60 = vadd.f32 1.0, %v4262_v13  ;;  %4289 = vrcp.f32 %v2934_v23 }
 0x886   : > { %3100 = vst [vmem:[%s6311_s15 + $0x78] sm:$0xff] %v3068_v18  ;;  %v3854_v37 = vpop.f32.mrf.mxu0  ;;  %v4270_v2 = vpop.eup %4269 }
 0x887   : > { %v3067_v46 = vsel %vm6302_vm0, %v3020_v14, %v6164_v24  ;;  %v3023_v40 = vmul.f32 %v4260_v22, %v3854_v37  ;;  %v4272_v38 = vpop.eup %4271  ;;  %v2936_v24 = vadd.f32 1.0, %v4266_v27  ;;  %4291 = vrcp.f32 %v2937_v60 }
 0x888   : > { %3099 = vst [vmem:[%s6311_s15 + $0x70] sm:$0xff] %v3067_v46  ;;  %v2735_v63 = vpop.f32.mrf.mxu0  ;;  %v4274_v34 = vpop.eup %4273 }
 0x889   : > { %v3070_v54 = vsel %vm6302_vm0, %v3023_v40, %v6206_v9  ;;  %v3022_v47 = vmul.f32 %v4264_v39, %v2735_v63  ;;  %v4276_v30 = vpop.eup %4275  ;;  %v2939_v9 = vadd.f32 1.0, %v4270_v2  ;;  %4293 = vrcp.f32 %v2936_v24 }
 0x88a   : > { %3102 = vst [vmem:[%s6311_s15 + $0x88] sm:$0xff] %v3070_v54  ;;  %v3857_v61 = vpop.f32.mrf.mxu0  ;;  %v4278_v55 = vpop.eup %4277 }
 0x88b   : > { %v3069_v20 = vsel %vm6302_vm0, %v3022_v47, %v6181_v11  ;;  %v3025_v32 = vmul.f32 %v4268_v3, %v3857_v61  ;;  %v4280_v36 = vpop.eup %4279  ;;  %v2938_v11 = vadd.f32 1.0, %v4274_v34  ;;  %4295 = vrcp.f32 %v2939_v9 }
 0x88c   : > { %3101 = vst [vmem:[%s6311_s15 + $0x80] sm:$0xff] %v3069_v20  ;;  %v2745_v26 = vpop.f32.mrf.mxu0  ;;  %v4282_v50 = vpop.eup %4281  ;;  %v2941_v7 = vadd.f32 1.0, %v4278_v55 }
 0x88d   : > { %v3072_v48 = vsel %vm6302_vm0, %v3025_v32, %v6221_v33  ;;  %v3024_v5 = vmul.f32 %v4272_v38, %v2745_v26  ;;  %v4284_v10 = vpop.eup %4283  ;;  %4297 = vrcp.f32 %v2938_v11  ;;  %v2940_v28 = vadd.f32 1.0, %v4282_v50 }
 0x88e   : > { %3104 = vst [vmem:[%s6311_s15 + $0x98] sm:$0xff] %v3072_v48  ;;  %v3860_v62 = vpop.f32.mrf.mxu0  ;;  %v4286_v0 = vpop.eup %4285  ;;  %4299 = vrcp.f32 %v2941_v7 }
 0x88f   : > { %v3071_v12 = vsel %vm6302_vm0, %v3024_v5, %v6203_v31  ;;  %v3027_v52 = vmul.f32 %v4276_v30, %v3860_v62  ;;  %4301 = vrcp.f32 %v2940_v28 }
 0x890   : > { %3103 = vst [vmem:[%s6311_s15 + $0x90] sm:$0xff] %v3071_v12  ;;  %v2755_v16 = vpop.f32.mrf.mxu0  ;;  %v4288_v21 = vpop.eup %4287 }
 0x891   : > { %v3074_v33 = vsel %vm6302_vm0, %v3027_v52, %v6237_v49  ;;  %v3026_v44 = vmul.f32 %v4280_v36, %v2755_v16 }
 0x892   : > { %3106 = vst [vmem:[%s6311_s15 + $0xa8] sm:$0xff] %v3074_v33  ;;  %v3863_v59 = vpop.f32.mrf.mxu0  ;;  %v4290_v57 = vpop.eup %4289 }
 0x893   : > { %v3073_v31 = vsel %vm6302_vm0, %v3026_v44, %v6218_v1  ;;  %v3029_v4 = vmul.f32 %v4284_v10, %v3863_v59 }
 0x894   : > { %3105 = vst [vmem:[%s6311_s15 + $0xa0] sm:$0xff] %v3073_v31  ;;  %v2765_v17 = vpop.f32.mrf.mxu0  ;;  %v4292_v18 = vpop.eup %4291 }
 0x895   : > { %v3076_v49 = vsel %vm6302_vm0, %v3029_v4, %v6251_v51  ;;  %v3028_v19 = vmul.f32 %v4286_v0, %v2765_v17 }
 0x896   : > { %3108 = vst [vmem:[%s6311_s15 + $0xb8] sm:$0xff] %v3076_v49  ;;  %v3866_v29 = vpop.f32.mrf.mxu0 }
 0x897   : > { %v3075_v1 = vsel %vm6302_vm0, %v3028_v19, %v6234_v45  ;;  %v3031_v42 = vmul.f32 %v4288_v21, %v3866_v29  ;;  %v4294_v45 = vpop.eup %4293 }
 0x898   : > { %3107 = vst [vmem:[%s6311_s15 + $0xb0] sm:$0xff] %v3075_v1  ;;  %v2775_v22 = vpop.f32.mrf.mxu0 }
 0x899   : > { %v3078_v56 = vsel %vm6302_vm0, %v3031_v42, %v6264_v35  ;;  %v3030_v51 = vmul.f32 %v4290_v57, %v2775_v22  ;;  %v4296_v35 = vpop.eup %4295 }
 0x89a   : > { %3110 = vst [vmem:[%s6311_s15 + $0xc8] sm:$0xff] %v3078_v56  ;;  %v3869_v14 = vpop.f32.mrf.mxu0 }
 0x89b   : > { %v3077_v13 = vsel %vm6302_vm0, %v3030_v51, %v6248_v58  ;;  %v3033_v37 = vmul.f32 %v4292_v18, %v3869_v14  ;;  %v4298_v58 = vpop.eup %4297 }
 0x89c   : > { %3109 = vst [vmem:[%s6311_s15 + $0xc0] sm:$0xff] %v3077_v13  ;;  %v2785_v39 = vpop.f32.mrf.mxu0  ;;  %v4300_v54 = vpop.eup %4299 }
 0x89d   : > { %v3080_v23 = vsel %vm6302_vm0, %v3033_v37, %v6276_v15  ;;  %v3032_v46 = vmul.f32 %v4294_v45, %v2785_v39 }
 0x89e   : > { %3112 = vst [vmem:[%s6311_s15 + $0xd8] sm:$0xff] %v3080_v23  ;;  %v3872_v40 = vpop.f32.mrf.mxu0 }
 0x89f   : > { %v3079_v27 = vsel %vm6302_vm0, %v3032_v46, %v6261_v6  ;;  %v3035_v63 = vmul.f32 %v4296_v35, %v3872_v40  ;;  %v4302_v6 = vpop.eup %4301 }
 0x8a0   : > { %3111 = vst [vmem:[%s6311_s15 + $0xd0] sm:$0xff] %v3079_v27  ;;  %v2795_v3 = vpop.f32.mrf.mxu0 }
 0x8a1   : > { %v3082_v60 = vsel %vm6302_vm0, %v3035_v63, %v6287_v41  ;;  %v3034_v15 = vmul.f32 %v4298_v58, %v2795_v3 }
 0x8a2   : > { %3114 = vst [vmem:[%s6311_s15 + $0xe8] sm:$0xff] %v3082_v60  ;;  %v3875_v47 = vpop.f32.mrf.mxu0 }
 0x8a3   : > { %v3081_v2 = vsel %vm6302_vm0, %v3034_v15, %v6273_v53  ;;  %v3037_v61 = vmul.f32 %v4300_v54, %v3875_v47 }
 0x8a4   : > { %3113 = vst [vmem:[%s6311_s15 + $0xe0] sm:$0xff] %v3081_v2  ;;  %v2805_v38 = vpop.f32.mrf.mxu0 }
 0x8a5   : > { %v3084_v24 = vsel %vm6302_vm0, %v3037_v61, %v6295_v43  ;;  %v3036_v20 = vmul.f32 %v4302_v6, %v2805_v38 }
 0x8a6   : > { %3116 = vst [vmem:[%s6311_s15 + $0xf8] sm:$0xff] %v3084_v24 }
 0x8a7   : > { %v3083_v41 = vsel %vm6302_vm0, %v3036_v20, %v6285_v25 }
 0x8a8   : > { %3115 = vst [vmem:[%s6311_s15 + $0xf0] sm:$0xff] %v3083_v41 }
 0x8a9 PF: > { %s18_s27 = sadd.s32 1, %s4341_s27  }
 0x8aa   : > { %p15_p4 = scmp.ge.s32.totalorder %s18_s27, 4  }
 0x8ac   :  { %17 = sbr.rel (!%p15_p4) target bundleno = 1 (0x1), region = 84 }

</bundles_post_ra>
